<compile_context>
chip_gen: v6e
topology: v6e:2x2x1
jax: 0.10.0
libtpu: 0.0.40
codegen_flags: <defaults>
</compile_context>

<pallas_src>
import jax
import jax.numpy as jnp
from jax.experimental import pallas as pl
from jax.experimental.pallas import tpu as pltpu


# ----------------------------------------------------------------------------
# Pallas kernels
# ----------------------------------------------------------------------------
def _coarse_kernel(x_ref, w1_ref, b1_ref, w2_ref, b2_ref, w3_ref, b3_ref,
                   o_ref):
    """Coarse branch tile: relu(bn1(conv1)) -> relu(bn2(conv2)) -> conv3."""
    x = x_ref[0]                                              # (TM, Cpad) bf16
    h = jnp.dot(x, w1_ref[...], preferred_element_type=jnp.float32)
    h = jnp.maximum(h + b1_ref[...], 0.0)                     # (TM, 1024) f32
    h = jnp.dot(h.astype(jnp.bfloat16), w2_ref[...],
                preferred_element_type=jnp.float32)
    h = jnp.maximum(h + b2_ref[...], 0.0)                     # (TM, 512) f32
    y = jnp.dot(h.astype(jnp.bfloat16), w3_ref[...],
                preferred_element_type=jnp.float32)
    o_ref[0] = y + b3_ref[...]                                # (TM, 3) f32


def _detail_kernel(x_ref, c_ref, w4x_ref, w4c_ref, g4_ref, b4_ref,
                   w5_ref, b5_ref, w6_ref, b6_ref, o_ref):
    """Detail branch tile with the folding-seed construction fused in.

    For each coarse point i in the tile and each folding-grid corner g:
      feat = [x_i, grid_g, center_i]
      conv4(feat) = x_i @ W4x + center_i @ W4c + G4[g] + b4
    so conv4's x/center parts are computed once per coarse point and the
    grid contribution is a precomputed (4, 512) table.
    """
    x = x_ref[0]                                              # (TM, Cpad) bf16
    c = c_ref[0]                                              # (TM, 3)   f32

    h0 = jnp.dot(x, w4x_ref[...], preferred_element_type=jnp.float32)
    h0 = h0 + b4_ref[...]
    # 3-channel center contribution as VPU broadcasts (avoids a K=3 matmul).
    h0 = h0 + (c[:, 0:1] * w4c_ref[0:1, :]
               + c[:, 1:2] * w4c_ref[1:2, :]
               + c[:, 2:3] * w4c_ref[2:3, :])                 # (TM, 512) f32

    for g in range(4):                                        # 4 folding corners
        h = jnp.maximum(h0 + g4_ref[g:g + 1, :], 0.0)         # relu(bn3(conv4))
        h = jnp.dot(h.astype(jnp.bfloat16), w5_ref[...],
                    preferred_element_type=jnp.float32)
        h = jnp.maximum(h + b5_ref[...], 0.0)                 # relu(bn4(conv5))
        y = jnp.dot(h.astype(jnp.bfloat16), w6_ref[...],
                    preferred_element_type=jnp.float32)
        o_ref[0, g] = y + b6_ref[...] + c                     # conv6 + centers


# ----------------------------------------------------------------------------
# Helpers
# ----------------------------------------------------------------------------
def _pick_tile(n, target=1024):
    """Largest tile <= target that divides n (else the full axis)."""
    for t in (target, 4096, 2048, 1024, 512, 256, 128, 64, 32, 16, 8):
        if t <= n and n % t == 0:
            return t
    return n


# ----------------------------------------------------------------------------
# Parameter construction (deterministic, in-script)
# ----------------------------------------------------------------------------
def init_params(key, input_size):
    ks = jax.random.split(key, 16)
    eps = 1e-5

    def conv(k, cin, cout):
        kw, kb = jax.random.split(k)
        w = 0.02 * jax.random.normal(kw, (cin, cout), jnp.float32)
        b = 0.02 * jax.random.normal(kb, (cout,), jnp.float32)
        return w, b

    def bn(k, c):
        kg, kb = jax.random.split(k)
        gamma = 1.0 + 0.1 * jax.random.normal(kg, (c,), jnp.float32)
        beta = 0.1 * jax.random.normal(kb, (c,), jnp.float32)
        return gamma, beta, jnp.zeros((c,), jnp.float32), jnp.ones((c,), jnp.float32)

    def fold(w, b, gamma, beta, mean, var):
        scale = gamma / jnp.sqrt(var + eps)
        return w * scale[None, :], (b - mean) * scale + beta

    w1, b1 = conv(ks[0], input_size, 1024)
    w2, b2 = conv(ks[1], 1024, 512)
    w3, b3 = conv(ks[2], 512, 3)
    w4, b4 = conv(ks[3], input_size + 5, 512)
    w5, b5 = conv(ks[4], 512, 512)
    w6, b6 = conv(ks[5], 512, 3)

    w1, b1 = fold(w1, b1, *bn(ks[6], 1024))   # conv1 + bn1
    w2, b2 = fold(w2, b2, *bn(ks[7], 512))    # conv2 + bn2
    w4, b4 = fold(w4, b4, *bn(ks[8], 512))    # conv4 + bn3
    w5, b5 = fold(w5, b5, *bn(ks[9], 512))    # conv5 + bn4

    cpad = ((input_size + 127) // 128) * 128   # lane-aligned K

    def padk(w):
        return jnp.pad(w, ((0, cpad - w.shape[0]), (0, 0)))

    # Split conv4's weight rows: [x (input_size), grid (2), centers (3)].
    w4x = w4[:input_size]
    w4g = w4[input_size:input_size + 2]
    w4c = w4[input_size + 2:]

    # Folding grid exactly as the PyTorch module builds it (np.meshgrid 'xy'):
    lin = jnp.linspace(-0.05, 0.05, 2, dtype=jnp.float32)
    gx, gy = jnp.meshgrid(lin, lin)
    grids = jnp.stack([gx, gy]).reshape(2, -1)               # (2, 4)
    g4 = jnp.dot(grids.T, w4g)                               # (4, 512) f32

    bf = jnp.bfloat16
    r2 = lambda b: b.reshape(1, -1)
    return dict(
        w1=padk(w1).astype(bf), b1=r2(b1),
        w2=w2.astype(bf), b2=r2(b2),
        w3=w3.astype(bf), b3=r2(b3),
        w4x=padk(w4x).astype(bf), w4c=w4c, g4=g4, b4=r2(b4),
        w5=w5.astype(bf), b5=r2(b5),
        w6=w6.astype(bf), b6=r2(b6),
    )


# ----------------------------------------------------------------------------
# Forward pass (tiny glue in JAX, hot path in Pallas)
# ----------------------------------------------------------------------------
@jax.jit
def pcn_decoder_forward(x, params):
    """x: (B, input_size, N) float32, PyTorch NCW layout."""
    B, c_in, N = x.shape
    cpad = params["w1"].shape[0]
    TM = _pick_tile(N)
    grid = (B, N // TM)

    # channels-last, bf16, zero-padded to lane-aligned channel count.
    xt = jnp.transpose(x, (0, 2, 1)).astype(jnp.bfloat16)     # (B, N, C_in)
    if cpad > c_in:
        xt = jnp.pad(xt, ((0, 0), (0, 0), (0, cpad - c_in)))  # (B, N, Cpad)

    def wspec(shape):
        return pl.BlockSpec(shape, lambda b, i: (0,) * len(shape))

    def pspec(ch):
        return pl.BlockSpec((1, TM, ch), lambda b, i: (b, i, 0))

    compiler_params = pltpu.CompilerParams(
        dimension_semantics=("parallel", "parallel"),
        vmem_limit_bytes=48 * 1024 * 1024)

    # ---- coarse branch ------------------------------------------------------
    y_coarse_t = pl.pallas_call(
        _coarse_kernel,
        out_shape=jax.ShapeDtypeStruct((B, N, 3), jnp.float32),
        grid_spec=pltpu.PrefetchScalarGridSpec(
            num_scalar_prefetch=0,
            grid=grid,
            in_specs=[
                pspec(cpad),
                wspec((cpad, 1024)), wspec((1, 1024)),
                wspec((1024, 512)), wspec((1, 512)),
                wspec((512, 3)), wspec((1, 3)),
            ],
            out_specs=pl.BlockSpec((1, TM, 3), lambda b, i: (b, i, 0)),
        ),
        compiler_params=compiler_params,
    )(xt, params["w1"], params["b1"], params["w2"], params["b2"],
      params["w3"], params["b3"])                             # (B, N, 3)

    y_coarse = jnp.transpose(y_coarse_t, (0, 2, 1))           # (B, 3, N)

    # ---- detail branch (folding-seed construction fused in-kernel) ---------
    det = pl.pallas_call(
        _detail_kernel,
        out_shape=jax.ShapeDtypeStruct((B, 4, N, 3), jnp.float32),
        grid_spec=pltpu.PrefetchScalarGridSpec(
            num_scalar_prefetch=0,
            grid=grid,
            in_specs=[
                pspec(cpad),                                       # x tile
                pl.BlockSpec((1, TM, 3), lambda b, i: (b, i, 0)),  # coarse tile
                wspec((cpad, 512)), wspec((3, 512)),
                wspec((4, 512)), wspec((1, 512)),
                wspec((512, 512)), wspec((1, 512)),
                wspec((512, 3)), wspec((1, 3)),
            ],
            out_specs=pl.BlockSpec((1, 4, TM, 3), lambda b, i: (b, 0, i, 0)),
        ),
        compiler_params=compiler_params,
    )(xt, y_coarse_t, params["w4x"], params["w4c"], params["g4"], params["b4"],
      params["w5"], params["b5"], params["w6"], params["b6"])  # (B, 4, N, 3)

    # Detail point j = 4*i + g  -> (B, 4, N, 3) -> (B, 3, N, 4) -> (B, 3, 4N).
    y_detail = jnp.transpose(det, (0, 3, 2, 1)).reshape(B, 3, 4 * N)

    return y_coarse, y_detail


# ----------------------------------------------------------------------------
if __name__ == "__main__":
    B, INPUT_SIZE, N = 2, 64, 16   # small shapes; hidden widths fixed by module

    key = jax.random.PRNGKey(0)
    k_params, k_x = jax.random.split(key)
    params = init_params(k_params, INPUT_SIZE)
    x = jax.random.normal(k_x, (B, INPUT_SIZE, N), jnp.float32)

    y_coarse, y_detail = pcn_decoder_forward(x, params)
    jax.block_until_ready((y_coarse, y_detail))

    assert y_coarse.shape == (B, 3, N)
    assert y_detail.shape == (B, 3, 4 * N)
    print("KERNEL_OK")
</pallas_src>

<mosaic_0001>
module attributes {stable_mosaic.version = 11 : i64} {
  func.func @_detail_kernel(%arg0: i32, %arg1: i32, %arg2: memref<1x16x128xbf16, #tpu.memory_space<vmem>>, %arg3: memref<1x16x3xf32, #tpu.memory_space<vmem>>, %arg4: memref<128x512xbf16, #tpu.memory_space<vmem>>, %arg5: memref<3x512xf32, #tpu.memory_space<vmem>>, %arg6: memref<4x512xf32, #tpu.memory_space<vmem>>, %arg7: memref<1x512xf32, #tpu.memory_space<vmem>>, %arg8: memref<512x512xbf16, #tpu.memory_space<vmem>>, %arg9: memref<1x512xf32, #tpu.memory_space<vmem>>, %arg10: memref<512x3xbf16, #tpu.memory_space<vmem>>, %arg11: memref<1x3xf32, #tpu.memory_space<vmem>>, %arg12: memref<1x4x16x3xf32, #tpu.memory_space<vmem>>) attributes {dimension_semantics = [#tpu.dimension_semantics<parallel>, #tpu.dimension_semantics<parallel>], iteration_bounds = array<i64: 2, 1>, scalar_prefetch = 0 : i64, scratch_operands = 0 : i64, tpu.core_type = #tpu.core_type<tc>, window_params = [{transform_indices = @transform_0, window_bounds = array<i64: 1, 16, 128>}, {transform_indices = @transform_1, window_bounds = array<i64: 1, 16, 3>}, {pipeline_mode = #tpu.pipeline_mode<synchronous>, transform_indices = @transform_2, window_bounds = array<i64: 128, 512>}, {pipeline_mode = #tpu.pipeline_mode<synchronous>, transform_indices = @transform_3, window_bounds = array<i64: 3, 512>}, {pipeline_mode = #tpu.pipeline_mode<synchronous>, transform_indices = @transform_4, window_bounds = array<i64: 4, 512>}, {pipeline_mode = #tpu.pipeline_mode<synchronous>, transform_indices = @transform_5, window_bounds = array<i64: 1, 512>}, {pipeline_mode = #tpu.pipeline_mode<synchronous>, transform_indices = @transform_6, window_bounds = array<i64: 512, 512>}, {pipeline_mode = #tpu.pipeline_mode<synchronous>, transform_indices = @transform_7, window_bounds = array<i64: 1, 512>}, {pipeline_mode = #tpu.pipeline_mode<synchronous>, transform_indices = @transform_8, window_bounds = array<i64: 512, 3>}, {pipeline_mode = #tpu.pipeline_mode<synchronous>, transform_indices = @transform_9, window_bounds = array<i64: 1, 3>}, {transform_indices = @transform_10, window_bounds = array<i64: 1, 4, 16, 3>}]} {
    %c0 = arith.constant 0 : index
    %c0_0 = arith.constant 0 : index
    %c0_1 = arith.constant 0 : index
    %0 = vector.load %arg2[%c0, %c0_0, %c0_1] : memref<1x16x128xbf16, #tpu.memory_space<vmem>>, vector<1x16x128xbf16>
    %1 = vector.shape_cast %0 : vector<1x16x128xbf16> to vector<16x128xbf16>
    %c0_2 = arith.constant 0 : index
    %c0_3 = arith.constant 0 : index
    %c0_4 = arith.constant 0 : index
    %2 = vector.load %arg3[%c0_2, %c0_3, %c0_4] : memref<1x16x3xf32, #tpu.memory_space<vmem>>, vector<1x16x3xf32>
    %3 = vector.shape_cast %2 : vector<1x16x3xf32> to vector<16x3xf32>
    %c0_5 = arith.constant 0 : index
    %c0_6 = arith.constant 0 : index
    %4 = vector.load %arg4[%c0_5, %c0_6] : memref<128x512xbf16, #tpu.memory_space<vmem>>, vector<128x512xbf16>
    %cst = arith.constant dense<0.000000e+00> : vector<16x512xf32>
    %5 = tpu.matmul %1, %4, %cst {dimension_numbers = #tpu.dot_dimension_numbers<[1], [0], [0], [1], [0, 0, 1, 1], [], []>} : vector<16x128xbf16>, vector<128x512xbf16>, vector<16x512xf32> -> vector<16x512xf32>
    %c0_7 = arith.constant 0 : index
    %c0_8 = arith.constant 0 : index
    %6 = vector.load %arg7[%c0_7, %c0_8] : memref<1x512xf32, #tpu.memory_space<vmem>>, vector<1x512xf32>
    %7 = vector.broadcast %6 : vector<1x512xf32> to vector<16x512xf32>
    %8 = arith.addf %5, %7 : vector<16x512xf32>
    %9 = vector.extract_strided_slice %3 {offsets = [0, 0], sizes = [16, 1], strides = [1, 1]} : vector<16x3xf32> to vector<16x1xf32>
    %c0_9 = arith.constant 0 : index
    %c0_10 = arith.constant 0 : index
    %10 = vector.load %arg5[%c0_9, %c0_10] : memref<3x512xf32, #tpu.memory_space<vmem>>, vector<1x512xf32>
    %11 = vector.broadcast %9 : vector<16x1xf32> to vector<16x512xf32>
    %12 = vector.broadcast %10 : vector<1x512xf32> to vector<16x512xf32>
    %13 = arith.mulf %11, %12 : vector<16x512xf32>
    %14 = vector.extract_strided_slice %3 {offsets = [0, 1], sizes = [16, 1], strides = [1, 1]} : vector<16x3xf32> to vector<16x1xf32>
    %c1 = arith.constant 1 : index
    %c0_11 = arith.constant 0 : index
    %15 = vector.load %arg5[%c1, %c0_11] : memref<3x512xf32, #tpu.memory_space<vmem>>, vector<1x512xf32>
    %16 = vector.broadcast %14 : vector<16x1xf32> to vector<16x512xf32>
    %17 = vector.broadcast %15 : vector<1x512xf32> to vector<16x512xf32>
    %18 = arith.mulf %16, %17 : vector<16x512xf32>
    %19 = arith.addf %13, %18 : vector<16x512xf32>
    %20 = vector.extract_strided_slice %3 {offsets = [0, 2], sizes = [16, 1], strides = [1, 1]} : vector<16x3xf32> to vector<16x1xf32>
    %c2 = arith.constant 2 : index
    %c0_12 = arith.constant 0 : index
    %21 = vector.load %arg5[%c2, %c0_12] : memref<3x512xf32, #tpu.memory_space<vmem>>, vector<1x512xf32>
    %22 = vector.broadcast %20 : vector<16x1xf32> to vector<16x512xf32>
    %23 = vector.broadcast %21 : vector<1x512xf32> to vector<16x512xf32>
    %24 = arith.mulf %22, %23 : vector<16x512xf32>
    %25 = arith.addf %19, %24 : vector<16x512xf32>
    %26 = arith.addf %8, %25 : vector<16x512xf32>
    %c0_13 = arith.constant 0 : index
    %c0_14 = arith.constant 0 : index
    %27 = vector.load %arg6[%c0_13, %c0_14] : memref<4x512xf32, #tpu.memory_space<vmem>>, vector<1x512xf32>
    %28 = vector.broadcast %27 : vector<1x512xf32> to vector<16x512xf32>
    %29 = arith.addf %26, %28 : vector<16x512xf32>
    %cst_15 = arith.constant 0.000000e+00 : f32
    %30 = vector.broadcast %cst_15 : f32 to vector<16x512xf32>
    %31 = arith.maximumf %29, %30 : vector<16x512xf32>
    %32 = arith.truncf %31 : vector<16x512xf32> to vector<16x512xbf16>
    %c0_16 = arith.constant 0 : index
    %c0_17 = arith.constant 0 : index
    %33 = vector.load %arg8[%c0_16, %c0_17] : memref<512x512xbf16, #tpu.memory_space<vmem>>, vector<512x512xbf16>
    %cst_18 = arith.constant dense<0.000000e+00> : vector<16x512xf32>
    %34 = tpu.matmul %32, %33, %cst_18 {dimension_numbers = #tpu.dot_dimension_numbers<[1], [0], [0], [1], [0, 0, 1, 1], [], []>} : vector<16x512xbf16>, vector<512x512xbf16>, vector<16x512xf32> -> vector<16x512xf32>
    %c0_19 = arith.constant 0 : index
    %c0_20 = arith.constant 0 : index
    %35 = vector.load %arg9[%c0_19, %c0_20] : memref<1x512xf32, #tpu.memory_space<vmem>>, vector<1x512xf32>
    %36 = vector.broadcast %35 : vector<1x512xf32> to vector<16x512xf32>
    %37 = arith.addf %34, %36 : vector<16x512xf32>
    %cst_21 = arith.constant 0.000000e+00 : f32
    %38 = vector.broadcast %cst_21 : f32 to vector<16x512xf32>
    %39 = arith.maximumf %37, %38 : vector<16x512xf32>
    %40 = arith.truncf %39 : vector<16x512xf32> to vector<16x512xbf16>
    %c0_22 = arith.constant 0 : index
    %c0_23 = arith.constant 0 : index
    %41 = vector.load %arg10[%c0_22, %c0_23] : memref<512x3xbf16, #tpu.memory_space<vmem>>, vector<512x3xbf16>
    %cst_24 = arith.constant dense<0.000000e+00> : vector<16x3xf32>
    %42 = tpu.matmul %40, %41, %cst_24 {dimension_numbers = #tpu.dot_dimension_numbers<[1], [0], [0], [1], [0, 0, 1, 1], [], []>} : vector<16x512xbf16>, vector<512x3xbf16>, vector<16x3xf32> -> vector<16x3xf32>
    %c0_25 = arith.constant 0 : index
    %c0_26 = arith.constant 0 : index
    %43 = vector.load %arg11[%c0_25, %c0_26] : memref<1x3xf32, #tpu.memory_space<vmem>>, vector<1x3xf32>
    %44 = vector.broadcast %43 : vector<1x3xf32> to vector<16x3xf32>
    %45 = arith.addf %42, %44 : vector<16x3xf32>
    %46 = arith.addf %45, %3 : vector<16x3xf32>
    %c0_27 = arith.constant 0 : index
    %c0_28 = arith.constant 0 : index
    %c0_29 = arith.constant 0 : index
    %c0_30 = arith.constant 0 : index
    %47 = vector.load %arg12[%c0_27, %c0_28, %c0_29, %c0_30] : memref<1x4x16x3xf32, #tpu.memory_space<vmem>>, vector<1x1x16x3xf32>
    %48 = vector.shape_cast %47 : vector<1x1x16x3xf32> to vector<16x3xf32>
    %49 = vector.shape_cast %46 : vector<16x3xf32> to vector<1x1x16x3xf32>
    tpu.vector_store %arg12[%c0_27, %c0_28, %c0_29, %c0_30], %49 {strides = array<i32>} : memref<1x4x16x3xf32, #tpu.memory_space<vmem>>, vector<1x1x16x3xf32>,
    %c1_31 = arith.constant 1 : index
    %c0_32 = arith.constant 0 : index
    %50 = vector.load %arg6[%c1_31, %c0_32] : memref<4x512xf32, #tpu.memory_space<vmem>>, vector<1x512xf32>
    %51 = vector.broadcast %50 : vector<1x512xf32> to vector<16x512xf32>
    %52 = arith.addf %26, %51 : vector<16x512xf32>
    %cst_33 = arith.constant 0.000000e+00 : f32
    %53 = vector.broadcast %cst_33 : f32 to vector<16x512xf32>
    %54 = arith.maximumf %52, %53 : vector<16x512xf32>
    %55 = arith.truncf %54 : vector<16x512xf32> to vector<16x512xbf16>
    %c0_34 = arith.constant 0 : index
    %c0_35 = arith.constant 0 : index
    %56 = vector.load %arg8[%c0_34, %c0_35] : memref<512x512xbf16, #tpu.memory_space<vmem>>, vector<512x512xbf16>
    %cst_36 = arith.constant dense<0.000000e+00> : vector<16x512xf32>
    %57 = tpu.matmul %55, %56, %cst_36 {dimension_numbers = #tpu.dot_dimension_numbers<[1], [0], [0], [1], [0, 0, 1, 1], [], []>} : vector<16x512xbf16>, vector<512x512xbf16>, vector<16x512xf32> -> vector<16x512xf32>
    %c0_37 = arith.constant 0 : index
    %c0_38 = arith.constant 0 : index
    %58 = vector.load %arg9[%c0_37, %c0_38] : memref<1x512xf32, #tpu.memory_space<vmem>>, vector<1x512xf32>
    %59 = vector.broadcast %58 : vector<1x512xf32> to vector<16x512xf32>
    %60 = arith.addf %57, %59 : vector<16x512xf32>
    %cst_39 = arith.constant 0.000000e+00 : f32
    %61 = vector.broadcast %cst_39 : f32 to vector<16x512xf32>
    %62 = arith.maximumf %60, %61 : vector<16x512xf32>
    %63 = arith.truncf %62 : vector<16x512xf32> to vector<16x512xbf16>
    %c0_40 = arith.constant 0 : index
    %c0_41 = arith.constant 0 : index
    %64 = vector.load %arg10[%c0_40, %c0_41] : memref<512x3xbf16, #tpu.memory_space<vmem>>, vector<512x3xbf16>
    %cst_42 = arith.constant dense<0.000000e+00> : vector<16x3xf32>
    %65 = tpu.matmul %63, %64, %cst_42 {dimension_numbers = #tpu.dot_dimension_numbers<[1], [0], [0], [1], [0, 0, 1, 1], [], []>} : vector<16x512xbf16>, vector<512x3xbf16>, vector<16x3xf32> -> vector<16x3xf32>
    %c0_43 = arith.constant 0 : index
    %c0_44 = arith.constant 0 : index
    %66 = vector.load %arg11[%c0_43, %c0_44] : memref<1x3xf32, #tpu.memory_space<vmem>>, vector<1x3xf32>
    %67 = vector.broadcast %66 : vector<1x3xf32> to vector<16x3xf32>
    %68 = arith.addf %65, %67 : vector<16x3xf32>
    %69 = arith.addf %68, %3 : vector<16x3xf32>
    %c0_45 = arith.constant 0 : index
    %c1_46 = arith.constant 1 : index
    %c0_47 = arith.constant 0 : index
    %c0_48 = arith.constant 0 : index
    %70 = vector.load %arg12[%c0_45, %c1_46, %c0_47, %c0_48] : memref<1x4x16x3xf32, #tpu.memory_space<vmem>>, vector<1x1x16x3xf32>
    %71 = vector.shape_cast %70 : vector<1x1x16x3xf32> to vector<16x3xf32>
    %72 = vector.shape_cast %69 : vector<16x3xf32> to vector<1x1x16x3xf32>
    tpu.vector_store %arg12[%c0_45, %c1_46, %c0_47, %c0_48], %72 {strides = array<i32>} : memref<1x4x16x3xf32, #tpu.memory_space<vmem>>, vector<1x1x16x3xf32>,
    %c2_49 = arith.constant 2 : index
    %c0_50 = arith.constant 0 : index
    %73 = vector.load %arg6[%c2_49, %c0_50] : memref<4x512xf32, #tpu.memory_space<vmem>>, vector<1x512xf32>
    %74 = vector.broadcast %73 : vector<1x512xf32> to vector<16x512xf32>
    %75 = arith.addf %26, %74 : vector<16x512xf32>
    %cst_51 = arith.constant 0.000000e+00 : f32
    %76 = vector.broadcast %cst_51 : f32 to vector<16x512xf32>
    %77 = arith.maximumf %75, %76 : vector<16x512xf32>
    %78 = arith.truncf %77 : vector<16x512xf32> to vector<16x512xbf16>
    %c0_52 = arith.constant 0 : index
    %c0_53 = arith.constant 0 : index
    %79 = vector.load %arg8[%c0_52, %c0_53] : memref<512x512xbf16, #tpu.memory_space<vmem>>, vector<512x512xbf16>
    %cst_54 = arith.constant dense<0.000000e+00> : vector<16x512xf32>
    %80 = tpu.matmul %78, %79, %cst_54 {dimension_numbers = #tpu.dot_dimension_numbers<[1], [0], [0], [1], [0, 0, 1, 1], [], []>} : vector<16x512xbf16>, vector<512x512xbf16>, vector<16x512xf32> -> vector<16x512xf32>
    %c0_55 = arith.constant 0 : index
    %c0_56 = arith.constant 0 : index
    %81 = vector.load %arg9[%c0_55, %c0_56] : memref<1x512xf32, #tpu.memory_space<vmem>>, vector<1x512xf32>
    %82 = vector.broadcast %81 : vector<1x512xf32> to vector<16x512xf32>
    %83 = arith.addf %80, %82 : vector<16x512xf32>
    %cst_57 = arith.constant 0.000000e+00 : f32
    %84 = vector.broadcast %cst_57 : f32 to vector<16x512xf32>
    %85 = arith.maximumf %83, %84 : vector<16x512xf32>
    %86 = arith.truncf %85 : vector<16x512xf32> to vector<16x512xbf16>
    %c0_58 = arith.constant 0 : index
    %c0_59 = arith.constant 0 : index
    %87 = vector.load %arg10[%c0_58, %c0_59] : memref<512x3xbf16, #tpu.memory_space<vmem>>, vector<512x3xbf16>
    %cst_60 = arith.constant dense<0.000000e+00> : vector<16x3xf32>
    %88 = tpu.matmul %86, %87, %cst_60 {dimension_numbers = #tpu.dot_dimension_numbers<[1], [0], [0], [1], [0, 0, 1, 1], [], []>} : vector<16x512xbf16>, vector<512x3xbf16>, vector<16x3xf32> -> vector<16x3xf32>
    %c0_61 = arith.constant 0 : index
    %c0_62 = arith.constant 0 : index
    %89 = vector.load %arg11[%c0_61, %c0_62] : memref<1x3xf32, #tpu.memory_space<vmem>>, vector<1x3xf32>
    %90 = vector.broadcast %89 : vector<1x3xf32> to vector<16x3xf32>
    %91 = arith.addf %88, %90 : vector<16x3xf32>
    %92 = arith.addf %91, %3 : vector<16x3xf32>
    %c0_63 = arith.constant 0 : index
    %c2_64 = arith.constant 2 : index
    %c0_65 = arith.constant 0 : index
    %c0_66 = arith.constant 0 : index
    %93 = vector.load %arg12[%c0_63, %c2_64, %c0_65, %c0_66] : memref<1x4x16x3xf32, #tpu.memory_space<vmem>>, vector<1x1x16x3xf32>
    %94 = vector.shape_cast %93 : vector<1x1x16x3xf32> to vector<16x3xf32>
    %95 = vector.shape_cast %92 : vector<16x3xf32> to vector<1x1x16x3xf32>
    tpu.vector_store %arg12[%c0_63, %c2_64, %c0_65, %c0_66], %95 {strides = array<i32>} : memref<1x4x16x3xf32, #tpu.memory_space<vmem>>, vector<1x1x16x3xf32>,
    %c3 = arith.constant 3 : index
    %c0_67 = arith.constant 0 : index
    %96 = vector.load %arg6[%c3, %c0_67] : memref<4x512xf32, #tpu.memory_space<vmem>>, vector<1x512xf32>
    %97 = vector.broadcast %96 : vector<1x512xf32> to vector<16x512xf32>
    %98 = arith.addf %26, %97 : vector<16x512xf32>
    %cst_68 = arith.constant 0.000000e+00 : f32
    %99 = vector.broadcast %cst_68 : f32 to vector<16x512xf32>
    %100 = arith.maximumf %98, %99 : vector<16x512xf32>
    %101 = arith.truncf %100 : vector<16x512xf32> to vector<16x512xbf16>
    %c0_69 = arith.constant 0 : index
    %c0_70 = arith.constant 0 : index
    %102 = vector.load %arg8[%c0_69, %c0_70] : memref<512x512xbf16, #tpu.memory_space<vmem>>, vector<512x512xbf16>
    %cst_71 = arith.constant dense<0.000000e+00> : vector<16x512xf32>
    %103 = tpu.matmul %101, %102, %cst_71 {dimension_numbers = #tpu.dot_dimension_numbers<[1], [0], [0], [1], [0, 0, 1, 1], [], []>} : vector<16x512xbf16>, vector<512x512xbf16>, vector<16x512xf32> -> vector<16x512xf32>
    %c0_72 = arith.constant 0 : index
    %c0_73 = arith.constant 0 : index
    %104 = vector.load %arg9[%c0_72, %c0_73] : memref<1x512xf32, #tpu.memory_space<vmem>>, vector<1x512xf32>
    %105 = vector.broadcast %104 : vector<1x512xf32> to vector<16x512xf32>
    %106 = arith.addf %103, %105 : vector<16x512xf32>
    %cst_74 = arith.constant 0.000000e+00 : f32
    %107 = vector.broadcast %cst_74 : f32 to vector<16x512xf32>
    %108 = arith.maximumf %106, %107 : vector<16x512xf32>
    %109 = arith.truncf %108 : vector<16x512xf32> to vector<16x512xbf16>
    %c0_75 = arith.constant 0 : index
    %c0_76 = arith.constant 0 : index
    %110 = vector.load %arg10[%c0_75, %c0_76] : memref<512x3xbf16, #tpu.memory_space<vmem>>, vector<512x3xbf16>
    %cst_77 = arith.constant dense<0.000000e+00> : vector<16x3xf32>
    %111 = tpu.matmul %109, %110, %cst_77 {dimension_numbers = #tpu.dot_dimension_numbers<[1], [0], [0], [1], [0, 0, 1, 1], [], []>} : vector<16x512xbf16>, vector<512x3xbf16>, vector<16x3xf32> -> vector<16x3xf32>
    %c0_78 = arith.constant 0 : index
    %c0_79 = arith.constant 0 : index
    %112 = vector.load %arg11[%c0_78, %c0_79] : memref<1x3xf32, #tpu.memory_space<vmem>>, vector<1x3xf32>
    %113 = vector.broadcast %112 : vector<1x3xf32> to vector<16x3xf32>
    %114 = arith.addf %111, %113 : vector<16x3xf32>
    %115 = arith.addf %114, %3 : vector<16x3xf32>
    %c0_80 = arith.constant 0 : index
    %c3_81 = arith.constant 3 : index
    %c0_82 = arith.constant 0 : index
    %c0_83 = arith.constant 0 : index
    %116 = vector.load %arg12[%c0_80, %c3_81, %c0_82, %c0_83] : memref<1x4x16x3xf32, #tpu.memory_space<vmem>>, vector<1x1x16x3xf32>
    %117 = vector.shape_cast %116 : vector<1x1x16x3xf32> to vector<16x3xf32>
    %118 = vector.shape_cast %115 : vector<16x3xf32> to vector<1x1x16x3xf32>
    tpu.vector_store %arg12[%c0_80, %c3_81, %c0_82, %c0_83], %118 {strides = array<i32>} : memref<1x4x16x3xf32, #tpu.memory_space<vmem>>, vector<1x1x16x3xf32>,
    return
  }
  func.func @transform_0(%arg0: i32, %arg1: i32) -> (i32, i32, i32) {
    %c0_i32 = arith.constant 0 : i32
    %c0_i32_0 = arith.constant 0 : i32
    return %arg0, %arg1, %c0_i32 : i32, i32, i32
  }
  func.func @transform_1(%arg0: i32, %arg1: i32) -> (i32, i32, i32) {
    %c0_i32 = arith.constant 0 : i32
    %c0_i32_0 = arith.constant 0 : i32
    return %arg0, %arg1, %c0_i32 : i32, i32, i32
  }
  func.func @transform_2(%arg0: i32, %arg1: i32) -> (i32, i32) {
    %c0_i32 = arith.constant 0 : i32
    %c0_i32_0 = arith.constant 0 : i32
    %c0_i32_1 = arith.constant 0 : i32
    return %c0_i32, %c0_i32_0 : i32, i32
  }
  func.func @transform_3(%arg0: i32, %arg1: i32) -> (i32, i32) {
    %c0_i32 = arith.constant 0 : i32
    %c0_i32_0 = arith.constant 0 : i32
    %c0_i32_1 = arith.constant 0 : i32
    return %c0_i32, %c0_i32_0 : i32, i32
  }
  func.func @transform_4(%arg0: i32, %arg1: i32) -> (i32, i32) {
    %c0_i32 = arith.constant 0 : i32
    %c0_i32_0 = arith.constant 0 : i32
    %c0_i32_1 = arith.constant 0 : i32
    return %c0_i32, %c0_i32_0 : i32, i32
  }
  func.func @transform_5(%arg0: i32, %arg1: i32) -> (i32, i32) {
    %c0_i32 = arith.constant 0 : i32
    %c0_i32_0 = arith.constant 0 : i32
    %c0_i32_1 = arith.constant 0 : i32
    return %c0_i32, %c0_i32_0 : i32, i32
  }
  func.func @transform_6(%arg0: i32, %arg1: i32) -> (i32, i32) {
    %c0_i32 = arith.constant 0 : i32
    %c0_i32_0 = arith.constant 0 : i32
    %c0_i32_1 = arith.constant 0 : i32
    return %c0_i32, %c0_i32_0 : i32, i32
  }
  func.func @transform_7(%arg0: i32, %arg1: i32) -> (i32, i32) {
    %c0_i32 = arith.constant 0 : i32
    %c0_i32_0 = arith.constant 0 : i32
    %c0_i32_1 = arith.constant 0 : i32
    return %c0_i32, %c0_i32_0 : i32, i32
  }
  func.func @transform_8(%arg0: i32, %arg1: i32) -> (i32, i32) {
    %c0_i32 = arith.constant 0 : i32
    %c0_i32_0 = arith.constant 0 : i32
    %c0_i32_1 = arith.constant 0 : i32
    return %c0_i32, %c0_i32_0 : i32, i32
  }
  func.func @transform_9(%arg0: i32, %arg1: i32) -> (i32, i32) {
    %c0_i32 = arith.constant 0 : i32
    %c0_i32_0 = arith.constant 0 : i32
    %c0_i32_1 = arith.constant 0 : i32
    return %c0_i32, %c0_i32_0 : i32, i32
  }
  func.func @transform_10(%arg0: i32, %arg1: i32) -> (i32, i32, i32, i32) {
    %c0_i32 = arith.constant 0 : i32
    %c0_i32_0 = arith.constant 0 : i32
    %c0_i32_1 = arith.constant 0 : i32
    return %arg0, %c0_i32, %arg1, %c0_i32_0 : i32, i32, i32, i32
  }
}

module attributes {stable_mosaic.version = 11 : i64} {
  func.func @_coarse_kernel(%arg0: i32, %arg1: i32, %arg2: memref<1x16x128xbf16, #tpu.memory_space<vmem>>, %arg3: memref<128x1024xbf16, #tpu.memory_space<vmem>>, %arg4: memref<1x1024xf32, #tpu.memory_space<vmem>>, %arg5: memref<1024x512xbf16, #tpu.memory_space<vmem>>, %arg6: memref<1x512xf32, #tpu.memory_space<vmem>>, %arg7: memref<512x3xbf16, #tpu.memory_space<vmem>>, %arg8: memref<1x3xf32, #tpu.memory_space<vmem>>, %arg9: memref<1x16x3xf32, #tpu.memory_space<vmem>>) attributes {dimension_semantics = [#tpu.dimension_semantics<parallel>, #tpu.dimension_semantics<parallel>], iteration_bounds = array<i64: 2, 1>, scalar_prefetch = 0 : i64, scratch_operands = 0 : i64, tpu.core_type = #tpu.core_type<tc>, window_params = [{transform_indices = @transform_0, window_bounds = array<i64: 1, 16, 128>}, {pipeline_mode = #tpu.pipeline_mode<synchronous>, transform_indices = @transform_1, window_bounds = array<i64: 128, 1024>}, {pipeline_mode = #tpu.pipeline_mode<synchronous>, transform_indices = @transform_2, window_bounds = array<i64: 1, 1024>}, {pipeline_mode = #tpu.pipeline_mode<synchronous>, transform_indices = @transform_3, window_bounds = array<i64: 1024, 512>}, {pipeline_mode = #tpu.pipeline_mode<synchronous>, transform_indices = @transform_4, window_bounds = array<i64: 1, 512>}, {pipeline_mode = #tpu.pipeline_mode<synchronous>, transform_indices = @transform_5, window_bounds = array<i64: 512, 3>}, {pipeline_mode = #tpu.pipeline_mode<synchronous>, transform_indices = @transform_6, window_bounds = array<i64: 1, 3>}, {transform_indices = @transform_7, window_bounds = array<i64: 1, 16, 3>}]} {
    %c0 = arith.constant 0 : index
    %c0_0 = arith.constant 0 : index
    %c0_1 = arith.constant 0 : index
    %0 = vector.load %arg2[%c0, %c0_0, %c0_1] : memref<1x16x128xbf16, #tpu.memory_space<vmem>>, vector<1x16x128xbf16>
    %1 = vector.shape_cast %0 : vector<1x16x128xbf16> to vector<16x128xbf16>
    %c0_2 = arith.constant 0 : index
    %c0_3 = arith.constant 0 : index
    %2 = vector.load %arg3[%c0_2, %c0_3] : memref<128x1024xbf16, #tpu.memory_space<vmem>>, vector<128x1024xbf16>
    %cst = arith.constant dense<0.000000e+00> : vector<16x1024xf32>
    %3 = tpu.matmul %1, %2, %cst {dimension_numbers = #tpu.dot_dimension_numbers<[1], [0], [0], [1], [0, 0, 1, 1], [], []>} : vector<16x128xbf16>, vector<128x1024xbf16>, vector<16x1024xf32> -> vector<16x1024xf32>
    %c0_4 = arith.constant 0 : index
    %c0_5 = arith.constant 0 : index
    %4 = vector.load %arg4[%c0_4, %c0_5] : memref<1x1024xf32, #tpu.memory_space<vmem>>, vector<1x1024xf32>
    %5 = vector.broadcast %4 : vector<1x1024xf32> to vector<16x1024xf32>
    %6 = arith.addf %3, %5 : vector<16x1024xf32>
    %cst_6 = arith.constant 0.000000e+00 : f32
    %7 = vector.broadcast %cst_6 : f32 to vector<16x1024xf32>
    %8 = arith.maximumf %6, %7 : vector<16x1024xf32>
    %9 = arith.truncf %8 : vector<16x1024xf32> to vector<16x1024xbf16>
    %c0_7 = arith.constant 0 : index
    %c0_8 = arith.constant 0 : index
    %10 = vector.load %arg5[%c0_7, %c0_8] : memref<1024x512xbf16, #tpu.memory_space<vmem>>, vector<1024x512xbf16>
    %cst_9 = arith.constant dense<0.000000e+00> : vector<16x512xf32>
    %11 = tpu.matmul %9, %10, %cst_9 {dimension_numbers = #tpu.dot_dimension_numbers<[1], [0], [0], [1], [0, 0, 1, 1], [], []>} : vector<16x1024xbf16>, vector<1024x512xbf16>, vector<16x512xf32> -> vector<16x512xf32>
    %c0_10 = arith.constant 0 : index
    %c0_11 = arith.constant 0 : index
    %12 = vector.load %arg6[%c0_10, %c0_11] : memref<1x512xf32, #tpu.memory_space<vmem>>, vector<1x512xf32>
    %13 = vector.broadcast %12 : vector<1x512xf32> to vector<16x512xf32>
    %14 = arith.addf %11, %13 : vector<16x512xf32>
    %cst_12 = arith.constant 0.000000e+00 : f32
    %15 = vector.broadcast %cst_12 : f32 to vector<16x512xf32>
    %16 = arith.maximumf %14, %15 : vector<16x512xf32>
    %17 = arith.truncf %16 : vector<16x512xf32> to vector<16x512xbf16>
    %c0_13 = arith.constant 0 : index
    %c0_14 = arith.constant 0 : index
    %18 = vector.load %arg7[%c0_13, %c0_14] : memref<512x3xbf16, #tpu.memory_space<vmem>>, vector<512x3xbf16>
    %cst_15 = arith.constant dense<0.000000e+00> : vector<16x3xf32>
    %19 = tpu.matmul %17, %18, %cst_15 {dimension_numbers = #tpu.dot_dimension_numbers<[1], [0], [0], [1], [0, 0, 1, 1], [], []>} : vector<16x512xbf16>, vector<512x3xbf16>, vector<16x3xf32> -> vector<16x3xf32>
    %c0_16 = arith.constant 0 : index
    %c0_17 = arith.constant 0 : index
    %20 = vector.load %arg8[%c0_16, %c0_17] : memref<1x3xf32, #tpu.memory_space<vmem>>, vector<1x3xf32>
    %21 = vector.broadcast %20 : vector<1x3xf32> to vector<16x3xf32>
    %22 = arith.addf %19, %21 : vector<16x3xf32>
    %c0_18 = arith.constant 0 : index
    %c0_19 = arith.constant 0 : index
    %c0_20 = arith.constant 0 : index
    %23 = vector.load %arg9[%c0_18, %c0_19, %c0_20] : memref<1x16x3xf32, #tpu.memory_space<vmem>>, vector<1x16x3xf32>
    %24 = vector.shape_cast %23 : vector<1x16x3xf32> to vector<16x3xf32>
    %25 = vector.shape_cast %22 : vector<16x3xf32> to vector<1x16x3xf32>
    tpu.vector_store %arg9[%c0_18, %c0_19, %c0_20], %25 {strides = array<i32>} : memref<1x16x3xf32, #tpu.memory_space<vmem>>, vector<1x16x3xf32>,
    return
  }
  func.func @transform_0(%arg0: i32, %arg1: i32) -> (i32, i32, i32) {
    %c0_i32 = arith.constant 0 : i32
    %c0_i32_0 = arith.constant 0 : i32
    return %arg0, %arg1, %c0_i32 : i32, i32, i32
  }
  func.func @transform_1(%arg0: i32, %arg1: i32) -> (i32, i32) {
    %c0_i32 = arith.constant 0 : i32
    %c0_i32_0 = arith.constant 0 : i32
    %c0_i32_1 = arith.constant 0 : i32
    return %c0_i32, %c0_i32_0 : i32, i32
  }
  func.func @transform_2(%arg0: i32, %arg1: i32) -> (i32, i32) {
    %c0_i32 = arith.constant 0 : i32
    %c0_i32_0 = arith.constant 0 : i32
    %c0_i32_1 = arith.constant 0 : i32
    return %c0_i32, %c0_i32_0 : i32, i32
  }
  func.func @transform_3(%arg0: i32, %arg1: i32) -> (i32, i32) {
    %c0_i32 = arith.constant 0 : i32
    %c0_i32_0 = arith.constant 0 : i32
    %c0_i32_1 = arith.constant 0 : i32
    return %c0_i32, %c0_i32_0 : i32, i32
  }
  func.func @transform_4(%arg0: i32, %arg1: i32) -> (i32, i32) {
    %c0_i32 = arith.constant 0 : i32
    %c0_i32_0 = arith.constant 0 : i32
    %c0_i32_1 = arith.constant 0 : i32
    return %c0_i32, %c0_i32_0 : i32, i32
  }
  func.func @transform_5(%arg0: i32, %arg1: i32) -> (i32, i32) {
    %c0_i32 = arith.constant 0 : i32
    %c0_i32_0 = arith.constant 0 : i32
    %c0_i32_1 = arith.constant 0 : i32
    return %c0_i32, %c0_i32_0 : i32, i32
  }
  func.func @transform_6(%arg0: i32, %arg1: i32) -> (i32, i32) {
    %c0_i32 = arith.constant 0 : i32
    %c0_i32_0 = arith.constant 0 : i32
    %c0_i32_1 = arith.constant 0 : i32
    return %c0_i32, %c0_i32_0 : i32, i32
  }
  func.func @transform_7(%arg0: i32, %arg1: i32) -> (i32, i32, i32) {
    %c0_i32 = arith.constant 0 : i32
    %c0_i32_0 = arith.constant 0 : i32
    return %arg0, %arg1, %c0_i32 : i32, i32, i32
  }
}

</mosaic_0001>

<bundles_post_ra>
// kernel: pcn_decoder_forward.2
= control target key start
LH: loop header
LB: loop body
LE: loop exit
PB: predicated region body
PF: predicated region fallthrough
CT: control target
= control target key end

     0   :  { %12 = vsyncpa [#allocation3], 0  ;;  %s4649_s0 = inlined_call_operand.vmem [shape: bf16[2,16,128], index: 0, kind: input, shape index: {}]   ;;  %s4650_s1 = inlined_call_operand.hbm [shape: bf16[128,1024], index: 1, kind: input, shape index: {}]   ;;  %s4651_s2 = inlined_call_operand.vmem [shape: f32[1,1024], index: 2, kind: input, shape index: {}]   ;;  %s4652_s3 = inlined_call_operand.hbm [shape: bf16[1024,512], index: 3, kind: input, shape index: {}]   ;;  %s4653_s4 = inlined_call_operand.vmem [shape: f32[1,512], index: 4, kind: input, shape index: {}]   ;;  %s4654_s5 = inlined_call_operand.vmem [shape: bf16[512,3], index: 5, kind: input, shape index: {}]   ;;  %s4655_s6 = inlined_call_operand.vmem [shape: f32[1,3], index: 6, kind: input, shape index: {}]   ;;  %s4656_s7 = inlined_call_operand.vmem [shape: f32[2,16,3], index: 7, kind: output, shape index: {}]  }
   0x1   :  { %13 = vsyncpa [#allocation5], 0  ;;  %s4363_s24 = smov 0   ;;  %s4365_s25 = smov 0  }
   0x2   :  { %s4367_s26 = smov 0  }
   0x3 LB: > { %s3350_s27 = sadd.s32 4294967295, %s4314_s26   ;;  %s31_s28 = sadd.s32 1, %s4310_s25  ;;  %s4314_s26 = sphi %s4367_s26, %s19_s26   ;;  %s4310_s25 = sphi %s4365_s25, %s4661_s25   ;;  %s4306_s24 = sphi %s4363_s24, %s4660_s24  }
   0x4   : > { %p33_p0 = scmp.ge.s32.totalorder %s31_s28, 2  ;;  %p3352_p1 = scmp.ge.s32.totalorder %s4314_s26, 1 }
   0x5   : > { %p218_p2 = scmp.lt.s32.totalorder %s4314_s26, 3  ;;  %p4388_p4 = scmp.eq.s32.totalorder %s3350_s27, 0 }
   0x6   : > { %s4663_s28 = smov (%p33_p0, %s31_s28), 0  ;;  %s4316_s8 = smov [#allocation2]  }
   0x7   : > { %p4384_p3 = pnand %p3352_p1, %p218_p2  ;;  %s230_s9 = sshll.u32 %s4316_s8, 4  ;;  %s231_s9 = int_to_ptr.vmem [resolvable:$true] %s230_s9 }
   0x8   : > { %s4317_s11 = smov [#allocation4]   ;;  %s4243_s13 = scalar_lea.vmem %s231_s9, 8192 }
   0x9   : > { %p3773_p5 = pneg %p4384_p3  ;;  %s246_s12 = sshll.u32 %s4317_s11, 4  ;;  %s247_s12 = int_to_ptr.vmem [resolvable:$true] %s246_s12 }
   0xa   : > { %p4244_p8 = scmp.ne.s32.totalorder %s231_s9, %s4243_s13  ;;  %p4251_p11 = scmp.lt.s32.totalorder %s231_s9, %s231_s9 }
   0xb   : > { %p4396_p6 = pnand %p4388_p4, %p3773_p5  ;;  %p4252_p12 = scmp.lt.s32.totalorder %s4243_s13, %s4243_s13 }
   0xd   : > { %p4234_p7 = pneg %p4396_p6  ;;  %p4253_p13 = por %p4252_p12, %p4251_p11 }
   0xf   : > { %p4246_p9 = pnand %p4244_p8, %p4234_p7 }
  0x11   : > { %p4247_p10 = pneg %p4246_p9 }
  0x13   : > { %p4254_p0 = pnand %p4253_p13, %p4247_p10 }
  0x15   : > { %4257 = shalt.err (!%p4254_p0)
}
  0x16   : > { %s4318_s14 = smov 512   ;;  %s4319_s15 = smov 32  }
  0x17   : > { %3776 = dma.hbm_to_vmem [thread:$0]  (!%p4396_p6), %s4650_s1, 8192, %s231_s9, [#allocation3], %s4318_s14, %s4318_s14, %s4319_s15  }
  0x18   : > { %s4269_s18 = scalar_lea.vmem %s247_s12, 32768  ;;  %p4277_p8 = scmp.lt.s32.totalorder %s247_s12, %s247_s12 }
  0x19   : > { %p4270_p1 = scmp.ne.s32.totalorder %s247_s12, %s4269_s18  ;;  %p4278_p9 = scmp.lt.s32.totalorder %s4269_s18, %s4269_s18 }
  0x1b   : > { %p4272_p2 = pnand %p4270_p1, %p4234_p7  ;;  %p4279_p11 = por %p4278_p9, %p4277_p8 }
  0x1d   : > { %p4273_p5 = pneg %p4272_p2 }
  0x1f   : > { %p4280_p10 = pnand %p4279_p11, %p4273_p5 }
  0x21   : > { %4283 = shalt.err (!%p4280_p10)
}
  0x22   : > { %s4320_s19 = smov 256   ;;  %s4321_s20 = smov 16  }
  0x23   : > { %3779 = dma.hbm_to_vmem [thread:$0]  (!%p4396_p6), %s4652_s3, 32768, %s247_s12, [#allocation5], %s4320_s19, %s4320_s19, %s4321_s20  }
  0x24   : > { %284 = sbr.rel (%p4384_p3) target bundleno = 890 (0x37a), region = 48 }
  0x29   : > { %4297 = dma.done.wait (%p4388_p4), [#allocation3], 8192  }
  0x2a   : > { %4299 = vsyncadd (%p4388_p4), [#allocation3], 4294959104 }
  0x2b   : > { %4301 = dma.done.wait (%p4388_p4), [#allocation5], 32768  }
  0x2c   : > { %4303 = vsyncadd (%p4388_p4), [#allocation5], 4294934528  ;;  %v4322_v0 = vmov 0   ;;  %p329_p3 = scmp.lt.s32.totalorder %s4306_s24, 1  ;;  %v407_v1 = vld [vmem:[#allocation2 + $0x1c0] sm:$0xff]  ;;  %v408_v3 = vld [vmem:[#allocation2 + $0x1c8] sm:$0xff] }
  0x2d   : > { %815 = vmatprep.mubr.bf16.mxu0 %v4322_v0  ;;  %858 = vmatprep.mubr.bf16.mxu1 %v4322_v0  ;;  %v411_v2 = vld [vmem:[#allocation2 + $0x1e0] sm:$0xff]  ;;  %v412_v5 = vld [vmem:[#allocation2 + $0x1e8] sm:$0xff]  ;;  %v409_v62 = vld [vmem:[#allocation2 + $0x1d0] sm:$0xff]  ;;  %vm3238_vm0 = vcmask 23552  }
  0x2e   : > { %v3421_v4 = vcombine.high %v407_v1, %v411_v2  ;;  %v3420_v6 = vcombine.low %v407_v1, %v411_v2  ;;  %v399_v7 = vld [vmem:[#allocation2 + $0x180] sm:$0xff]  ;;  %v3423_v9 = vcombine.high %v408_v3, %v412_v5  ;;  %v3422_v10 = vcombine.low %v408_v3, %v412_v5  ;;  %v400_v12 = vld [vmem:[#allocation2 + $0x188] sm:$0xff]  ;;  %s4665_s24 = smov (!%p329_p3, %s4306_s24), 1  ;;  %v413_v1 = vld [vmem:[#allocation2 + $0x1f0] sm:$0xff] }
  0x2f   : > { %v403_v8 = vld [vmem:[#allocation2 + $0x1a0] sm:$0xff]  ;;  %v404_v13 = vld [vmem:[#allocation2 + $0x1a8] sm:$0xff]  ;;  %s3719_s23 = sshll.u32 %s4665_s24, 3  ;;  %v410_v2 = vld [vmem:[#allocation2 + $0x1d8] sm:$0xff]  ;;  %s3720_s21 = sshll.u32 %s4665_s24, 4 }
  0x30   : > { %v3413_v11 = vcombine.high %v399_v7, %v403_v8  ;;  %v391_v14 = vld [vmem:[#allocation2 + $0x140] sm:$0xff]  ;;  %783 = vmatprep.subr.bf16.mxu0 %v3421_v4  ;;  %v3415_v15 = vcombine.high %v400_v12, %v404_v13  ;;  %v392_v17 = vld [vmem:[#allocation2 + $0x148] sm:$0xff]  ;;  %826 = vmatprep.subr.bf16.mxu1 %v3423_v9  ;;  %v3412_v19 = vcombine.low %v399_v7, %v403_v8  ;;  %s4440_s30 = scalar_lea.vmem %s4649_s0, %s3719_s23  ;;  %v414_v3 = vld [vmem:[#allocation2 + $0x1f8] sm:$0xff]  ;;  %s346_s27 = scalar_lea.vmem %s4656_s7, %s3720_s21 }
  0x31   : > { %v395_v16 = vld [vmem:[#allocation2 + $0x160] sm:$0xff]  ;;  %v396_v18 = vld [vmem:[#allocation2 + $0x168] sm:$0xff]  ;;  %784 = vmatpush1.bf16.msra.mxu0 %v3420_v6  ;;  %827 = vmatpush1.bf16.msra.mxu1 %v3422_v10  ;;  %v3414_v20 = vcombine.low %v400_v12, %v404_v13  ;;  %v3425_v7 = vcombine.high %v409_v62, %v413_v1  ;;  %v401_v8 = vld [vmem:[#allocation2 + $0x190] sm:$0xff]  ;;  %v3427_v9 = vcombine.high %v410_v2, %v414_v3 }
  0x32   : > { %785 = vmatprep.subr.bf16.mxu0 %v3413_v11  ;;  %v3405_v21 = vcombine.high %v391_v14, %v395_v16  ;;  %828 = vmatprep.subr.bf16.mxu1 %v3415_v15  ;;  %v3407_v22 = vcombine.high %v392_v17, %v396_v18  ;;  %v383_v23 = vld [vmem:[#allocation2 + $0x100] sm:$0xff]  ;;  %v384_v25 = vld [vmem:[#allocation2 + $0x108] sm:$0xff]  ;;  %v3404_v27 = vcombine.low %v391_v14, %v395_v16  ;;  %v405_v10 = vld [vmem:[#allocation2 + $0x1b0] sm:$0xff] }
  0x33   : > { %v387_v24 = vld [vmem:[#allocation2 + $0x120] sm:$0xff]  ;;  %v388_v26 = vld [vmem:[#allocation2 + $0x128] sm:$0xff]  ;;  %v3406_v28 = vcombine.low %v392_v17, %v396_v18  ;;  %v402_v11 = vld [vmem:[#allocation2 + $0x198] sm:$0xff]  ;;  %v3424_v13 = vcombine.low %v409_v62, %v413_v1  ;;  %v3426_v14 = vcombine.low %v410_v2, %v414_v3  ;;  %v3417_v15 = vcombine.high %v401_v8, %v405_v10 }
  0x34   : > { %v3397_v29 = vcombine.high %v383_v23, %v387_v24  ;;  %v3399_v30 = vcombine.high %v384_v25, %v388_v26  ;;  %v375_v31 = vld [vmem:[#allocation2 + $0xc0] sm:$0xff]  ;;  %v376_v33 = vld [vmem:[#allocation2 + $0xc8] sm:$0xff]  ;;  %v3396_v35 = vcombine.low %v383_v23, %v387_v24  ;;  %v3398_v36 = vcombine.low %v384_v25, %v388_v26  ;;  %v406_v12 = vld [vmem:[#allocation2 + $0x1b8] sm:$0xff] }
  0x35   : > { %786 = vmatpush1.bf16.msra.mxu0 %v3412_v19  ;;  %829 = vmatpush1.bf16.msra.mxu1 %v3414_v20  ;;  %v379_v32 = vld [vmem:[#allocation2 + $0xe0] sm:$0xff]  ;;  %v380_v34 = vld [vmem:[#allocation2 + $0xe8] sm:$0xff]  ;;  %v393_v16 = vld [vmem:[#allocation2 + $0x150] sm:$0xff]  ;;  %v3419_v17 = vcombine.high %v402_v11, %v406_v12 }
  0x36   : > { %787 = vmatprep.subr.bf16.mxu0 %v3405_v21  ;;  %830 = vmatprep.subr.bf16.mxu1 %v3407_v22  ;;  %v3389_v37 = vcombine.high %v375_v31, %v379_v32  ;;  %v3391_v38 = vcombine.high %v376_v33, %v380_v34  ;;  %v367_v39 = vld [vmem:[#allocation2 + $0x80] sm:$0xff]  ;;  %v368_v41 = vld [vmem:[#allocation2 + $0x88] sm:$0xff]  ;;  %v3388_v43 = vcombine.low %v375_v31, %v379_v32  ;;  %v397_v18 = vld [vmem:[#allocation2 + $0x170] sm:$0xff] }
  0x37   : > { %v371_v40 = vld [vmem:[#allocation2 + $0xa0] sm:$0xff]  ;;  %v372_v42 = vld [vmem:[#allocation2 + $0xa8] sm:$0xff]  ;;  %v3390_v44 = vcombine.low %v376_v33, %v380_v34  ;;  %v394_v19 = vld [vmem:[#allocation2 + $0x158] sm:$0xff]  ;;  %v3416_v21 = vcombine.low %v401_v8, %v405_v10  ;;  %v3418_v22 = vcombine.low %v402_v11, %v406_v12  ;;  %v3409_v23 = vcombine.high %v393_v16, %v397_v18 }
  0x38   : > { %v3381_v45 = vcombine.high %v367_v39, %v371_v40  ;;  %v3383_v46 = vcombine.high %v368_v41, %v372_v42  ;;  %v359_v47 = vld [vmem:[#allocation2 + $0x40] sm:$0xff]  ;;  %v360_v49 = vld [vmem:[#allocation2 + $0x48] sm:$0xff]  ;;  %v3380_v51 = vcombine.low %v367_v39, %v371_v40  ;;  %v3382_v52 = vcombine.low %v368_v41, %v372_v42  ;;  %v398_v20 = vld [vmem:[#allocation2 + $0x178] sm:$0xff] }
  0x39   : > { %788 = vmatpush1.bf16.msra.mxu0 %v3404_v27  ;;  %831 = vmatpush1.bf16.msra.mxu1 %v3406_v28  ;;  %v363_v48 = vld [vmem:[#allocation2 + $0x60] sm:$0xff]  ;;  %v364_v50 = vld [vmem:[#allocation2 + $0x68] sm:$0xff]  ;;  %v385_v24 = vld [vmem:[#allocation2 + $0x110] sm:$0xff]  ;;  %v3411_v25 = vcombine.high %v394_v19, %v398_v20 }
  0x3a   : > { %789 = vmatprep.subr.bf16.mxu0 %v3397_v29  ;;  %832 = vmatprep.subr.bf16.mxu1 %v3399_v30  ;;  %v3373_v53 = vcombine.high %v359_v47, %v363_v48  ;;  %v351_v54 = vld [vmem:[#allocation2] sm:$0xff]  ;;  %v3375_v55 = vcombine.high %v360_v49, %v364_v50  ;;  %v352_v57 = vld [vmem:[#allocation2 + $0x8] sm:$0xff]  ;;  %v3372_v59 = vcombine.low %v359_v47, %v363_v48  ;;  %v389_v26 = vld [vmem:[#allocation2 + $0x130] sm:$0xff] }
  0x3b   : > { %v355_v56 = vld [vmem:[#allocation2 + $0x20] sm:$0xff]  ;;  %v356_v58 = vld [vmem:[#allocation2 + $0x28] sm:$0xff]  ;;  %v3374_v60 = vcombine.low %v360_v49, %v364_v50  ;;  %v386_v27 = vld [vmem:[#allocation2 + $0x118] sm:$0xff]  ;;  %v3408_v29 = vcombine.low %v393_v16, %v397_v18  ;;  %v3410_v30 = vcombine.low %v394_v19, %v398_v20  ;;  %v3401_v31 = vcombine.high %v385_v24, %v389_v26 }
  0x3c   : > { %v3365_v61 = vcombine.high %v351_v54, %v355_v56  ;;  %v3367_v63 = vcombine.high %v352_v57, %v356_v58  ;;  %v3364_v4 = vcombine.low %v351_v54, %v355_v56  ;;  %v3366_v5 = vcombine.low %v352_v57, %v356_v58  ;;  %v4443_v6 = vld [vmem:[%s4440_s30] sm:$0xff]   ;;  %v390_v28 = vld [vmem:[#allocation2 + $0x138] sm:$0xff]  ;;  %v377_v32 = vld [vmem:[#allocation2 + $0xd0] sm:$0xff] }
  0x3d   : > { %790 = vmatpush1.bf16.msra.mxu0 %v3396_v35  ;;  %833 = vmatpush1.bf16.msra.mxu1 %v3398_v36  ;;  %v3403_v33 = vcombine.high %v386_v27, %v390_v28  ;;  %v381_v34 = vld [vmem:[#allocation2 + $0xf0] sm:$0xff]  ;;  %v378_v35 = vld [vmem:[#allocation2 + $0xd8] sm:$0xff] }
  0x3e   : > { %791 = vmatprep.subr.bf16.mxu0 %v3389_v37  ;;  %834 = vmatprep.subr.bf16.mxu1 %v3391_v38  ;;  %v382_v36 = vld [vmem:[#allocation2 + $0xf8] sm:$0xff]  ;;  %v3400_v37 = vcombine.low %v385_v24, %v389_v26  ;;  %v3402_v38 = vcombine.low %v386_v27, %v390_v28  ;;  %v3393_v39 = vcombine.high %v377_v32, %v381_v34  ;;  %v369_v40 = vld [vmem:[#allocation2 + $0x90] sm:$0xff] }
  0x3f   : > { %v373_v41 = vld [vmem:[#allocation2 + $0xb0] sm:$0xff]  ;;  %v370_v42 = vld [vmem:[#allocation2 + $0x98] sm:$0xff] }
  0x40   : > { %v361_v47 = vld [vmem:[#allocation2 + $0x50] sm:$0xff]  ;;  %v362_v50 = vld [vmem:[#allocation2 + $0x58] sm:$0xff] }
  0x41   : > { %792 = vmatpush1.bf16.msra.mxu0 %v3388_v43  ;;  %835 = vmatpush1.bf16.msra.mxu1 %v3390_v44  ;;  %v374_v43 = vld [vmem:[#allocation2 + $0xb8] sm:$0xff]  ;;  %v3392_v44 = vcombine.low %v377_v32, %v381_v34  ;;  %v365_v49 = vld [vmem:[#allocation2 + $0x70] sm:$0xff] }
  0x42   : > { %793 = vmatprep.subr.bf16.mxu0 %v3381_v45  ;;  %836 = vmatprep.subr.bf16.mxu1 %v3383_v46  ;;  %v3394_v45 = vcombine.low %v378_v35, %v382_v36  ;;  %v3385_v46 = vcombine.high %v369_v40, %v373_v41  ;;  %v3387_v48 = vcombine.high %v370_v42, %v374_v43  ;;  %v357_v57 = vld [vmem:[#allocation2 + $0x30] sm:$0xff]  ;;  %v354_v58 = vld [vmem:[#allocation2 + $0x18] sm:$0xff] }
  0x43   : > { %v3377_v54 = vcombine.high %v361_v47, %v365_v49  ;;  %v3818_v1 = vld [vmem:[#allocation4 + $0xe4] ss:$16 sps:$4 sm:$0xff]   ;;  %v3822_v10 = vld [vmem:[#allocation4 + $0xc0] ss:$16 sps:$4 sm:$0xff]  }
  0x44   : > { %v3821_v3 = vld [vmem:[#allocation4 + $0x2e4] ss:$16 sps:$4 sm:$0xff]   ;;  %v3825_v11 = vld [vmem:[#allocation4 + $0x2c0] ss:$16 sps:$4 sm:$0xff]  }
  0x45   : > { %794 = vmatpush1.bf16.msra.mxu0 %v3380_v51  ;;  %837 = vmatpush1.bf16.msra.mxu1 %v3382_v52  ;;  %v366_v51 = vld [vmem:[#allocation2 + $0x78] sm:$0xff]  ;;  %v3384_v52 = vcombine.low %v369_v40, %v373_v41  ;;  %v3824_v8 = vld [vmem:[#allocation4 + $0xc4] ss:$16 sps:$4 sm:$0xff]   ;;  %v3834_v18 = vld [vmem:[#allocation4 + $0x80] ss:$16 sps:$4 sm:$0xff]  }
  0x46   : > { %795 = vmatprep.subr.bf16.mxu0 %v3373_v53  ;;  %838 = vmatprep.subr.bf16.mxu1 %v3375_v55  ;;  %v3386_v53 = vcombine.low %v370_v42, %v374_v43  ;;  %v353_v55 = vld [vmem:[#allocation2 + $0x10] sm:$0xff]  ;;  %v3379_v56 = vcombine.high %v362_v50, %v366_v51 }
  0x47   : > { %v3369_v62 = vcombine.high %v353_v55, %v357_v57  ;;  %v3368_v2 = vcombine.low %v353_v55, %v357_v57  ;;  %v3830_v12 = vld [vmem:[#allocation4 + $0xa4] ss:$16 sps:$4 sm:$0xff]   ;;  %v3837_v19 = vld [vmem:[#allocation4 + $0x280] ss:$16 sps:$4 sm:$0xff]  }
  0x48   : > { %v3836_v16 = vld [vmem:[#allocation4 + $0x84] ss:$16 sps:$4 sm:$0xff]   ;;  %v3849_v26 = vld [vmem:[#allocation4 + $0x240] ss:$16 sps:$4 sm:$0xff]  }
  0x49   : > { %796 = vmatpush1.bf16.msra.mxu0 %v3372_v59  ;;  %839 = vmatpush1.bf16.msra.mxu1 %v3374_v60  ;;  %v358_v59 = vld [vmem:[#allocation2 + $0x38] sm:$0xff]  ;;  %v3376_v60 = vcombine.low %v361_v47, %v365_v49  ;;  %v3842_v20 = vld [vmem:[#allocation4 + $0x64] ss:$16 sps:$4 sm:$0xff]   ;;  %v3861_v34 = vld [vmem:[#allocation4 + $0x200] ss:$16 sps:$4 sm:$0xff]  }
  0x4a   : > { %797 = vmatprep.subr.bf16.mxu0 %v3365_v61  ;;  %840 = vmatprep.subr.bf16.mxu1 %v3367_v63  ;;  %v3378_v61 = vcombine.low %v362_v50, %v366_v51  ;;  %v3371_v63 = vcombine.high %v354_v58, %v358_v59  ;;  %v3851_v24 = vld [vmem:[#allocation4 + $0x244] ss:$16 sps:$4 sm:$0xff]   ;;  %v3873_v41 = vld [vmem:[#allocation4 + $0x3c0] ss:$16 sps:$4 sm:$0xff]  }
  0x4b   : > { %v3854_v27 = vld [vmem:[#allocation4 + $0x24] ss:$16 sps:$4 sm:$0xff]   ;;  %v3885_v49 = vld [vmem:[#allocation4 + $0x380] ss:$16 sps:$4 sm:$0xff]  }
  0x4c   : > { %v3857_v28 = vld [vmem:[#allocation4 + $0x224] ss:$16 sps:$4 sm:$0xff]   ;;  %v3897_v57 = vld [vmem:[#allocation4 + $0x340] ss:$16 sps:$4 sm:$0xff]  }
  0x4d   : > { %798 = vmatpush1.bf16.msra.mxu0 %v3364_v4  ;;  %841 = vmatpush1.bf16.msra.mxu1 %v3366_v5  ;;  %v3370_v4 = vcombine.low %v354_v58, %v358_v59  ;;  %v3816_v5 = vld [vmem:[#allocation4 + $0xe0] ss:$16 sps:$4 sm:$0xff]   ;;  %v3863_v32 = vld [vmem:[#allocation4 + $0x204] ss:$16 sps:$4 sm:$0xff]  }
  0x4e   : > { %869 = vmatprep.subr.bf16.mxu0 %v3425_v7  ;;  %912 = vmatprep.subr.bf16.mxu1 %v3427_v9  ;;  %v3819_v7 = vld [vmem:[#allocation4 + $0x2e0] ss:$16 sps:$4 sm:$0xff]   ;;  %v3827_v9 = vld [vmem:[#allocation4 + $0x2c4] ss:$16 sps:$4 sm:$0xff]  }
  0x4f   : > { %v3875_v40 = vld [vmem:[#allocation4 + $0x3c4] ss:$16 sps:$4 sm:$0xff]  }
  0x50   : > { %816 = vmatmul.mubr.bf16.vlgmr.msra.gmra.mxu0 %v4443_v6  ;;  %859 = vmatmul.mubr.bf16.vlgmr.msra.gmra.mxu1 %v4443_v6  ;;  %v3878_v42 = vld [vmem:[#allocation4 + $0x1a4] ss:$16 sps:$4 sm:$0xff]  }
  0x51   : > { %870 = vmatpush1.bf16.msra.mxu0 %v3424_v13  ;;  %913 = vmatpush1.bf16.msra.mxu1 %v3426_v14  ;;  %v3833_v13 = vld [vmem:[#allocation4 + $0x2a4] ss:$16 sps:$4 sm:$0xff]   ;;  %v3828_v14 = vld [vmem:[#allocation4 + $0xa0] ss:$16 sps:$4 sm:$0xff]  }
  0x52   : > { %871 = vmatprep.subr.bf16.mxu0 %v3417_v15  ;;  %914 = vmatprep.subr.bf16.mxu1 %v3419_v17  ;;  %v3831_v15 = vld [vmem:[#allocation4 + $0x2a0] ss:$16 sps:$4 sm:$0xff]   ;;  %v3839_v17 = vld [vmem:[#allocation4 + $0x284] ss:$16 sps:$4 sm:$0xff]  }
  0x53   : > { %901 = vmatprep.mubr.bf16.mxu0 %v4322_v0  ;;  %944 = vmatprep.mubr.bf16.mxu1 %v4322_v0  ;;  %v3395_v0 = vcombine.high %v378_v35, %v382_v36  ;;  %v3866_v35 = vld [vmem:[#allocation4 + $0x1e4] ss:$16 sps:$4 sm:$0xff]  }
  0x54   : > { %v3869_v36 = vld [vmem:[#allocation4 + $0x3e4] ss:$16 sps:$4 sm:$0xff]  }
  0x55   : > { %872 = vmatpush1.bf16.msra.mxu0 %v3416_v21  ;;  %915 = vmatpush1.bf16.msra.mxu1 %v3418_v22  ;;  %v3845_v21 = vld [vmem:[#allocation4 + $0x264] ss:$16 sps:$4 sm:$0xff]   ;;  %v3843_v22 = vld [vmem:[#allocation4 + $0x260] ss:$16 sps:$4 sm:$0xff]  }
  0x56   : > { %873 = vmatprep.subr.bf16.mxu0 %v3409_v23  ;;  %916 = vmatprep.subr.bf16.mxu1 %v3411_v25  ;;  %v3848_v23 = vld [vmem:[#allocation4 + $0x44] ss:$16 sps:$4 sm:$0xff]   ;;  %v3846_v25 = vld [vmem:[#allocation4 + $0x40] ss:$16 sps:$4 sm:$0xff]  }
  0x57   : > { %v3881_v43 = vld [vmem:[#allocation4 + $0x3a4] ss:$16 sps:$4 sm:$0xff]  }
  0x58   : > { %v3887_v47 = vld [vmem:[#allocation4 + $0x384] ss:$16 sps:$4 sm:$0xff]  }
  0x59   : > { %874 = vmatpush1.bf16.msra.mxu0 %v3408_v29  ;;  %917 = vmatpush1.bf16.msra.mxu1 %v3410_v30  ;;  %v3852_v29 = vld [vmem:[#allocation4 + $0x20] ss:$16 sps:$4 sm:$0xff]   ;;  %v3890_v50 = vld [vmem:[#allocation4 + $0x164] ss:$16 sps:$4 sm:$0xff]  }
  0x5a   : > { %875 = vmatprep.subr.bf16.mxu0 %v3401_v31  ;;  %918 = vmatprep.subr.bf16.mxu1 %v3403_v33  ;;  %v3855_v30 = vld [vmem:[#allocation4 + $0x220] ss:$16 sps:$4 sm:$0xff]   ;;  %v3860_v31 = vld [vmem:[#allocation4 + $0x4] ss:$16 sps:$4 sm:$0xff]  }
  0x5b   : > { %v3858_v33 = vld [vmem:[#allocation4] ss:$16 sps:$4 sm:$0xff]   ;;  %v3893_v51 = vld [vmem:[#allocation4 + $0x364] ss:$16 sps:$4 sm:$0xff]  }
  0x5c   : > { %v3899_v55 = vld [vmem:[#allocation4 + $0x344] ss:$16 sps:$4 sm:$0xff]  }
  0x5d   : > { %876 = vmatpush1.bf16.msra.mxu0 %v3400_v37  ;;  %919 = vmatpush1.bf16.msra.mxu1 %v3402_v38  ;;  %v3864_v37 = vld [vmem:[#allocation4 + $0x1e0] ss:$16 sps:$4 sm:$0xff]   ;;  %v3902_v58 = vld [vmem:[#allocation4 + $0x124] ss:$16 sps:$4 sm:$0xff]  }
  0x5e   : > { %877 = vmatprep.subr.bf16.mxu0 %v3393_v39  ;;  %920 = vmatprep.subr.bf16.mxu1 %v3395_v0  ;;  %v3867_v38 = vld [vmem:[#allocation4 + $0x3e0] ss:$16 sps:$4 sm:$0xff]   ;;  %v3872_v39 = vld [vmem:[#allocation4 + $0x1c4] ss:$16 sps:$4 sm:$0xff]  }
  0x5f   : > { %v3870_v0 = vld [vmem:[#allocation4 + $0x1c0] ss:$16 sps:$4 sm:$0xff]   ;;  %v3905_v59 = vld [vmem:[#allocation4 + $0x324] ss:$16 sps:$4 sm:$0xff]  }
  0x61   : > { %878 = vmatpush1.bf16.msra.mxu0 %v3392_v44  ;;  %921 = vmatpush1.bf16.msra.mxu1 %v3394_v45  ;;  %v3876_v44 = vld [vmem:[#allocation4 + $0x1a0] ss:$16 sps:$4 sm:$0xff]  }
  0x62   : > { %879 = vmatprep.subr.bf16.mxu0 %v3385_v46  ;;  %922 = vmatprep.subr.bf16.mxu1 %v3387_v48  ;;  %v3879_v45 = vld [vmem:[#allocation4 + $0x3a0] ss:$16 sps:$4 sm:$0xff]   ;;  %v3884_v46 = vld [vmem:[#allocation4 + $0x184] ss:$16 sps:$4 sm:$0xff]  }
  0x63   : > { %v3882_v48 = vld [vmem:[#allocation4 + $0x180] ss:$16 sps:$4 sm:$0xff]  }
  0x65   : > { %880 = vmatpush1.bf16.msra.mxu0 %v3384_v52  ;;  %923 = vmatpush1.bf16.msra.mxu1 %v3386_v53  ;;  %v3888_v52 = vld [vmem:[#allocation4 + $0x160] ss:$16 sps:$4 sm:$0xff]  }
  0x66   : > { %881 = vmatprep.subr.bf16.mxu0 %v3377_v54  ;;  %924 = vmatprep.subr.bf16.mxu1 %v3379_v56  ;;  %v3891_v53 = vld [vmem:[#allocation4 + $0x360] ss:$16 sps:$4 sm:$0xff]   ;;  %v3896_v54 = vld [vmem:[#allocation4 + $0x144] ss:$16 sps:$4 sm:$0xff]  }
  0x67   : > { %v3894_v56 = vld [vmem:[#allocation4 + $0x140] ss:$16 sps:$4 sm:$0xff]  }
  0x69   : > { %882 = vmatpush1.bf16.msra.mxu0 %v3376_v60  ;;  %925 = vmatpush1.bf16.msra.mxu1 %v3378_v61  ;;  %v3900_v60 = vld [vmem:[#allocation4 + $0x120] ss:$16 sps:$4 sm:$0xff]  }
  0x6a   : > { %883 = vmatprep.subr.bf16.mxu0 %v3369_v62  ;;  %926 = vmatprep.subr.bf16.mxu1 %v3371_v63  ;;  %v3903_v61 = vld [vmem:[#allocation4 + $0x320] ss:$16 sps:$4 sm:$0xff]   ;;  %v3908_v62 = vld [vmem:[#allocation4 + $0x104] ss:$16 sps:$4 sm:$0xff]  }
  0x6b   : > { %v3911_v63 = vld [vmem:[#allocation4 + $0x304] ss:$16 sps:$4 sm:$0xff]  }
  0x6d   : > { %884 = vmatpush1.bf16.msra.mxu0 %v3368_v2  ;;  %927 = vmatpush1.bf16.msra.mxu1 %v3370_v4  ;;  %v3909_v2 = vld [vmem:[#allocation4 + $0x300] ss:$16 sps:$4 sm:$0xff]   ;;  %v3917_v4 = vld [vmem:[#allocation4 + $0x6e4] ss:$16 sps:$4 sm:$0xff]  }
  0x6e   : > { %2537 = vmatprep.subr.bf16.mxu0 %v3818_v1  ;;  %2580 = vmatprep.subr.bf16.mxu1 %v3821_v3  ;;  %v3906_v1 = vld [vmem:[#allocation4 + $0x100] ss:$16 sps:$4 sm:$0xff]   ;;  %v3914_v3 = vld [vmem:[#allocation4 + $0x4e4] ss:$16 sps:$4 sm:$0xff]  }
  0x70   : > { %902 = vmatmul.mubr.bf16.vlgmr.msra.gmra.mxu0 %v4443_v6  ;;  %945 = vmatmul.mubr.bf16.vlgmr.msra.gmra.mxu1 %v4443_v6  ;;  %v3840_v6 = vld [vmem:[#allocation4 + $0x60] ss:$16 sps:$4 sm:$0xff]  }
  0x71   : > { %2538 = vmatpush1.bf16.msra.mxu0 %v3816_v5  ;;  %2581 = vmatpush1.bf16.msra.mxu1 %v3819_v7  ;;  %v417_v5 = vlaneseq }
  0x72   : > { %2539 = vmatprep.subr.bf16.mxu0 %v3824_v8  ;;  %2582 = vmatprep.subr.bf16.mxu1 %v3827_v9 }
  0x73   : > { %v4451_v7 = vshrl.u32 %v417_v5, 7  ;;  %v3950_v5 = vld [vmem:[#allocation4 + $0x424] ss:$16 sps:$4 sm:$0xff]  }
  0x75   : > { %2540 = vmatpush1.bf16.msra.mxu0 %v3822_v10  ;;  %2583 = vmatpush1.bf16.msra.mxu1 %v3825_v11  ;;  %v423_v8 = vsub.s32 1, %v4451_v7  ;;  %v419_v9 = vsub.s32 0, %v4451_v7  ;;  %v431_v10 = vsub.s32 3, %v4451_v7  ;;  %v4459_v11 = vld [vmem:[%s4651_s2] sm:$0xff] }
  0x76   : > { %2541 = vmatprep.subr.bf16.mxu0 %v3830_v12  ;;  %2584 = vmatprep.subr.bf16.mxu1 %v3833_v13  ;;  %v427_v12 = vsub.s32 2, %v4451_v7 }
  0x79   : > { %2542 = vmatpush1.bf16.msra.mxu0 %v3828_v14  ;;  %2585 = vmatpush1.bf16.msra.mxu1 %v3831_v15  ;;  %v424_v15 = vrot.slane %v4459_v11, %v423_v8 }
  0x7a   : > { %2543 = vmatprep.subr.bf16.mxu0 %v3836_v16  ;;  %2586 = vmatprep.subr.bf16.mxu1 %v3839_v17  ;;  %v420_v16 = vrot.slane %v4459_v11, %v419_v9 }
  0x7d   : > { %2544 = vmatpush1.bf16.msra.mxu0 %v3834_v18  ;;  %2587 = vmatpush1.bf16.msra.mxu1 %v3837_v19  ;;  %v432_v18 = vrot.slane %v4459_v11, %v431_v10  ;;  %v428_v19 = vrot.slane %v4459_v11, %v427_v12 }
  0x7e   : > { %2545 = vmatprep.subr.bf16.mxu0 %v3842_v20  ;;  %2588 = vmatprep.subr.bf16.mxu1 %v3845_v21 }
  0x81   : > { %2546 = vmatpush1.bf16.msra.mxu0 %v3840_v6  ;;  %2589 = vmatpush1.bf16.msra.mxu1 %v3843_v22 }
  0x82   : > { %2547 = vmatprep.subr.bf16.mxu0 %v3848_v23  ;;  %2590 = vmatprep.subr.bf16.mxu1 %v3851_v24 }
  0x85   : > { %2548 = vmatpush1.bf16.msra.mxu0 %v3846_v25  ;;  %2591 = vmatpush1.bf16.msra.mxu1 %v3849_v26 }
  0x86   : > { %2549 = vmatprep.subr.bf16.mxu0 %v3854_v27  ;;  %2592 = vmatprep.subr.bf16.mxu1 %v3857_v28 }
  0x89   : > { %2550 = vmatpush1.bf16.msra.mxu0 %v3852_v29  ;;  %2593 = vmatpush1.bf16.msra.mxu1 %v3855_v30 }
  0x8a   : > { %2551 = vmatprep.subr.bf16.mxu0 %v3860_v31  ;;  %2594 = vmatprep.subr.bf16.mxu1 %v3863_v32 }
  0x8d   : > { %2552 = vmatpush1.bf16.msra.mxu0 %v3858_v33  ;;  %2595 = vmatpush1.bf16.msra.mxu1 %v3861_v34 }
  0x8e   : > { %2553 = vmatprep.subr.bf16.mxu0 %v3866_v35  ;;  %2596 = vmatprep.subr.bf16.mxu1 %v3869_v36 }
  0x91   : > { %2554 = vmatpush2.bf16.msra.mxu0 %v3864_v37  ;;  %2597 = vmatpush2.bf16.msra.mxu1 %v3867_v38 }
  0x92   : > { %2555 = vmatprep.subr.bf16.mxu0 %v3872_v39  ;;  %2598 = vmatprep.subr.bf16.mxu1 %v3875_v40 }
  0x95   : > { %2556 = vmatpush2.bf16.msra.mxu0 %v3870_v0  ;;  %2599 = vmatpush2.bf16.msra.mxu1 %v3873_v41  ;;  %v3912_v0 = vld [vmem:[#allocation4 + $0x4e0] ss:$16 sps:$4 sm:$0xff]  }
  0x96   : > { %2557 = vmatprep.subr.bf16.mxu0 %v3878_v42  ;;  %2600 = vmatprep.subr.bf16.mxu1 %v3881_v43  ;;  %v3915_v43 = vld [vmem:[#allocation4 + $0x6e0] ss:$16 sps:$4 sm:$0xff]  }
  0x99   : > { %2558 = vmatpush2.bf16.msra.mxu0 %v3876_v44  ;;  %2601 = vmatpush2.bf16.msra.mxu1 %v3879_v45  ;;  %v3920_v44 = vld [vmem:[#allocation4 + $0x4c4] ss:$16 sps:$4 sm:$0xff]  }
  0x9a   : > { %2559 = vmatprep.subr.bf16.mxu0 %v3884_v46  ;;  %2602 = vmatprep.subr.bf16.mxu1 %v3887_v47  ;;  %v3923_v46 = vld [vmem:[#allocation4 + $0x6c4] ss:$16 sps:$4 sm:$0xff]   ;;  %v3918_v47 = vld [vmem:[#allocation4 + $0x4c0] ss:$16 sps:$4 sm:$0xff]  }
  0x9d   : > { %2560 = vmatpush2.bf16.msra.mxu0 %v3882_v48  ;;  %2603 = vmatpush2.bf16.msra.mxu1 %v3885_v49  ;;  %v3921_v48 = vld [vmem:[#allocation4 + $0x6c0] ss:$16 sps:$4 sm:$0xff]   ;;  %v3926_v49 = vld [vmem:[#allocation4 + $0x4a4] ss:$16 sps:$4 sm:$0xff]  }
  0x9e   : > { %2561 = vmatprep.subr.bf16.mxu0 %v3890_v50  ;;  %2604 = vmatprep.subr.bf16.mxu1 %v3893_v51  ;;  %v3929_v50 = vld [vmem:[#allocation4 + $0x6a4] ss:$16 sps:$4 sm:$0xff]   ;;  %v3924_v51 = vld [vmem:[#allocation4 + $0x4a0] ss:$16 sps:$4 sm:$0xff]  }
  0xa1   : > { %2562 = vmatpush2.bf16.msra.mxu0 %v3888_v52  ;;  %2605 = vmatpush2.bf16.msra.mxu1 %v3891_v53  ;;  %v3927_v52 = vld [vmem:[#allocation4 + $0x6a0] ss:$16 sps:$4 sm:$0xff]   ;;  %v3932_v53 = vld [vmem:[#allocation4 + $0x484] ss:$16 sps:$4 sm:$0xff]  }
  0xa2   : > { %2563 = vmatprep.subr.bf16.mxu0 %v3896_v54  ;;  %2606 = vmatprep.subr.bf16.mxu1 %v3899_v55  ;;  %v3935_v54 = vld [vmem:[#allocation4 + $0x684] ss:$16 sps:$4 sm:$0xff]   ;;  %v3930_v55 = vld [vmem:[#allocation4 + $0x480] ss:$16 sps:$4 sm:$0xff]  }
  0xa5   : > { %2564 = vmatpush2.bf16.msra.mxu0 %v3894_v56  ;;  %2607 = vmatpush2.bf16.msra.mxu1 %v3897_v57  ;;  %v3933_v56 = vld [vmem:[#allocation4 + $0x680] ss:$16 sps:$4 sm:$0xff]   ;;  %v3938_v57 = vld [vmem:[#allocation4 + $0x464] ss:$16 sps:$4 sm:$0xff]  }
  0xa6   : > { %2565 = vmatprep.subr.bf16.mxu0 %v3902_v58  ;;  %2608 = vmatprep.subr.bf16.mxu1 %v3905_v59  ;;  %v3941_v58 = vld [vmem:[#allocation4 + $0x664] ss:$16 sps:$4 sm:$0xff]   ;;  %v3936_v59 = vld [vmem:[#allocation4 + $0x460] ss:$16 sps:$4 sm:$0xff]  }
  0xa9   : > { %2566 = vmatpush2.bf16.msra.mxu0 %v3900_v60  ;;  %2609 = vmatpush2.bf16.msra.mxu1 %v3903_v61  ;;  %v439_v60 = vsub.s32 5, %v4451_v7  ;;  %v3939_v61 = vld [vmem:[#allocation4 + $0x660] ss:$16 sps:$4 sm:$0xff]  }
  0xaa   : > { %2567 = vmatprep.subr.bf16.mxu0 %v3908_v62  ;;  %2610 = vmatprep.subr.bf16.mxu1 %v3911_v63  ;;  %v3944_v62 = vld [vmem:[#allocation4 + $0x444] ss:$16 sps:$4 sm:$0xff]   ;;  %v447_v63 = vsub.s32 7, %v4451_v7 }
  0xad   : > { %2568 = vmatpush2.bf16.msra.mxu0 %v3906_v1  ;;  %2611 = vmatpush2.bf16.msra.mxu1 %v3909_v2  ;;  %v3947_v1 = vld [vmem:[#allocation4 + $0x644] ss:$16 sps:$4 sm:$0xff]   ;;  %v3942_v2 = vld [vmem:[#allocation4 + $0x440] ss:$16 sps:$4 sm:$0xff]  }
  0xae   : > { %2623 = vmatprep.subr.bf16.mxu0 %v3914_v3  ;;  %2666 = vmatprep.subr.bf16.mxu1 %v3917_v4  ;;  %v440_v3 = vrot.slane %v4459_v11, %v439_v60  ;;  %v3945_v4 = vld [vmem:[#allocation4 + $0x640] ss:$16 sps:$4 sm:$0xff]   ;;  %v435_v60 = vsub.s32 4, %v4451_v7 }
 0x110   : > { %v817_v13 = vpop.f32.mrf.mxu0  ;;  %v860_v14 = vpop.f32.mrf.mxu1 }
 0x111   : > { %v818_v24 = vadd.f32 %v817_v13, %v420_v16  ;;  %v861_v28 = vadd.f32 %v860_v14, %v428_v19  ;;  %v448_v14 = vrot.slane %v4459_v11, %v447_v63  ;;  %v443_v63 = vsub.s32 6, %v4451_v7 }
 0x112   : > { %v819_v17 = vpop.f32.mrf.mxu0  ;;  %v862_v20 = vpop.f32.mrf.mxu1 }
 0x113   : > { %v820_v6 = vadd.f32 %v819_v17, %v424_v15  ;;  %v863_v25 = vadd.f32 %v862_v20, %v432_v18  ;;  %v955_v36 = vmax.f32 %v818_v24, 0.0  ;;  %v957_v39 = vmax.f32 %v861_v28, 0.0  ;;  %v3959_v24 = vld [vmem:[#allocation4 + $0x604] ss:$16 sps:$4 sm:$0xff]  }
 0x114   : > { %v821_v21 = vpop.f32.mrf.mxu0  ;;  %v864_v23 = vpop.f32.mrf.mxu1 }
 0x115   : > { %v822_v22 = vadd.f32 %v821_v21, %v420_v16  ;;  %v865_v26 = vadd.f32 %v864_v23, %v428_v19  ;;  %v956_v33 = vmax.f32 %v820_v6, 0.0  ;;  %v958_v37 = vmax.f32 %v863_v25, 0.0  ;;  %v3951_v21 = vld [vmem:[#allocation4 + $0x620] ss:$16 sps:$4 sm:$0xff]   ;;  %v3956_v6 = vld [vmem:[#allocation4 + $0x404] ss:$16 sps:$4 sm:$0xff]  }
 0x116   : > { %v823_v27 = vpop.f32.mrf.mxu0  ;;  %v866_v30 = vpop.f32.mrf.mxu1 }
 0x117   : > { %v824_v29 = vadd.f32 %v823_v27, %v424_v15  ;;  %v963_v31 = vmax.f32 %v822_v22, 0.0  ;;  %v867_v32 = vadd.f32 %v866_v30, %v432_v18  ;;  %v965_v34 = vmax.f32 %v865_v26, 0.0  ;;  %v3953_v15 = vld [vmem:[#allocation4 + $0x624] ss:$16 sps:$4 sm:$0xff]   ;;  %v3948_v18 = vld [vmem:[#allocation4 + $0x420] ss:$16 sps:$4 sm:$0xff]  }
 0x118   : > { %v3954_v27 = vld [vmem:[#allocation4 + $0x400] ss:$16 sps:$4 sm:$0xff]  }
 0x119   : > { %v964_v35 = vmax.f32 %v824_v29, 0.0  ;;  %v966_v38 = vmax.f32 %v867_v32, 0.0  ;;  %v4476_v41 = vpack.c.bf16 %v963_v31, %v955_v36  ;;  %v4480_v45 = vpack.c.bf16 %v965_v34, %v957_v39  ;;  %v3957_v31 = vld [vmem:[#allocation4 + $0x600] ss:$16 sps:$4 sm:$0xff]   ;;  %v3962_v32 = vld [vmem:[#allocation4 + $0x5e4] ss:$16 sps:$4 sm:$0xff]  }
 0x11b   : > { %v4474_v40 = vpack.c.bf16 %v964_v35, %v956_v33  ;;  %v4478_v42 = vpack.c.bf16 %v966_v38, %v958_v37  ;;  %v3965_v35 = vld [vmem:[#allocation4 + $0x7e4] ss:$16 sps:$4 sm:$0xff]   ;;  %v3960_v38 = vld [vmem:[#allocation4 + $0x5e0] ss:$16 sps:$4 sm:$0xff]  }
 0x11d   : > { %2569 = vmatprep.mubr.bf16.mxu0 %v4474_v40  ;;  %2612 = vmatprep.mubr.bf16.mxu1 %v4478_v42 }
 0x11e   : > { %2570 = vmatmul.mubr.bf16.vlgmr.msra.gmra.mxu0 %v4476_v41  ;;  %2613 = vmatmul.mubr.bf16.vlgmr.msra.gmra.mxu1 %v4480_v45 }
 0x11f   : > { %2624 = vmatpush1.bf16.msra.mxu0 %v3912_v0  ;;  %2667 = vmatpush1.bf16.msra.mxu1 %v3915_v43  ;;  %v3963_v0 = vld [vmem:[#allocation4 + $0x7e0] ss:$16 sps:$4 sm:$0xff]   ;;  %v3968_v43 = vld [vmem:[#allocation4 + $0x5c4] ss:$16 sps:$4 sm:$0xff]  }
 0x120   : > { %2625 = vmatprep.subr.bf16.mxu0 %v3920_v44  ;;  %2668 = vmatprep.subr.bf16.mxu1 %v3923_v46  ;;  %v3971_v46 = vld [vmem:[#allocation4 + $0x7c4] ss:$16 sps:$4 sm:$0xff]  }
 0x123   : > { %2626 = vmatpush1.bf16.msra.mxu0 %v3918_v47  ;;  %2669 = vmatpush1.bf16.msra.mxu1 %v3921_v48  ;;  %v3966_v47 = vld [vmem:[#allocation4 + $0x5c0] ss:$16 sps:$4 sm:$0xff]  }
 0x124   : > { %2627 = vmatprep.subr.bf16.mxu0 %v3926_v49  ;;  %2670 = vmatprep.subr.bf16.mxu1 %v3929_v50  ;;  %v3969_v48 = vld [vmem:[#allocation4 + $0x7c0] ss:$16 sps:$4 sm:$0xff]   ;;  %v3974_v49 = vld [vmem:[#allocation4 + $0x5a4] ss:$16 sps:$4 sm:$0xff]  }
 0x125   : > { %v3977_v50 = vld [vmem:[#allocation4 + $0x7a4] ss:$16 sps:$4 sm:$0xff]  }
 0x127   : > { %2628 = vmatpush1.bf16.msra.mxu0 %v3924_v51  ;;  %2671 = vmatpush1.bf16.msra.mxu1 %v3927_v52  ;;  %v3972_v51 = vld [vmem:[#allocation4 + $0x5a0] ss:$16 sps:$4 sm:$0xff]  }
 0x128   : > { %2629 = vmatprep.subr.bf16.mxu0 %v3932_v53  ;;  %2672 = vmatprep.subr.bf16.mxu1 %v3935_v54  ;;  %v3975_v52 = vld [vmem:[#allocation4 + $0x7a0] ss:$16 sps:$4 sm:$0xff]   ;;  %v3980_v53 = vld [vmem:[#allocation4 + $0x584] ss:$16 sps:$4 sm:$0xff]  }
 0x129   : > { %v3983_v54 = vld [vmem:[#allocation4 + $0x784] ss:$16 sps:$4 sm:$0xff]  }
 0x12b   : > { %2630 = vmatpush1.bf16.msra.mxu0 %v3930_v55  ;;  %2673 = vmatpush1.bf16.msra.mxu1 %v3933_v56  ;;  %v3978_v55 = vld [vmem:[#allocation4 + $0x580] ss:$16 sps:$4 sm:$0xff]  }
 0x12c   : > { %2631 = vmatprep.subr.bf16.mxu0 %v3938_v57  ;;  %2674 = vmatprep.subr.bf16.mxu1 %v3941_v58  ;;  %v3981_v56 = vld [vmem:[#allocation4 + $0x780] ss:$16 sps:$4 sm:$0xff]   ;;  %v3986_v57 = vld [vmem:[#allocation4 + $0x564] ss:$16 sps:$4 sm:$0xff]  }
 0x12d   : > { %v3989_v58 = vld [vmem:[#allocation4 + $0x764] ss:$16 sps:$4 sm:$0xff]  }
 0x12f   : > { %2632 = vmatpush1.bf16.msra.mxu0 %v3936_v59  ;;  %2675 = vmatpush1.bf16.msra.mxu1 %v3939_v61  ;;  %v3984_v59 = vld [vmem:[#allocation4 + $0x560] ss:$16 sps:$4 sm:$0xff]  }
 0x130   : > { %2633 = vmatprep.subr.bf16.mxu0 %v3944_v62  ;;  %v4489_v13 = vpop.f32.mrf.mxu0  ;;  %2676 = vmatprep.subr.bf16.mxu1 %v3947_v1  ;;  %v4492_v16 = vpop.f32.mrf.mxu1  ;;  %v3987_v61 = vld [vmem:[#allocation4 + $0x760] ss:$16 sps:$4 sm:$0xff]   ;;  %v3992_v62 = vld [vmem:[#allocation4 + $0x544] ss:$16 sps:$4 sm:$0xff]  }
 0x131   : > { %v3995_v1 = vld [vmem:[#allocation4 + $0x744] ss:$16 sps:$4 sm:$0xff]  }
 0x132   : > { %v905_v17 = vpop.f32.mrf.mxu0  ;;  %v948_v20 = vpop.f32.mrf.mxu1 }
 0x133   : > { %2634 = vmatpush1.bf16.msra.mxu0 %v3942_v2  ;;  %v906_v19 = vadd.f32 %v905_v17, %v440_v3  ;;  %2677 = vmatpush1.bf16.msra.mxu1 %v3945_v4  ;;  %v949_v23 = vadd.f32 %v948_v20, %v448_v14  ;;  %v3990_v2 = vld [vmem:[#allocation4 + $0x540] ss:$16 sps:$4 sm:$0xff]  }
 0x134   : > { %2635 = vmatprep.subr.bf16.mxu0 %v3950_v5  ;;  %v4494_v22 = vpop.f32.mrf.mxu0  ;;  %2678 = vmatprep.subr.bf16.mxu1 %v3953_v15  ;;  %v4496_v25 = vpop.f32.mrf.mxu1  ;;  %v3993_v4 = vld [vmem:[#allocation4 + $0x740] ss:$16 sps:$4 sm:$0xff]   ;;  %v3998_v5 = vld [vmem:[#allocation4 + $0x524] ss:$16 sps:$4 sm:$0xff]  }
 0x135   : > { %v960_v28 = vmax.f32 %v906_v19, 0.0  ;;  %v962_v33 = vmax.f32 %v949_v23, 0.0  ;;  %v4001_v15 = vld [vmem:[#allocation4 + $0x724] ss:$16 sps:$4 sm:$0xff]   ;;  %v3996_v17 = vld [vmem:[#allocation4 + $0x520] ss:$16 sps:$4 sm:$0xff]  }
 0x136   : > { %v909_v26 = vpop.f32.mrf.mxu0  ;;  %v952_v30 = vpop.f32.mrf.mxu1  ;;  %v3999_v20 = vld [vmem:[#allocation4 + $0x720] ss:$16 sps:$4 sm:$0xff]  }
 0x137   : > { %2636 = vmatpush1.bf16.msra.mxu0 %v3948_v18  ;;  %v910_v29 = vadd.f32 %v909_v26, %v440_v3  ;;  %2679 = vmatpush1.bf16.msra.mxu1 %v3951_v21  ;;  %v953_v34 = vadd.f32 %v952_v30, %v448_v14  ;;  %v436_v3 = vrot.slane %v4459_v11, %v435_v60  ;;  %v4004_v21 = vld [vmem:[#allocation4 + $0x504] ss:$16 sps:$4 sm:$0xff]   ;;  %v4013_v30 = vld [vmem:[#allocation4 + $0x2ec] ss:$16 sps:$4 sm:$0xff]  }
 0x138   : > { %2637 = vmatprep.subr.bf16.mxu0 %v3956_v6  ;;  %2680 = vmatprep.subr.bf16.mxu1 %v3959_v24  ;;  %v444_v14 = vrot.slane %v4459_v11, %v443_v63  ;;  %v4007_v24 = vld [vmem:[#allocation4 + $0x704] ss:$16 sps:$4 sm:$0xff]   ;;  %v4002_v11 = vld [vmem:[#allocation4 + $0x500] ss:$16 sps:$4 sm:$0xff]   ;;  %v4052_v60 = vld [vmem:[#allocation4 + $0xc] ss:$16 sps:$4 sm:$0xff]  }
 0x139   : > { %v968_v36 = vmax.f32 %v910_v29, 0.0  ;;  %v970_v37 = vmax.f32 %v953_v34, 0.0  ;;  %v904_v18 = vadd.f32 %v4489_v13, %v436_v3  ;;  %v908_v19 = vadd.f32 %v4494_v22, %v436_v3  ;;  %v4010_v13 = vld [vmem:[#allocation4 + $0xec] ss:$16 sps:$4 sm:$0xff]   ;;  %v4053_v63 = vld [vmem:[#allocation4 + $0x208] ss:$16 sps:$4 sm:$0xff]  }
 0x13a   : > { %v947_v6 = vadd.f32 %v4492_v16, %v444_v14  ;;  %v951_v23 = vadd.f32 %v4496_v25, %v444_v14  ;;  %v4011_v16 = vld [vmem:[#allocation4 + $0x2e8] ss:$16 sps:$4 sm:$0xff]   ;;  %v4019_v34 = vld [vmem:[#allocation4 + $0x2cc] ss:$16 sps:$4 sm:$0xff]  }
 0x13b   : > { %2638 = vmatpush1.bf16.msra.mxu0 %v3954_v27  ;;  %v4498_v39 = vpack.c.bf16 %v968_v36, %v960_v28  ;;  %2681 = vmatpush1.bf16.msra.mxu1 %v3957_v31  ;;  %v4500_v44 = vpack.c.bf16 %v970_v37, %v962_v33  ;;  %v959_v26 = vmax.f32 %v904_v18, 0.0  ;;  %v967_v27 = vmax.f32 %v908_v19, 0.0  ;;  %v4005_v28 = vld [vmem:[#allocation4 + $0x700] ss:$16 sps:$4 sm:$0xff]   ;;  %v4008_v31 = vld [vmem:[#allocation4 + $0xe8] ss:$16 sps:$4 sm:$0xff]  }
 0x13c   : > { %2639 = vmatprep.subr.bf16.mxu0 %v3962_v32  ;;  %2682 = vmatprep.subr.bf16.mxu1 %v3965_v35  ;;  %v961_v29 = vmax.f32 %v947_v6, 0.0  ;;  %v969_v22 = vmax.f32 %v951_v23, 0.0  ;;  %v4016_v33 = vld [vmem:[#allocation4 + $0xcc] ss:$16 sps:$4 sm:$0xff]   ;;  %v4014_v35 = vld [vmem:[#allocation4 + $0xc8] ss:$16 sps:$4 sm:$0xff]  }
 0x13d   : > { %2655 = vmatprep.mubr.bf16.mxu0 %v4498_v39  ;;  %2698 = vmatprep.mubr.bf16.mxu1 %v4500_v44  ;;  %v4512_v32 = vpack.c.bf16 %v967_v27, %v959_v26  ;;  %v4017_v36 = vld [vmem:[#allocation4 + $0x2c8] ss:$16 sps:$4 sm:$0xff]   ;;  %v4022_v37 = vld [vmem:[#allocation4 + $0xac] ss:$16 sps:$4 sm:$0xff]  }
 0x13e   : > { %v4514_v25 = vpack.c.bf16 %v969_v22, %v961_v29  ;;  %v4056_v3 = vld [vmem:[#allocation4 + $0x1e8] ss:$16 sps:$4 sm:$0xff]   ;;  %v4067_v14 = vld [vmem:[#allocation4 + $0x3cc] ss:$16 sps:$4 sm:$0xff]  }
 0x13f   : > { %2640 = vmatpush2.bf16.msra.mxu0 %v3960_v38  ;;  %2683 = vmatpush2.bf16.msra.mxu1 %v3963_v0  ;;  %v4025_v38 = vld [vmem:[#allocation4 + $0x2ac] ss:$16 sps:$4 sm:$0xff]   ;;  %v4020_v0 = vld [vmem:[#allocation4 + $0xa8] ss:$16 sps:$4 sm:$0xff]  }
 0x140   : > { %2641 = vmatprep.subr.bf16.mxu0 %v3968_v43  ;;  %2684 = vmatprep.subr.bf16.mxu1 %v3971_v46  ;;  %v4023_v43 = vld [vmem:[#allocation4 + $0x2a8] ss:$16 sps:$4 sm:$0xff]   ;;  %v4028_v46 = vld [vmem:[#allocation4 + $0x8c] ss:$16 sps:$4 sm:$0xff]  }
 0x141   : > { %v4070_v18 = vld [vmem:[#allocation4 + $0x1ac] ss:$16 sps:$4 sm:$0xff]  }
 0x142   : > { %v4073_v19 = vld [vmem:[#allocation4 + $0x3ac] ss:$16 sps:$4 sm:$0xff]  }
 0x143   : > { %2642 = vmatpush2.bf16.msra.mxu0 %v3966_v47  ;;  %2685 = vmatpush2.bf16.msra.mxu1 %v3969_v48  ;;  %v4031_v47 = vld [vmem:[#allocation4 + $0x28c] ss:$16 sps:$4 sm:$0xff]   ;;  %v4026_v48 = vld [vmem:[#allocation4 + $0x88] ss:$16 sps:$4 sm:$0xff]  }
 0x144   : > { %2643 = vmatprep.subr.bf16.mxu0 %v3974_v49  ;;  %2686 = vmatprep.subr.bf16.mxu1 %v3977_v50  ;;  %v4034_v49 = vld [vmem:[#allocation4 + $0x6c] ss:$16 sps:$4 sm:$0xff]  }
 0x145   : > { %v4037_v50 = vld [vmem:[#allocation4 + $0x26c] ss:$16 sps:$4 sm:$0xff]  }
 0x146   : > { %v4076_v6 = vld [vmem:[#allocation4 + $0x18c] ss:$16 sps:$4 sm:$0xff]  }
 0x147   : > { %2644 = vmatpush2.bf16.msra.mxu0 %v3972_v51  ;;  %2687 = vmatpush2.bf16.msra.mxu1 %v3975_v52  ;;  %v4035_v51 = vld [vmem:[#allocation4 + $0x268] ss:$16 sps:$4 sm:$0xff]   ;;  %v4040_v52 = vld [vmem:[#allocation4 + $0x4c] ss:$16 sps:$4 sm:$0xff]  }
 0x148   : > { %2645 = vmatprep.subr.bf16.mxu0 %v3980_v53  ;;  %2688 = vmatprep.subr.bf16.mxu1 %v3983_v54  ;;  %v4043_v53 = vld [vmem:[#allocation4 + $0x24c] ss:$16 sps:$4 sm:$0xff]   ;;  %v4038_v54 = vld [vmem:[#allocation4 + $0x48] ss:$16 sps:$4 sm:$0xff]  }
 0x149   : > { %v4079_v23 = vld [vmem:[#allocation4 + $0x38c] ss:$16 sps:$4 sm:$0xff]  }
 0x14a   : > { %v4082_v26 = vld [vmem:[#allocation4 + $0x16c] ss:$16 sps:$4 sm:$0xff]  }
 0x14b   : > { %2646 = vmatpush2.bf16.msra.mxu0 %v3978_v55  ;;  %2689 = vmatpush2.bf16.msra.mxu1 %v3981_v56  ;;  %v4041_v55 = vld [vmem:[#allocation4 + $0x248] ss:$16 sps:$4 sm:$0xff]   ;;  %v4046_v56 = vld [vmem:[#allocation4 + $0x2c] ss:$16 sps:$4 sm:$0xff]  }
 0x14c   : > { %2647 = vmatprep.subr.bf16.mxu0 %v3986_v57  ;;  %2690 = vmatprep.subr.bf16.mxu1 %v3989_v58  ;;  %v4049_v57 = vld [vmem:[#allocation4 + $0x22c] ss:$16 sps:$4 sm:$0xff]   ;;  %v4044_v58 = vld [vmem:[#allocation4 + $0x28] ss:$16 sps:$4 sm:$0xff]  }
 0x14d   : > { %v4085_v27 = vld [vmem:[#allocation4 + $0x36c] ss:$16 sps:$4 sm:$0xff]  }
 0x14e   : > { %v4088_v29 = vld [vmem:[#allocation4 + $0x14c] ss:$16 sps:$4 sm:$0xff]  }
 0x14f   : > { %2648 = vmatpush2.bf16.msra.mxu0 %v3984_v59  ;;  %2691 = vmatpush2.bf16.msra.mxu1 %v3987_v61  ;;  %v4047_v59 = vld [vmem:[#allocation4 + $0x228] ss:$16 sps:$4 sm:$0xff]   ;;  %v4055_v61 = vld [vmem:[#allocation4 + $0x20c] ss:$16 sps:$4 sm:$0xff]  }
 0x150   : > { %2649 = vmatprep.subr.bf16.mxu0 %v3992_v62  ;;  %2692 = vmatprep.subr.bf16.mxu1 %v3995_v1  ;;  %v4050_v62 = vld [vmem:[#allocation4 + $0x8] ss:$16 sps:$4 sm:$0xff]   ;;  %v4058_v1 = vld [vmem:[#allocation4 + $0x1ec] ss:$16 sps:$4 sm:$0xff]  }
 0x151   : > { %v4091_v22 = vld [vmem:[#allocation4 + $0x34c] ss:$16 sps:$4 sm:$0xff]  }
 0x153   : > { %2650 = vmatpush2.bf16.msra.mxu0 %v3990_v2  ;;  %2693 = vmatpush2.bf16.msra.mxu1 %v3993_v4  ;;  %v4061_v2 = vld [vmem:[#allocation4 + $0x3ec] ss:$16 sps:$4 sm:$0xff]   ;;  %v4059_v4 = vld [vmem:[#allocation4 + $0x3e8] ss:$16 sps:$4 sm:$0xff]  }
 0x154   : > { %2651 = vmatprep.subr.bf16.mxu0 %v3998_v5  ;;  %2694 = vmatprep.subr.bf16.mxu1 %v4001_v15  ;;  %v4064_v5 = vld [vmem:[#allocation4 + $0x1cc] ss:$16 sps:$4 sm:$0xff]   ;;  %v4062_v15 = vld [vmem:[#allocation4 + $0x1c8] ss:$16 sps:$4 sm:$0xff]  }
 0x157   : > { %2652 = vmatpush2.bf16.msra.mxu0 %v3996_v17  ;;  %2695 = vmatpush2.bf16.msra.mxu1 %v3999_v20  ;;  %v4065_v17 = vld [vmem:[#allocation4 + $0x3c8] ss:$16 sps:$4 sm:$0xff]  }
 0x158   : > { %2653 = vmatprep.subr.bf16.mxu0 %v4004_v21  ;;  %2696 = vmatprep.subr.bf16.mxu1 %v4007_v24  ;;  %v4068_v20 = vld [vmem:[#allocation4 + $0x1a8] ss:$16 sps:$4 sm:$0xff]  }
 0x159   : > { %v4071_v21 = vld [vmem:[#allocation4 + $0x3a8] ss:$16 sps:$4 sm:$0xff]  }
 0x15a   : > { %v4074_v24 = vld [vmem:[#allocation4 + $0x188] ss:$16 sps:$4 sm:$0xff]  }
 0x15b   : > { %2654 = vmatpush2.bf16.msra.mxu0 %v4002_v11  ;;  %2697 = vmatpush2.bf16.msra.mxu1 %v4005_v28  ;;  %v4077_v11 = vld [vmem:[#allocation4 + $0x388] ss:$16 sps:$4 sm:$0xff]  }
 0x15c   : > { %2709 = vmatprep.subr.bf16.mxu0 %v4010_v13  ;;  %2752 = vmatprep.subr.bf16.mxu1 %v4013_v30  ;;  %v4080_v28 = vld [vmem:[#allocation4 + $0x168] ss:$16 sps:$4 sm:$0xff]  }
 0x15d   : > { %v4083_v13 = vld [vmem:[#allocation4 + $0x368] ss:$16 sps:$4 sm:$0xff]  }
 0x15e   : > { %2656 = vmatmul.mubr.bf16.vlgmr.msra.gmra.mxu0 %v4512_v32  ;;  %2699 = vmatmul.mubr.bf16.vlgmr.msra.gmra.mxu1 %v4514_v25  ;;  %v4086_v30 = vld [vmem:[#allocation4 + $0x148] ss:$16 sps:$4 sm:$0xff]  }
 0x15f   : > { %2710 = vmatpush1.bf16.msra.mxu0 %v4008_v31  ;;  %2741 = vmatprep.mubr.bf16.mxu0 %v4474_v40  ;;  %v4029_v40 = vld [vmem:[#allocation4 + $0x288] ss:$16 sps:$4 sm:$0xff]  }
 0x160   : > { %2753 = vmatpush1.bf16.msra.mxu1 %v4011_v16  ;;  %2784 = vmatprep.mubr.bf16.mxu1 %v4478_v42  ;;  %v4032_v42 = vld [vmem:[#allocation4 + $0x68] ss:$16 sps:$4 sm:$0xff]   ;;  %v4094_v16 = vld [vmem:[#allocation4 + $0x12c] ss:$16 sps:$4 sm:$0xff]  }
 0x161   : > { %2711 = vmatprep.subr.bf16.mxu0 %v4016_v33  ;;  %2754 = vmatprep.subr.bf16.mxu1 %v4019_v34  ;;  %v4089_v31 = vld [vmem:[#allocation4 + $0x348] ss:$16 sps:$4 sm:$0xff]   ;;  %v4097_v33 = vld [vmem:[#allocation4 + $0x32c] ss:$16 sps:$4 sm:$0xff]  }
 0x162   : > { %v4092_v34 = vld [vmem:[#allocation4 + $0x128] ss:$16 sps:$4 sm:$0xff]  }
 0x163   : > { %2712 = vmatpush1.bf16.msra.mxu0 %v4014_v35  ;;  %v4095_v35 = vld [vmem:[#allocation4 + $0x328] ss:$16 sps:$4 sm:$0xff]  }
 0x164   : > { %2755 = vmatpush1.bf16.msra.mxu1 %v4017_v36  ;;  %2713 = vmatprep.subr.bf16.mxu0 %v4022_v37  ;;  %v4100_v36 = vld [vmem:[#allocation4 + $0x10c] ss:$16 sps:$4 sm:$0xff]  }
 0x165   : > { %2756 = vmatprep.subr.bf16.mxu1 %v4025_v38  ;;  %v4103_v37 = vld [vmem:[#allocation4 + $0x30c] ss:$16 sps:$4 sm:$0xff]   ;;  %v4098_v38 = vld [vmem:[#allocation4 + $0x108] ss:$16 sps:$4 sm:$0xff]  }
 0x167   : > { %2714 = vmatpush1.bf16.msra.mxu0 %v4020_v0  ;;  %v4101_v0 = vld [vmem:[#allocation4 + $0x308] ss:$16 sps:$4 sm:$0xff]  }
 0x168   : > { %2757 = vmatpush1.bf16.msra.mxu1 %v4023_v43  ;;  %2715 = vmatprep.subr.bf16.mxu0 %v4028_v46  ;;  %v4106_v43 = vld [vmem:[#allocation4 + $0x4ec] ss:$16 sps:$4 sm:$0xff]  }
 0x169   : > { %2758 = vmatprep.subr.bf16.mxu1 %v4031_v47  ;;  %v4109_v46 = vld [vmem:[#allocation4 + $0x6ec] ss:$16 sps:$4 sm:$0xff]   ;;  %v4104_v47 = vld [vmem:[#allocation4 + $0x4e8] ss:$16 sps:$4 sm:$0xff]  }
 0x16b   : > { %2716 = vmatpush1.bf16.msra.mxu0 %v4026_v48  ;;  %v4107_v48 = vld [vmem:[#allocation4 + $0x6e8] ss:$16 sps:$4 sm:$0xff]  }
 0x16c   : > { %2759 = vmatpush1.bf16.msra.mxu1 %v4029_v40  ;;  %2717 = vmatprep.subr.bf16.mxu0 %v4034_v49  ;;  %v4112_v40 = vld [vmem:[#allocation4 + $0x4cc] ss:$16 sps:$4 sm:$0xff]  }
 0x16d   : > { %2760 = vmatprep.subr.bf16.mxu1 %v4037_v50  ;;  %v4115_v49 = vld [vmem:[#allocation4 + $0x6cc] ss:$16 sps:$4 sm:$0xff]   ;;  %v4110_v50 = vld [vmem:[#allocation4 + $0x4c8] ss:$16 sps:$4 sm:$0xff]  }
 0x16f   : > { %2718 = vmatpush1.bf16.msra.mxu0 %v4032_v42  ;;  %v4113_v42 = vld [vmem:[#allocation4 + $0x6c8] ss:$16 sps:$4 sm:$0xff]  }
 0x170   : > { %2761 = vmatpush1.bf16.msra.mxu1 %v4035_v51  ;;  %2719 = vmatprep.subr.bf16.mxu0 %v4040_v52  ;;  %v4118_v51 = vld [vmem:[#allocation4 + $0x4ac] ss:$16 sps:$4 sm:$0xff]  }
 0x171   : > { %2762 = vmatprep.subr.bf16.mxu1 %v4043_v53  ;;  %v4121_v52 = vld [vmem:[#allocation4 + $0x6ac] ss:$16 sps:$4 sm:$0xff]   ;;  %v4116_v53 = vld [vmem:[#allocation4 + $0x4a8] ss:$16 sps:$4 sm:$0xff]  }
 0x173   : > { %2720 = vmatpush1.bf16.msra.mxu0 %v4038_v54  ;;  %v4124_v54 = vld [vmem:[#allocation4 + $0x48c] ss:$16 sps:$4 sm:$0xff]  }
 0x174   : > { %2763 = vmatpush1.bf16.msra.mxu1 %v4041_v55  ;;  %2721 = vmatprep.subr.bf16.mxu0 %v4046_v56  ;;  %v4122_v55 = vld [vmem:[#allocation4 + $0x488] ss:$16 sps:$4 sm:$0xff]   ;;  %v4130_v56 = vld [vmem:[#allocation4 + $0x46c] ss:$16 sps:$4 sm:$0xff]  }
 0x175   : > { %2764 = vmatprep.subr.bf16.mxu1 %v4049_v57  ;;  %v4133_v57 = vld [vmem:[#allocation4 + $0x66c] ss:$16 sps:$4 sm:$0xff]  }
 0x177   : > { %2722 = vmatpush1.bf16.msra.mxu0 %v4044_v58  ;;  %v4131_v58 = vld [vmem:[#allocation4 + $0x668] ss:$16 sps:$4 sm:$0xff]  }
 0x178   : > { %2765 = vmatpush1.bf16.msra.mxu1 %v4047_v59  ;;  %2723 = vmatprep.subr.bf16.mxu0 %v4052_v60  ;;  %v4136_v59 = vld [vmem:[#allocation4 + $0x44c] ss:$16 sps:$4 sm:$0xff]  }
 0x179   : > { %2766 = vmatprep.subr.bf16.mxu1 %v4055_v61  ;;  %v4139_v60 = vld [vmem:[#allocation4 + $0x64c] ss:$16 sps:$4 sm:$0xff]   ;;  %v4134_v61 = vld [vmem:[#allocation4 + $0x448] ss:$16 sps:$4 sm:$0xff]  }
 0x17b   : > { %2724 = vmatpush1.bf16.msra.mxu0 %v4050_v62  ;;  %v4137_v62 = vld [vmem:[#allocation4 + $0x648] ss:$16 sps:$4 sm:$0xff]  }
 0x17c   : > { %2767 = vmatpush1.bf16.msra.mxu1 %v4053_v63  ;;  %2725 = vmatprep.subr.bf16.mxu0 %v4058_v1  ;;  %v4142_v63 = vld [vmem:[#allocation4 + $0x42c] ss:$16 sps:$4 sm:$0xff]  }
 0x17d   : > { %2768 = vmatprep.subr.bf16.mxu1 %v4061_v2  ;;  %v4145_v1 = vld [vmem:[#allocation4 + $0x62c] ss:$16 sps:$4 sm:$0xff]   ;;  %v4140_v2 = vld [vmem:[#allocation4 + $0x428] ss:$16 sps:$4 sm:$0xff]  }
 0x17f   : > { %2726 = vmatpush2.bf16.msra.mxu0 %v4056_v3  ;;  %v4143_v3 = vld [vmem:[#allocation4 + $0x628] ss:$16 sps:$4 sm:$0xff]  }
 0x180   : > { %2769 = vmatpush2.bf16.msra.mxu1 %v4059_v4  ;;  %2727 = vmatprep.subr.bf16.mxu0 %v4064_v5  ;;  %v4148_v4 = vld [vmem:[#allocation4 + $0x40c] ss:$16 sps:$4 sm:$0xff]  }
 0x181   : > { %2770 = vmatprep.subr.bf16.mxu1 %v4067_v14  ;;  %v4151_v5 = vld [vmem:[#allocation4 + $0x60c] ss:$16 sps:$4 sm:$0xff]   ;;  %v4146_v14 = vld [vmem:[#allocation4 + $0x408] ss:$16 sps:$4 sm:$0xff]  }
 0x183   : > { %2728 = vmatpush2.bf16.msra.mxu0 %v4062_v15  ;;  %v4149_v15 = vld [vmem:[#allocation4 + $0x608] ss:$16 sps:$4 sm:$0xff]  }
 0x184   : > { %2771 = vmatpush2.bf16.msra.mxu1 %v4065_v17  ;;  %2729 = vmatprep.subr.bf16.mxu0 %v4070_v18  ;;  %v4154_v17 = vld [vmem:[#allocation4 + $0x5ec] ss:$16 sps:$4 sm:$0xff]  }
 0x185   : > { %2772 = vmatprep.subr.bf16.mxu1 %v4073_v19  ;;  %v4157_v18 = vld [vmem:[#allocation4 + $0x7ec] ss:$16 sps:$4 sm:$0xff]   ;;  %v4152_v19 = vld [vmem:[#allocation4 + $0x5e8] ss:$16 sps:$4 sm:$0xff]  }
 0x187   : > { %2730 = vmatpush2.bf16.msra.mxu0 %v4068_v20  ;;  %v4155_v20 = vld [vmem:[#allocation4 + $0x7e8] ss:$16 sps:$4 sm:$0xff]  }
 0x188   : > { %2773 = vmatpush2.bf16.msra.mxu1 %v4071_v21  ;;  %2731 = vmatprep.subr.bf16.mxu0 %v4076_v6  ;;  %v4160_v21 = vld [vmem:[#allocation4 + $0x5cc] ss:$16 sps:$4 sm:$0xff]  }
 0x189   : > { %2774 = vmatprep.subr.bf16.mxu1 %v4079_v23  ;;  %v4163_v6 = vld [vmem:[#allocation4 + $0x7cc] ss:$16 sps:$4 sm:$0xff]   ;;  %v4158_v23 = vld [vmem:[#allocation4 + $0x5c8] ss:$16 sps:$4 sm:$0xff]  }
 0x18b   : > { %2732 = vmatpush2.bf16.msra.mxu0 %v4074_v24  ;;  %v4161_v24 = vld [vmem:[#allocation4 + $0x7c8] ss:$16 sps:$4 sm:$0xff]  }
 0x18c   : > { %2775 = vmatpush2.bf16.msra.mxu1 %v4077_v11  ;;  %2733 = vmatprep.subr.bf16.mxu0 %v4082_v26  ;;  %v4166_v11 = vld [vmem:[#allocation4 + $0x5ac] ss:$16 sps:$4 sm:$0xff]  }
 0x18d   : > { %2776 = vmatprep.subr.bf16.mxu1 %v4085_v27  ;;  %v4169_v26 = vld [vmem:[#allocation4 + $0x7ac] ss:$16 sps:$4 sm:$0xff]   ;;  %v4164_v27 = vld [vmem:[#allocation4 + $0x5a8] ss:$16 sps:$4 sm:$0xff]  }
 0x18f   : > { %2734 = vmatpush2.bf16.msra.mxu0 %v4080_v28  ;;  %v4167_v28 = vld [vmem:[#allocation4 + $0x7a8] ss:$16 sps:$4 sm:$0xff]  }
 0x190   : > { %2777 = vmatpush2.bf16.msra.mxu1 %v4083_v13  ;;  %2735 = vmatprep.subr.bf16.mxu0 %v4088_v29  ;;  %v4172_v13 = vld [vmem:[#allocation4 + $0x58c] ss:$16 sps:$4 sm:$0xff]  }
 0x191   : > { %2778 = vmatprep.subr.bf16.mxu1 %v4091_v22  ;;  %v4175_v29 = vld [vmem:[#allocation4 + $0x78c] ss:$16 sps:$4 sm:$0xff]   ;;  %v4170_v22 = vld [vmem:[#allocation4 + $0x588] ss:$16 sps:$4 sm:$0xff]  }
 0x193   : > { %2736 = vmatpush2.bf16.msra.mxu0 %v4086_v30  ;;  %v4173_v30 = vld [vmem:[#allocation4 + $0x788] ss:$16 sps:$4 sm:$0xff]  }
 0x194   : > { %2779 = vmatpush2.bf16.msra.mxu1 %v4089_v31  ;;  %2737 = vmatprep.subr.bf16.mxu0 %v4094_v16  ;;  %v4178_v31 = vld [vmem:[#allocation4 + $0x56c] ss:$16 sps:$4 sm:$0xff]  }
 0x195   : > { %2780 = vmatprep.subr.bf16.mxu1 %v4097_v33  ;;  %v4181_v16 = vld [vmem:[#allocation4 + $0x76c] ss:$16 sps:$4 sm:$0xff]   ;;  %v4176_v33 = vld [vmem:[#allocation4 + $0x568] ss:$16 sps:$4 sm:$0xff]  }
 0x197   : > { %2738 = vmatpush2.bf16.msra.mxu0 %v4092_v34  ;;  %v4179_v34 = vld [vmem:[#allocation4 + $0x768] ss:$16 sps:$4 sm:$0xff]  }
 0x198   : > { %2781 = vmatpush2.bf16.msra.mxu1 %v4095_v35  ;;  %2739 = vmatprep.subr.bf16.mxu0 %v4100_v36  ;;  %v4184_v35 = vld [vmem:[#allocation4 + $0x54c] ss:$16 sps:$4 sm:$0xff]  }
 0x199   : > { %2782 = vmatprep.subr.bf16.mxu1 %v4103_v37  ;;  %v4187_v36 = vld [vmem:[#allocation4 + $0x74c] ss:$16 sps:$4 sm:$0xff]   ;;  %v4182_v37 = vld [vmem:[#allocation4 + $0x548] ss:$16 sps:$4 sm:$0xff]  }
 0x19b   : > { %2740 = vmatpush2.bf16.msra.mxu0 %v4098_v38  ;;  %v4185_v38 = vld [vmem:[#allocation4 + $0x748] ss:$16 sps:$4 sm:$0xff]  }
 0x19c   : > { %2783 = vmatpush2.bf16.msra.mxu1 %v4101_v0  ;;  %2795 = vmatprep.subr.bf16.mxu0 %v4106_v43  ;;  %v4190_v0 = vld [vmem:[#allocation4 + $0x52c] ss:$16 sps:$4 sm:$0xff]  }
 0x19d   : > { %2838 = vmatprep.subr.bf16.mxu1 %v4109_v46  ;;  %v4193_v43 = vld [vmem:[#allocation4 + $0x72c] ss:$16 sps:$4 sm:$0xff]   ;;  %v4188_v46 = vld [vmem:[#allocation4 + $0x528] ss:$16 sps:$4 sm:$0xff]  }
 0x19e   : > { %2742 = vmatmul.mubr.bf16.vlgmr.msra.gmra.mxu0 %v4476_v41  ;;  %v4119_v41 = vld [vmem:[#allocation4 + $0x6a8] ss:$16 sps:$4 sm:$0xff]  }
 0x19f   : > { %2785 = vmatmul.mubr.bf16.vlgmr.msra.gmra.mxu1 %v4480_v45  ;;  %2796 = vmatpush1.bf16.msra.mxu0 %v4104_v47  ;;  %v4127_v45 = vld [vmem:[#allocation4 + $0x68c] ss:$16 sps:$4 sm:$0xff]   ;;  %v4191_v47 = vld [vmem:[#allocation4 + $0x728] ss:$16 sps:$4 sm:$0xff]  }
 0x1a0   : > { %2827 = vmatprep.mubr.bf16.mxu0 %v4498_v39  ;;  %2839 = vmatpush1.bf16.msra.mxu1 %v4107_v48  ;;  %v4125_v39 = vld [vmem:[#allocation4 + $0x688] ss:$16 sps:$4 sm:$0xff]   ;;  %v4196_v48 = vld [vmem:[#allocation4 + $0x50c] ss:$16 sps:$4 sm:$0xff]  }
 0x1a1   : > { %2870 = vmatprep.mubr.bf16.mxu1 %v4500_v44  ;;  %2797 = vmatprep.subr.bf16.mxu0 %v4112_v40  ;;  %v4128_v44 = vld [vmem:[#allocation4 + $0x468] ss:$16 sps:$4 sm:$0xff]   ;;  %v4199_v40 = vld [vmem:[#allocation4 + $0x70c] ss:$16 sps:$4 sm:$0xff]  }
 0x1a2   : > { %2840 = vmatprep.subr.bf16.mxu1 %v4115_v49  ;;  %v4194_v49 = vld [vmem:[#allocation4 + $0x508] ss:$16 sps:$4 sm:$0xff]  }
 0x1a3   : > { %2798 = vmatpush1.bf16.msra.mxu0 %v4110_v50  ;;  %v4197_v50 = vld [vmem:[#allocation4 + $0x708] ss:$16 sps:$4 sm:$0xff]  }
 0x1a4   : > { %2841 = vmatpush1.bf16.msra.mxu1 %v4113_v42  ;;  %2799 = vmatprep.subr.bf16.mxu0 %v4118_v51  ;;  %v4200_v42 = vld [vmem:[%s4654_s5 + $0x78] sm:$0xff]  }
 0x1a5   : > { %2842 = vmatprep.subr.bf16.mxu1 %v4121_v52  ;;  %v4201_v51 = vld [vmem:[%s4654_s5 + $0x38] sm:$0xff]   ;;  %v4202_v52 = vld [vmem:[%s4654_s5 + $0x70] sm:$0xff]  }
 0x1a7   : > { %2800 = vmatpush1.bf16.msra.mxu0 %v4116_v53  ;;  %v4203_v53 = vld [vmem:[%s4654_s5 + $0x30] sm:$0xff]  }
 0x1a8   : > { %2843 = vmatpush1.bf16.msra.mxu1 %v4119_v41  ;;  %2801 = vmatprep.subr.bf16.mxu0 %v4124_v54  ;;  %v4204_v41 = vld [vmem:[%s4654_s5 + $0x68] sm:$0xff]  }
 0x1a9   : > { %2844 = vmatprep.subr.bf16.mxu1 %v4127_v45  ;;  %v4205_v54 = vld [vmem:[%s4654_s5 + $0x28] sm:$0xff]   ;;  %v4216_v45 = vld [vmem:[%s4654_s5 + $0xf8] sm:$0xff]  }
 0x1ab   : > { %2802 = vmatpush1.bf16.msra.mxu0 %v4122_v55  ;;  %v4217_v55 = vld [vmem:[%s4654_s5 + $0xb8] sm:$0xff]  }
 0x1ac   : > { %2845 = vmatpush1.bf16.msra.mxu1 %v4125_v39  ;;  %2803 = vmatprep.subr.bf16.mxu0 %v4130_v56  ;;  %v4218_v39 = vld [vmem:[%s4654_s5 + $0xf0] sm:$0xff]   ;;  %v4208_v56 = vld [vmem:[%s4654_s5 + $0x58] sm:$0xff]  }
 0x1ad   : > { %2846 = vmatprep.subr.bf16.mxu1 %v4133_v57  ;;  %v4219_v57 = vld [vmem:[%s4654_s5 + $0xb0] sm:$0xff]  }
 0x1af   : > { %2804 = vmatpush1.bf16.msra.mxu0 %v4128_v44  ;;  %v4209_v44 = vld [vmem:[%s4654_s5 + $0x18] sm:$0xff]  }
 0x1b0   : > { %2847 = vmatpush1.bf16.msra.mxu1 %v4131_v58  ;;  %2805 = vmatprep.subr.bf16.mxu0 %v4136_v59  ;;  %v4220_v58 = vld [vmem:[%s4654_s5 + $0xe8] sm:$0xff]   ;;  %v4210_v59 = vld [vmem:[%s4654_s5 + $0x50] sm:$0xff]  }
 0x1b1   : > { %2848 = vmatprep.subr.bf16.mxu1 %v4139_v60  ;;  %v4221_v60 = vld [vmem:[%s4654_s5 + $0xa8] sm:$0xff]  }
 0x1b3   : > { %2806 = vmatpush1.bf16.msra.mxu0 %v4134_v61  ;;  %v4211_v61 = vld [vmem:[%s4654_s5 + $0x10] sm:$0xff]  }
 0x1b4   : > { %2849 = vmatpush1.bf16.msra.mxu1 %v4137_v62  ;;  %2807 = vmatprep.subr.bf16.mxu0 %v4142_v63  ;;  %v4222_v62 = vld [vmem:[%s4654_s5 + $0xe0] sm:$0xff]   ;;  %v4212_v63 = vld [vmem:[%s4654_s5 + $0x48] sm:$0xff]  }
 0x1b5   : > { %2850 = vmatprep.subr.bf16.mxu1 %v4145_v1  ;;  %v4223_v1 = vld [vmem:[%s4654_s5 + $0xa0] sm:$0xff]  }
 0x1b7   : > { %2808 = vmatpush1.bf16.msra.mxu0 %v4140_v2  ;;  %v4213_v2 = vld [vmem:[%s4654_s5 + $0x8] sm:$0xff]  }
 0x1b8   : > { %2851 = vmatpush1.bf16.msra.mxu1 %v4143_v3  ;;  %2809 = vmatprep.subr.bf16.mxu0 %v4148_v4  ;;  %v4214_v3 = vld [vmem:[%s4654_s5 + $0x40] sm:$0xff]  }
 0x1b9   : > { %2852 = vmatprep.subr.bf16.mxu1 %v4151_v5  ;;  %v4215_v4 = vld [vmem:[%s4654_s5] sm:$0xff]  }
 0x1bb   : > { %2810 = vmatpush1.bf16.msra.mxu0 %v4146_v14 }
 0x1bc   : > { %2853 = vmatpush1.bf16.msra.mxu1 %v4149_v15  ;;  %2811 = vmatprep.subr.bf16.mxu0 %v4154_v17  ;;  %v1235_v17 = vld [vmem:[%s4653_s4] sm:$0xf] }
 0x1bd   : > { %2854 = vmatprep.subr.bf16.mxu1 %v4157_v18 }
 0x1bf   : > { %2812 = vmatpush2.bf16.msra.mxu0 %v4152_v19  ;;  %v1244_v19 = vrot.slane %v1235_v17, %v423_v8  ;;  %v4225_v8 = vld [vmem:[%s4654_s5 + $0x98] sm:$0xff]  }
 0x1c0   : > { %2855 = vmatpush2.bf16.msra.mxu1 %v4155_v20  ;;  %2813 = vmatprep.subr.bf16.mxu0 %v4160_v21  ;;  %v1240_v20 = vrot.slane %v1235_v17, %v419_v9 }
 0x1c1   : > { %2856 = vmatprep.subr.bf16.mxu1 %v4163_v6 }
 0x1c3   : > { %2814 = vmatpush2.bf16.msra.mxu0 %v4158_v23 }
 0x1c4   : > { %2857 = vmatpush2.bf16.msra.mxu1 %v4161_v24  ;;  %2815 = vmatprep.subr.bf16.mxu0 %v4166_v11 }
 0x1c5   : > { %2858 = vmatprep.subr.bf16.mxu1 %v4169_v26 }
 0x1c7   : > { %2816 = vmatpush2.bf16.msra.mxu0 %v4164_v27 }
 0x1c8   : > { %2859 = vmatpush2.bf16.msra.mxu1 %v4167_v28  ;;  %2817 = vmatprep.subr.bf16.mxu0 %v4172_v13  ;;  %v4224_v13 = vld [vmem:[%s4654_s5 + $0xd8] sm:$0xff]  }
 0x1c9   : > { %2860 = vmatprep.subr.bf16.mxu1 %v4175_v29 }
 0x1cb   : > { %2818 = vmatpush2.bf16.msra.mxu0 %v4170_v22 }
 0x1cc   : > { %2861 = vmatpush2.bf16.msra.mxu1 %v4173_v30  ;;  %2819 = vmatprep.subr.bf16.mxu0 %v4178_v31 }
 0x1cd   : > { %2862 = vmatprep.subr.bf16.mxu1 %v4181_v16 }
 0x1cf   : > { %2820 = vmatpush2.bf16.msra.mxu0 %v4176_v33 }
 0x1d0   : > { %2863 = vmatpush2.bf16.msra.mxu1 %v4179_v34  ;;  %2821 = vmatprep.subr.bf16.mxu0 %v4184_v35 }
 0x1d1   : > { %2864 = vmatprep.subr.bf16.mxu1 %v4187_v36 }
 0x1d3   : > { %2822 = vmatpush2.bf16.msra.mxu0 %v4182_v37  ;;  %v4226_v37 = vld [vmem:[%s4654_s5 + $0xd0] sm:$0xff]  }
 0x1d4   : > { %2865 = vmatpush2.bf16.msra.mxu1 %v4185_v38  ;;  %2823 = vmatprep.subr.bf16.mxu0 %v4190_v0 }
 0x1d5   : > { %2866 = vmatprep.subr.bf16.mxu1 %v4193_v43 }
 0x1d7   : > { %2824 = vmatpush2.bf16.msra.mxu0 %v4188_v46  ;;  %v4227_v46 = vld [vmem:[%s4654_s5 + $0x90] sm:$0xff]  }
 0x1d8   : > { %2867 = vmatpush2.bf16.msra.mxu1 %v4191_v47  ;;  %2825 = vmatprep.subr.bf16.mxu0 %v4196_v48 }
 0x1d9   : > { %2868 = vmatprep.subr.bf16.mxu1 %v4199_v40 }
 0x1db   : > { %2826 = vmatpush2.bf16.msra.mxu0 %v4194_v49 }
 0x1dc   : > { %2869 = vmatpush2.bf16.msra.mxu1 %v4197_v50  ;;  %3721 = vmatprep.subr.bf16.mxu0 %v4200_v42 }
 0x1dd   : > { %3743 = vmatprep.subr.bf16.mxu1 %v4216_v45  ;;  %v4230_v45 = vld [vmem:[%s4654_s5 + $0xc0] sm:$0xff]  }
 0x1de   : > { %2828 = vmatmul.mubr.bf16.vlgmr.msra.gmra.mxu0 %v4512_v32  ;;  %v4206_v32 = vld [vmem:[%s4654_s5 + $0x60] sm:$0xff]   ;;  %v2571_v5 = vpop.f32.mrf.mxu0  ;;  %v2614_v14 = vpop.f32.mrf.mxu1 }
 0x1df   : > { %2871 = vmatmul.mubr.bf16.vlgmr.msra.gmra.mxu1 %v4514_v25  ;;  %3722 = vmatpush3.bf16.msra.mxu0 %v4201_v51  ;;  %v4207_v25 = vld [vmem:[%s4654_s5 + $0x20] sm:$0xff]   ;;  %v2572_v24 = vadd.f32 %v2571_v5, %v1240_v20  ;;  %v4228_v51 = vld [vmem:[%s4654_s5 + $0xc8] sm:$0xff]  }
 0x1e0   : > { %3723 = vmatprep.subr.bf16.mxu0 %v4202_v52  ;;  %3744 = vmatpush3.bf16.msra.mxu1 %v4217_v55  ;;  %v2573_v15 = vpop.f32.mrf.mxu0  ;;  %v2616_v18 = vpop.f32.mrf.mxu1 }
 0x1e1   : > { %3745 = vmatprep.subr.bf16.mxu1 %v4218_v39  ;;  %v2574_v23 = vadd.f32 %v2573_v15, %v1244_v19  ;;  %v2615_v9 = vadd.f32 %v2614_v14, %v2572_v24  ;;  %v4231_v39 = vld [vmem:[%s4654_s5 + $0x80] sm:$0xff]  }
 0x1e2   : > { %v2575_v21 = vpop.f32.mrf.mxu0  ;;  %v2618_v6 = vpop.f32.mrf.mxu1 }
 0x1e3   : > { %3724 = vmatpush3.bf16.msra.mxu0 %v4203_v53  ;;  %v2576_v26 = vadd.f32 %v2575_v21, %v1240_v20  ;;  %v2617_v29 = vadd.f32 %v2616_v18, %v2574_v23  ;;  %v4229_v53 = vld [vmem:[%s4654_s5 + $0x88] sm:$0xff]  }
 0x1e4   : > { %3725 = vmatprep.subr.bf16.mxu0 %v4204_v41  ;;  %3746 = vmatpush3.bf16.msra.mxu1 %v4219_v57  ;;  %v2577_v11 = vpop.f32.mrf.mxu0  ;;  %v2620_v27 = vpop.f32.mrf.mxu1 }
 0x1e5   : > { %3747 = vmatprep.subr.bf16.mxu1 %v4220_v58  ;;  %v2578_v22 = vadd.f32 %v2577_v11, %v1244_v19  ;;  %v2619_v16 = vadd.f32 %v2618_v6, %v2576_v26 }
 0x1e7   : > { %3726 = vmatpush3.bf16.msra.mxu0 %v4205_v54  ;;  %v2621_v38 = vadd.f32 %v2620_v27, %v2578_v22 }
 0x1e8   : > { %3727 = vmatprep.subr.bf16.mxu0 %v4206_v32  ;;  %3748 = vmatpush3.bf16.msra.mxu1 %v4221_v60  ;;  %v1252_v60 = vrot.slane %v1235_v17, %v431_v10 }
 0x1e9   : > { %3749 = vmatprep.subr.bf16.mxu1 %v4222_v62 }
 0x1eb   : > { %3728 = vmatpush3.bf16.msra.mxu0 %v4207_v25 }
 0x1ec   : > { %3729 = vmatprep.subr.bf16.mxu0 %v4208_v56  ;;  %3750 = vmatpush3.bf16.msra.mxu1 %v4223_v1 }
 0x1ed   : > { %3751 = vmatprep.subr.bf16.mxu1 %v4224_v13 }
 0x1ef   : > { %3730 = vmatpush3.bf16.msra.mxu0 %v4209_v44 }
 0x1f0   : > { %3731 = vmatprep.subr.bf16.mxu0 %v4210_v59  ;;  %3752 = vmatpush3.bf16.msra.mxu1 %v4225_v8 }
 0x1f1   : > { %3753 = vmatprep.subr.bf16.mxu1 %v4226_v37 }
 0x1f3   : > { %3732 = vmatpush3.bf16.msra.mxu0 %v4211_v61  ;;  %v1248_v61 = vrot.slane %v1235_v17, %v427_v12 }
 0x1f4   : > { %3733 = vmatprep.subr.bf16.mxu0 %v4212_v63  ;;  %3754 = vmatpush3.bf16.msra.mxu1 %v4227_v46 }
 0x1f5   : > { %3755 = vmatprep.subr.bf16.mxu1 %v4228_v51 }
 0x1f7   : > { %3734 = vmatpush3.bf16.msra.mxu0 %v4213_v2 }
 0x1f8   : > { %3735 = vmatprep.subr.bf16.mxu0 %v4214_v3  ;;  %3756 = vmatpush3.bf16.msra.mxu1 %v4229_v53 }
 0x1f9   : > { %3757 = vmatprep.subr.bf16.mxu1 %v4230_v45 }
 0x1fb   : > { %3736 = vmatpush3.bf16.msra.mxu0 %v4215_v4 }
 0x1fc   : > { %3758 = vmatpush3.bf16.msra.mxu1 %v4231_v39 }
 0x21e   : > { %v2657_v28 = vpop.f32.mrf.mxu0  ;;  %v2700_v30 = vpop.f32.mrf.mxu1 }
 0x21f   : > { %v2658_v35 = vadd.f32 %v2657_v28, %v2615_v9 }
 0x220   : > { %v2659_v31 = vpop.f32.mrf.mxu0  ;;  %v2702_v34 = vpop.f32.mrf.mxu1 }
 0x221   : > { %v2660_v33 = vadd.f32 %v2659_v31, %v2617_v29  ;;  %v2701_v50 = vadd.f32 %v2700_v30, %v2658_v35 }
 0x222   : > { %v2661_v36 = vpop.f32.mrf.mxu0  ;;  %v2704_v43 = vpop.f32.mrf.mxu1 }
 0x223   : > { %v2662_v0 = vadd.f32 %v2661_v36, %v2619_v16  ;;  %v2703_v48 = vadd.f32 %v2702_v34, %v2660_v33  ;;  %v2881_v25 = vmax.f32 %v2701_v50, 0.0 }
 0x224   : > { %v2663_v47 = vpop.f32.mrf.mxu0  ;;  %v2706_v42 = vpop.f32.mrf.mxu1 }
 0x225   : > { %v2705_v40 = vadd.f32 %v2704_v43, %v2662_v0  ;;  %v2664_v49 = vadd.f32 %v2663_v47, %v2621_v38  ;;  %v2882_v54 = vmax.f32 %v2703_v48, 0.0  ;;  %v3684_v0 = vld [vmem:[%s4655_s6] ss:$0 sm:$0xff] }
 0x227   : > { %v2707_v52 = vadd.f32 %v2706_v42, %v2664_v49  ;;  %v2885_v41 = vmax.f32 %v2705_v40, 0.0 }
 0x229   : > { %v2886_v32 = vmax.f32 %v2707_v52, 0.0  ;;  %v2889_v56 = vpack.c.bf16 %v2885_v41, %v2881_v25 }
 0x22b   : > { %v2890_v55 = vpack.c.bf16 %v2886_v32, %v2882_v54 }
 0x22d   : > { %3188 = vmatprep.mubr.bf16.mxu0 %v2890_v55 }
 0x22e   : > { %3189 = vmatmul.mubr.bf16.vlgmr.msra.gmra.mxu0 %v2889_v56 }
 0x25e   : > { %v2743_v57 = vpop.f32.mrf.mxu0 }
 0x25f   : > { %v2786_v44 = vpop.f32.mrf.mxu1  ;;  %v2744_v2 = vadd.f32 %v2743_v57, %v1248_v61 }
 0x260   : > { %v2745_v58 = vpop.f32.mrf.mxu0 }
 0x261   : > { %v2788_v59 = vpop.f32.mrf.mxu1  ;;  %v2746_v1 = vadd.f32 %v2745_v58, %v1252_v60  ;;  %v2787_v20 = vadd.f32 %v2786_v44, %v2744_v2 }
 0x262   : > { %v2747_v62 = vpop.f32.mrf.mxu0 }
 0x263   : > { %v2790_v63 = vpop.f32.mrf.mxu1  ;;  %v2748_v4 = vadd.f32 %v2747_v62, %v1248_v61  ;;  %v2789_v15 = vadd.f32 %v2788_v59, %v2746_v1 }
 0x264   : > { %v2749_v3 = vpop.f32.mrf.mxu0 }
 0x265   : > { %v2792_v5 = vpop.f32.mrf.mxu1  ;;  %v2750_v18 = vadd.f32 %v2749_v3, %v1252_v60  ;;  %v2791_v6 = vadd.f32 %v2790_v63, %v2748_v4 }
 0x267   : > { %v2793_v7 = vadd.f32 %v2792_v5, %v2750_v18 }
 0x29e   : > { %v2829_v14 = vpop.f32.mrf.mxu0 }
 0x29f   : > { %v2872_v19 = vpop.f32.mrf.mxu1  ;;  %v2830_v10 = vadd.f32 %v2829_v14, %v2787_v20 }
 0x2a0   : > { %v2831_v21 = vpop.f32.mrf.mxu0 }
 0x2a1   : > { %v2832_v23 = vadd.f32 %v2831_v21, %v2789_v15  ;;  %v2874_v24 = vpop.f32.mrf.mxu1  ;;  %v2873_v29 = vadd.f32 %v2872_v19, %v2830_v10 }
 0x2a2   : > { %v2833_v11 = vpop.f32.mrf.mxu0 }
 0x2a3   : > { %v2834_v12 = vadd.f32 %v2833_v11, %v2791_v6  ;;  %v2876_v17 = vpop.f32.mrf.mxu1  ;;  %v2875_v27 = vadd.f32 %v2874_v24, %v2832_v23  ;;  %v2883_v16 = vmax.f32 %v2873_v29, 0.0 }
 0x2a4   : > { %v2835_v26 = vpop.f32.mrf.mxu0 }
 0x2a5   : > { %v2877_v28 = vadd.f32 %v2876_v17, %v2834_v12  ;;  %v2836_v13 = vadd.f32 %v2835_v26, %v2793_v7  ;;  %v2878_v22 = vpop.f32.mrf.mxu1  ;;  %v2884_v9 = vmax.f32 %v2875_v27, 0.0 }
 0x2a7   : > { %v2879_v30 = vadd.f32 %v2878_v22, %v2836_v13  ;;  %v2887_v8 = vmax.f32 %v2877_v28, 0.0 }
 0x2a9   : > { %v2888_v31 = vmax.f32 %v2879_v30, 0.0  ;;  %v2891_v34 = vpack.c.bf16 %v2887_v8, %v2883_v16 }
 0x2ab   : > { %v2892_v33 = vpack.c.bf16 %v2888_v31, %v2884_v9 }
 0x2ad   : > { %3229 = vmatprep.mubr.bf16.mxu1 %v2892_v33 }
 0x2ae   : > { %3230 = vmatmul.mubr.bf16.vlgmr.msra.gmra.mxu1 %v2891_v34 }
 0x2ee   : > { %v3737_v35 = vpop.f32.mrf.mxu0 }
 0x2f0   : > { %v3738_v36 = vpop.f32.mrf.mxu0 }
 0x2f1   : > { %v3739_v38 = vadd.f32 %v3738_v36, %v3737_v35 }
 0x2f2   : > { %v3740_v37 = vpop.f32.mrf.mxu0 }
 0x2f3   : > { %v3191_v48 = vadd.f32 %v3739_v38, %v3684_v0 }
 0x2f4   : > { %v3741_v43 = vpop.f32.mrf.mxu0 }
 0x2f5   : > { %v3742_v40 = vadd.f32 %v3741_v43, %v3740_v37 }
 0x2f7   : > { %v3194_v52 = vadd.f32 %v3742_v40, %v3684_v0 }
 0x36e   : > { %v3759_v46 = vpop.f32.mrf.mxu1 }
 0x370   : > { %v3760_v47 = vpop.f32.mrf.mxu1 }
 0x371   : > { %v3761_v49 = vadd.f32 %v3760_v47, %v3759_v46 }
 0x372   : > { %v3762_v50 = vpop.f32.mrf.mxu1 }
 0x373   : > { %v3232_v42 = vadd.f32 %v3761_v49, %v3191_v48 }
 0x374   : > { %v3763_v51 = vpop.f32.mrf.mxu1 }
 0x375   : > { %3239 = vst.msk [vmem:[%s346_s27] sm:$0xff] %vm3238_vm0, %v3232_v42  ;;  %v3764_v53 = vadd.f32 %v3763_v51, %v3762_v50 }
 0x377   : > { %v3235_v41 = vadd.f32 %v3764_v53, %v3194_v52 }
 0x379   : > { %3240 = vst.msk [vmem:[%s346_s27 + $0x8] sm:$0xff] %vm3238_vm0, %v3235_v41 }
 0x37a PF: > { %s19_s26 = sadd.s32 1, %s4314_s26   ;;  %s4660_s24 = smov %s4310_s25 }
 0x37b   : > { %p16_p4 = scmp.ge.s32.totalorder %s19_s26, 4   ;;  %s4661_s25 = smov %s4663_s28 }
 0x37d   :  { %18 = sbr.rel (!%p16_p4) target bundleno = 3 (0x3), region = 87 }
 0x382   :  { %3271 = vsyncpa [#allocation3], 1 }
 0x383   :  { %3273 = vsyncpa [#allocation3 + $0x1], 1 }
 0x384   :  { %3274 = vsyncpa [#allocation5], 1 }

// kernel: pcn_decoder_forward.3
= control target key start
LH: loop header
LB: loop body
LE: loop exit
PB: predicated region body
PF: predicated region fallthrough
CT: control target
= control target key end

     0   :  { %s8362_s13 = smov 0   ;;  %s8364_s14 = smov 0   ;;  %s10768_s0 = inlined_call_operand.vmem [shape: bf16[2,16,128], index: 0, kind: input, shape index: {}]   ;;  %s10769_s1 = inlined_call_operand.vmem [shape: f32[2,16,3], index: 1, kind: input, shape index: {}]   ;;  %s10770_s2 = inlined_call_operand.vmem [shape: bf16[128,512], index: 2, kind: input, shape index: {}]   ;;  %s10771_s3 = inlined_call_operand.vmem [shape: f32[3,512], index: 3, kind: input, shape index: {}]   ;;  %s10772_s4 = inlined_call_operand.vmem [shape: f32[4,512], index: 4, kind: input, shape index: {}]   ;;  %s10773_s5 = inlined_call_operand.vmem [shape: f32[1,512], index: 5, kind: input, shape index: {}]   ;;  %s10774_s6 = inlined_call_operand.vmem [shape: bf16[512,512], index: 6, kind: input, shape index: {}]   ;;  %s10775_s7 = inlined_call_operand.vmem [shape: f32[1,512], index: 7, kind: input, shape index: {}]   ;;  %s10776_s8 = inlined_call_operand.vmem [shape: bf16[512,3], index: 8, kind: input, shape index: {}]   ;;  %s10777_s9 = inlined_call_operand.vmem [shape: f32[1,3], index: 9, kind: input, shape index: {}]   ;;  %s10778_s10 = inlined_call_operand.vmem [shape: f32[2,4,16,3], index: 10, kind: output, shape index: {}]  }
   0x1   :  { %s8366_s15 = smov 0  }
   0x2 LB: > { %s32_s16 = sadd.s32 1, %s8298_s14  ;;  %p6464_p0 = scmp.ge.s32.totalorder %s8302_s15, 1  ;;  %s8302_s15 = sphi %s8366_s15, %s20_s15   ;;  %s8298_s14 = sphi %s8364_s14, %s10780_s14   ;;  %s8294_s13 = sphi %s8362_s13, %s10779_s13  }
   0x3   : > { %p34_p1 = scmp.ge.s32.totalorder %s32_s16, 2  ;;  %p350_p2 = scmp.lt.s32.totalorder %s8302_s15, 3 }
   0x5   : > { %s10782_s16 = smov (%p34_p1, %s32_s16), 0  ;;  %p351_p3 = pnand %p6464_p0, %p350_p2 }
   0x6   : > { %p406_p4 = scmp.lt.s32.totalorder (!%p351_p3), %s8294_s13, 1 }
   0x7   : > { %354 = sbr.rel (%p351_p3) target bundleno = 1737 (0x6c9), region = 60 }
   0xc   : > { %v7371_v0 = vld [vmem:[%s10770_s2 + $0xe4] ss:$16 sps:$4 sm:$0xff]   ;;  %v7373_v1 = vld [vmem:[%s10770_s2 + $0xec] ss:$16 sps:$4 sm:$0xff]   ;;  %v8304_v2 = vmov 0   ;;  %v8305_v5 = vmov 1  }
   0xd   : > { %692 = vmatprep.mubr.bf16.mxu0 %v8304_v2  ;;  %735 = vmatprep.mubr.bf16.mxu1 %v8304_v2  ;;  %v7375_v3 = vld [vmem:[%s10770_s2 + $0xe0] ss:$16 sps:$4 sm:$0xff]   ;;  %v7376_v4 = vld [vmem:[%s10770_s2 + $0xe8] ss:$16 sps:$4 sm:$0xff]   ;;  %v7377_v6 = vld [vmem:[%s10770_s2 + $0xc4] ss:$16 sps:$4 sm:$0xff]  }
   0xe   : > { %660 = vmatprep.subr.bf16.mxu0 %v7371_v0  ;;  %7368 = vset.pattern.permute.xlu1 %v8305_v5  ;;  %v7379_v7 = vld [vmem:[%s10770_s2 + $0xcc] ss:$16 sps:$4 sm:$0xff]   ;;  %v7381_v8 = vld [vmem:[%s10770_s2 + $0xc0] ss:$16 sps:$4 sm:$0xff]   ;;  %v7382_v9 = vld [vmem:[%s10770_s2 + $0xc8] ss:$16 sps:$4 sm:$0xff]  }
   0xf   : > { %703 = vmatprep.subr.bf16.mxu1 %v7373_v1  ;;  %7367 = vset.pattern.permute.xlu0 %v8304_v2  ;;  %v7383_v10 = vld [vmem:[%s10770_s2 + $0xa4] ss:$16 sps:$4 sm:$0xff]   ;;  %v7385_v11 = vld [vmem:[%s10770_s2 + $0xac] ss:$16 sps:$4 sm:$0xff]   ;;  %v7387_v12 = vld [vmem:[%s10770_s2 + $0xa0] ss:$16 sps:$4 sm:$0xff]  }
  0x10   : > { %661 = vmatpush1.bf16.msra.mxu0 %v7375_v3  ;;  %704 = vmatpush1.bf16.msra.mxu1 %v7376_v4  ;;  %v7388_v13 = vld [vmem:[%s10770_s2 + $0xa8] ss:$16 sps:$4 sm:$0xff]   ;;  %v7389_v14 = vld [vmem:[%s10770_s2 + $0x84] ss:$16 sps:$4 sm:$0xff]   ;;  %v7391_v15 = vld [vmem:[%s10770_s2 + $0x8c] ss:$16 sps:$4 sm:$0xff]  }
  0x11   : > { %662 = vmatprep.subr.bf16.mxu0 %v7377_v6  ;;  %705 = vmatprep.subr.bf16.mxu1 %v7379_v7  ;;  %v7393_v16 = vld [vmem:[%s10770_s2 + $0x80] ss:$16 sps:$4 sm:$0xff]   ;;  %v7394_v17 = vld [vmem:[%s10770_s2 + $0x88] ss:$16 sps:$4 sm:$0xff]   ;;  %v7395_v18 = vld [vmem:[%s10770_s2 + $0x64] ss:$16 sps:$4 sm:$0xff]  }
  0x12   : > { %v7397_v19 = vld [vmem:[%s10770_s2 + $0x6c] ss:$16 sps:$4 sm:$0xff]   ;;  %s10784_s13 = smov (!%p406_p4, %s8294_s13), 1  ;;  %v7399_v20 = vld [vmem:[%s10770_s2 + $0x60] ss:$16 sps:$4 sm:$0xff]   ;;  %v8306_v39 = vmov 2  }
  0x13   : > { %v7400_v21 = vld [vmem:[%s10770_s2 + $0x68] ss:$16 sps:$4 sm:$0xff]   ;;  %v7401_v22 = vld [vmem:[%s10770_s2 + $0x44] ss:$16 sps:$4 sm:$0xff]   ;;  %s7162_s27 = sshll.u32 %s10784_s13, 4  ;;  %s7161_s30 = sshll.u32 %s10784_s13, 3 }
  0x14   : > { %663 = vmatpush1.bf16.msra.mxu0 %v7381_v8  ;;  %706 = vmatpush1.bf16.msra.mxu1 %v7382_v9  ;;  %v7403_v23 = vld [vmem:[%s10770_s2 + $0x4c] ss:$16 sps:$4 sm:$0xff]   ;;  %v7405_v24 = vld [vmem:[%s10770_s2 + $0x40] ss:$16 sps:$4 sm:$0xff]   ;;  %s8460_s19 = scalar_lea.vmem %s10769_s1, %s7162_s27  ;;  %v7406_v25 = vld [vmem:[%s10770_s2 + $0x48] ss:$16 sps:$4 sm:$0xff]   ;;  %s413_s26 = scalar_lea.vmem %s10768_s0, %s7161_s30 }
  0x15   : > { %664 = vmatprep.subr.bf16.mxu0 %v7383_v10  ;;  %707 = vmatprep.subr.bf16.mxu1 %v7385_v11  ;;  %v7407_v26 = vld [vmem:[%s10770_s2 + $0x24] ss:$16 sps:$4 sm:$0xff]   ;;  %v7409_v27 = vld [vmem:[%s10770_s2 + $0x2c] ss:$16 sps:$4 sm:$0xff]   ;;  %v7411_v28 = vld [vmem:[%s10770_s2 + $0x20] ss:$16 sps:$4 sm:$0xff]  }
  0x16   : > { %v438_v29 = vld [vmem:[%s8460_s19] sm:$0xff]  ;;  %v7412_v30 = vld [vmem:[%s10770_s2 + $0x28] ss:$16 sps:$4 sm:$0xff]   ;;  %v7415_v33 = vld [vmem:[%s10770_s2 + $0xc] ss:$16 sps:$4 sm:$0xff]   ;;  %s7163_s12 = sshll.u32 %s10784_s13, 6 }
  0x17   : > { %789 = vperm.xlu1 %7368, %v438_v29   ;;  %749 = vperm.xlu0 %7367, %v438_v29   ;;  %v439_v31 = vld [vmem:[%s8460_s19 + $0x8] sm:$0xff]  ;;  %v7413_v32 = vld [vmem:[%s10770_s2 + $0x4] ss:$16 sps:$4 sm:$0xff]   ;;  %v7417_v34 = vld [vmem:[%s10770_s2] ss:$16 sps:$4 sm:$0xff]   ;;  %s9691_s22 = scalar_lea.vmem %s10778_s10, %s7163_s12  ;;  %vm2251_vm0 = vcmask 23552  }
  0x18   : > { %665 = vmatpush1.bf16.msra.mxu0 %v7387_v12  ;;  %708 = vmatpush1.bf16.msra.mxu1 %v7388_v13  ;;  %v7418_v35 = vld [vmem:[%s10770_s2 + $0x8] ss:$16 sps:$4 sm:$0xff]   ;;  %v7419_v36 = vld [vmem:[%s413_s26] sm:$0xff]  }
  0x19   : > { %666 = vmatprep.subr.bf16.mxu0 %v7389_v14  ;;  %709 = vmatprep.subr.bf16.mxu1 %v7391_v15  ;;  %v7422_v37 = vld [vmem:[%s10774_s6 + $0xe4] ss:$16 sps:$4 sm:$0xff]   ;;  %v7420_v40 = vld [vmem:[%s10774_s6 + $0xe0] ss:$16 sps:$4 sm:$0xff]  }
  0x1a   : > { %v7425_v38 = vld [vmem:[%s10774_s6 + $0x2e4] ss:$16 sps:$4 sm:$0xff]   ;;  %v7423_v41 = vld [vmem:[%s10774_s6 + $0x2e0] ss:$16 sps:$4 sm:$0xff]  }
  0x1b   : > { %793 = vperm.xlu1 %7368, %v439_v31   ;;  %754 = vperm.xlu0 %7367, %v439_v31   ;;  %v7428_v42 = vld [vmem:[%s10774_s6 + $0xc4] ss:$16 sps:$4 sm:$0xff]   ;;  %v7426_v44 = vld [vmem:[%s10774_s6 + $0xc0] ss:$16 sps:$4 sm:$0xff]  }
  0x1c   : > { %667 = vmatpush1.bf16.msra.mxu0 %v7393_v16  ;;  %710 = vmatpush1.bf16.msra.mxu1 %v7394_v17  ;;  %v7431_v43 = vld [vmem:[%s10774_s6 + $0x2c4] ss:$16 sps:$4 sm:$0xff]   ;;  %v7429_v45 = vld [vmem:[%s10774_s6 + $0x2c0] ss:$16 sps:$4 sm:$0xff]  }
  0x1d   : > { %668 = vmatprep.subr.bf16.mxu0 %v7395_v18  ;;  %711 = vmatprep.subr.bf16.mxu1 %v7397_v19  ;;  %v7434_v46 = vld [vmem:[%s10774_s6 + $0xa4] ss:$16 sps:$4 sm:$0xff]   ;;  %v7432_v48 = vld [vmem:[%s10774_s6 + $0xa0] ss:$16 sps:$4 sm:$0xff]  }
  0x1e   : > { %v7437_v47 = vld [vmem:[%s10774_s6 + $0x2a4] ss:$16 sps:$4 sm:$0xff]   ;;  %v7435_v49 = vld [vmem:[%s10774_s6 + $0x2a0] ss:$16 sps:$4 sm:$0xff]  }
  0x1f   : > { %7370 = vset.pattern.permute.xlu1 %v8306_v39  ;;  %7369 = vset.pattern.permute.xlu0 %v8306_v39  ;;  %v7440_v50 = vld [vmem:[%s10774_s6 + $0x84] ss:$16 sps:$4 sm:$0xff]   ;;  %v7438_v52 = vld [vmem:[%s10774_s6 + $0x80] ss:$16 sps:$4 sm:$0xff]   ;;  %v7521_v39 = vld [vmem:[%s10774_s6 + $0x2ec] ss:$16 sps:$4 sm:$0xff]  }
  0x20   : > { %669 = vmatpush1.bf16.msra.mxu0 %v7399_v20  ;;  %712 = vmatpush1.bf16.msra.mxu1 %v7400_v21  ;;  %v7443_v51 = vld [vmem:[%s10774_s6 + $0x284] ss:$16 sps:$4 sm:$0xff]   ;;  %v7441_v53 = vld [vmem:[%s10774_s6 + $0x280] ss:$16 sps:$4 sm:$0xff]  }
  0x21   : > { %670 = vmatprep.subr.bf16.mxu0 %v7401_v22  ;;  %713 = vmatprep.subr.bf16.mxu1 %v7403_v23  ;;  %v7446_v54 = vld [vmem:[%s10774_s6 + $0x64] ss:$16 sps:$4 sm:$0xff]   ;;  %v7444_v56 = vld [vmem:[%s10774_s6 + $0x60] ss:$16 sps:$4 sm:$0xff]  }
  0x22   : > { %840 = vperm.xlu1 %7370, %v439_v31   ;;  %836 = vperm.xlu0 %7369, %v438_v29   ;;  %v7449_v55 = vld [vmem:[%s10774_s6 + $0x264] ss:$16 sps:$4 sm:$0xff]   ;;  %v7447_v57 = vld [vmem:[%s10774_s6 + $0x260] ss:$16 sps:$4 sm:$0xff]  }
  0x23   : > { %v7452_v58 = vld [vmem:[%s10774_s6 + $0x44] ss:$16 sps:$4 sm:$0xff]   ;;  %v7450_v60 = vld [vmem:[%s10774_s6 + $0x40] ss:$16 sps:$4 sm:$0xff]  }
  0x24   : > { %671 = vmatpush1.bf16.msra.mxu0 %v7405_v24  ;;  %714 = vmatpush1.bf16.msra.mxu1 %v7406_v25  ;;  %v7455_v59 = vld [vmem:[%s10774_s6 + $0x244] ss:$16 sps:$4 sm:$0xff]   ;;  %v7453_v61 = vld [vmem:[%s10774_s6 + $0x240] ss:$16 sps:$4 sm:$0xff]  }
  0x25   : > { %672 = vmatprep.subr.bf16.mxu0 %v7407_v26  ;;  %715 = vmatprep.subr.bf16.mxu1 %v7409_v27  ;;  %v7458_v62 = vld [vmem:[%s10774_s6 + $0x24] ss:$16 sps:$4 sm:$0xff]   ;;  %v7456_v0 = vld [vmem:[%s10774_s6 + $0x20] ss:$16 sps:$4 sm:$0xff]  }
  0x26   : > { %v7461_v63 = vld [vmem:[%s10774_s6 + $0x224] ss:$16 sps:$4 sm:$0xff]   ;;  %v7459_v1 = vld [vmem:[%s10774_s6 + $0x220] ss:$16 sps:$4 sm:$0xff]  }
  0x27   : > { %v7464_v2 = vld [vmem:[%s10774_s6 + $0x4] ss:$16 sps:$4 sm:$0xff]   ;;  %v7462_v4 = vld [vmem:[%s10774_s6] ss:$16 sps:$4 sm:$0xff]  }
  0x28   : > { %673 = vmatpush1.bf16.msra.mxu0 %v7411_v28  ;;  %716 = vmatpush1.bf16.msra.mxu1 %v7412_v30  ;;  %v7467_v3 = vld [vmem:[%s10774_s6 + $0x204] ss:$16 sps:$4 sm:$0xff]   ;;  %v7465_v5 = vld [vmem:[%s10774_s6 + $0x200] ss:$16 sps:$4 sm:$0xff]  }
  0x29   : > { %674 = vmatprep.subr.bf16.mxu0 %v7413_v32  ;;  %717 = vmatprep.subr.bf16.mxu1 %v7415_v33  ;;  %v7470_v6 = vld [vmem:[%s10774_s6 + $0x1e4] ss:$16 sps:$4 sm:$0xff]   ;;  %v7468_v8 = vld [vmem:[%s10774_s6 + $0x1e0] ss:$16 sps:$4 sm:$0xff]  }
  0x2a   : > { %v7473_v7 = vld [vmem:[%s10774_s6 + $0x3e4] ss:$16 sps:$4 sm:$0xff]   ;;  %v7471_v9 = vld [vmem:[%s10774_s6 + $0x3e0] ss:$16 sps:$4 sm:$0xff]  }
  0x2b   : > { %v7476_v10 = vld [vmem:[%s10774_s6 + $0x1c4] ss:$16 sps:$4 sm:$0xff]   ;;  %v7474_v12 = vld [vmem:[%s10774_s6 + $0x1c0] ss:$16 sps:$4 sm:$0xff]  }
  0x2c   : > { %675 = vmatpush1.bf16.msra.mxu0 %v7417_v34  ;;  %718 = vmatpush1.bf16.msra.mxu1 %v7418_v35  ;;  %v7479_v11 = vld [vmem:[%s10774_s6 + $0x3c4] ss:$16 sps:$4 sm:$0xff]   ;;  %v7477_v13 = vld [vmem:[%s10774_s6 + $0x3c0] ss:$16 sps:$4 sm:$0xff]  }
  0x2d   : > { %1720 = vmatprep.subr.bf16.mxu0 %v7422_v37  ;;  %1763 = vmatprep.subr.bf16.mxu1 %v7425_v38  ;;  %v7482_v14 = vld [vmem:[%s10774_s6 + $0x1a4] ss:$16 sps:$4 sm:$0xff]   ;;  %v7480_v16 = vld [vmem:[%s10774_s6 + $0x1a0] ss:$16 sps:$4 sm:$0xff]   ;;  %v7518_v38 = vld [vmem:[%s10774_s6 + $0xec] ss:$16 sps:$4 sm:$0xff]  }
  0x2e   : > { %v7485_v15 = vld [vmem:[%s10774_s6 + $0x3a4] ss:$16 sps:$4 sm:$0xff]   ;;  %v7483_v17 = vld [vmem:[%s10774_s6 + $0x3a0] ss:$16 sps:$4 sm:$0xff]  }
  0x2f   : > { %693 = vmatmul.mubr.bf16.vlgmr.msra.gmra.mxu0 %v7419_v36  ;;  %736 = vmatmul.mubr.bf16.vlgmr.msra.gmra.mxu1 %v7419_v36  ;;  %v7488_v18 = vld [vmem:[%s10774_s6 + $0x184] ss:$16 sps:$4 sm:$0xff]   ;;  %v7486_v20 = vld [vmem:[%s10774_s6 + $0x180] ss:$16 sps:$4 sm:$0xff]  }
  0x30   : > { %1721 = vmatpush1.bf16.msra.mxu0 %v7420_v40  ;;  %1764 = vmatpush1.bf16.msra.mxu1 %v7423_v41  ;;  %v7491_v19 = vld [vmem:[%s10774_s6 + $0x384] ss:$16 sps:$4 sm:$0xff]   ;;  %v7489_v21 = vld [vmem:[%s10774_s6 + $0x380] ss:$16 sps:$4 sm:$0xff]   ;;  %v474_v40 = vlaneseq }
  0x31   : > { %1722 = vmatprep.subr.bf16.mxu0 %v7428_v42  ;;  %1765 = vmatprep.subr.bf16.mxu1 %v7431_v43  ;;  %v7494_v22 = vld [vmem:[%s10774_s6 + $0x164] ss:$16 sps:$4 sm:$0xff]   ;;  %v7492_v24 = vld [vmem:[%s10774_s6 + $0x160] ss:$16 sps:$4 sm:$0xff]  }
  0x32   : > { %v7497_v23 = vld [vmem:[%s10774_s6 + $0x364] ss:$16 sps:$4 sm:$0xff]   ;;  %v7495_v25 = vld [vmem:[%s10774_s6 + $0x360] ss:$16 sps:$4 sm:$0xff]   ;;  %v475_v41 = vshrl.u32 %v474_v40, 7 }
  0x33   : > { %v7500_v26 = vld [vmem:[%s10774_s6 + $0x144] ss:$16 sps:$4 sm:$0xff]   ;;  %v7498_v28 = vld [vmem:[%s10774_s6 + $0x140] ss:$16 sps:$4 sm:$0xff]  }
  0x34   : > { %1723 = vmatpush1.bf16.msra.mxu0 %v7426_v44  ;;  %1766 = vmatpush1.bf16.msra.mxu1 %v7429_v45  ;;  %v7503_v27 = vld [vmem:[%s10774_s6 + $0x344] ss:$16 sps:$4 sm:$0xff]   ;;  %v7501_v29 = vld [vmem:[%s10774_s6 + $0x340] ss:$16 sps:$4 sm:$0xff]   ;;  %v8692_v43 = vsub.s32 0, %v475_v41  ;;  %v8697_v45 = vsub.s32 1, %v475_v41 }
  0x35   : > { %1724 = vmatprep.subr.bf16.mxu0 %v7434_v46  ;;  %1767 = vmatprep.subr.bf16.mxu1 %v7437_v47  ;;  %v7506_v30 = vld [vmem:[%s10774_s6 + $0x124] ss:$16 sps:$4 sm:$0xff]   ;;  %v7504_v32 = vld [vmem:[%s10774_s6 + $0x120] ss:$16 sps:$4 sm:$0xff]   ;;  %v8699_v46 = vsub.s32 2, %v475_v41  ;;  %v8701_v47 = vsub.s32 3, %v475_v41 }
  0x36   : > { %v7509_v31 = vld [vmem:[%s10774_s6 + $0x324] ss:$16 sps:$4 sm:$0xff]   ;;  %v7507_v33 = vld [vmem:[%s10774_s6 + $0x320] ss:$16 sps:$4 sm:$0xff]  }
  0x37   : > { %v7510_v34 = vld [vmem:[%s10774_s6 + $0x100] ss:$16 sps:$4 sm:$0xff]   ;;  %v7512_v35 = vld [vmem:[%s10774_s6 + $0x104] ss:$16 sps:$4 sm:$0xff]  }
  0x38   : > { %1725 = vmatpush1.bf16.msra.mxu0 %v7432_v48  ;;  %1768 = vmatpush1.bf16.msra.mxu1 %v7435_v49  ;;  %v7513_v36 = vld [vmem:[%s10774_s6 + $0x300] ss:$16 sps:$4 sm:$0xff]   ;;  %v7515_v37 = vld [vmem:[%s10774_s6 + $0x304] ss:$16 sps:$4 sm:$0xff]  }
  0x39   : > { %1726 = vmatprep.subr.bf16.mxu0 %v7440_v50  ;;  %1769 = vmatprep.subr.bf16.mxu1 %v7443_v51  ;;  %v6504_v44 = vld [vmem:[%s10771_s3 + $0x1] ss:$4 sm:$0xf]  ;;  %v746_v49 = vld [vmem:[%s10771_s3] ss:$4 sm:$0xf] }
  0x3a   : > { %v6505_v50 = vld [vmem:[%s10771_s3 + $0x2] ss:$4 sm:$0xf] }
  0x3b   : > { %v472_v51 = vld [vmem:[%s10773_s5] sm:$0xf] }
  0x3c   : > { %1727 = vmatpush1.bf16.msra.mxu0 %v7438_v52  ;;  %1770 = vmatpush1.bf16.msra.mxu1 %v7441_v53  ;;  %v800_v52 = vrot.slane %v6504_v44, %v8692_v43  ;;  %v804_v53 = vrot.slane %v6504_v44, %v8697_v45 }
  0x3d   : > { %1728 = vmatprep.subr.bf16.mxu0 %v7446_v54  ;;  %1771 = vmatprep.subr.bf16.mxu1 %v7449_v55  ;;  %v808_v54 = vrot.slane %v6504_v44, %v8699_v46  ;;  %v812_v55 = vrot.slane %v6504_v44, %v8701_v47 }
  0x40   : > { %1729 = vmatpush1.bf16.msra.mxu0 %v7444_v56  ;;  %1772 = vmatpush1.bf16.msra.mxu1 %v7447_v57  ;;  %v761_v57 = vrot.slane %v746_v49, %v8692_v43 }
  0x41   : > { %1730 = vmatprep.subr.bf16.mxu0 %v7452_v58  ;;  %1773 = vmatprep.subr.bf16.mxu1 %v7455_v59  ;;  %v765_v58 = vrot.slane %v746_v49, %v8697_v45  ;;  %v769_v59 = vrot.slane %v746_v49, %v8699_v46 }
  0x44   : > { %1731 = vmatpush1.bf16.msra.mxu0 %v7450_v60  ;;  %1774 = vmatpush1.bf16.msra.mxu1 %v7453_v61  ;;  %v773_v60 = vrot.slane %v746_v49, %v8701_v47 }
  0x45   : > { %1732 = vmatprep.subr.bf16.mxu0 %v7458_v62  ;;  %1775 = vmatprep.subr.bf16.mxu1 %v7461_v63  ;;  %v847_v62 = vrot.slane %v6505_v50, %v8692_v43  ;;  %v851_v63 = vrot.slane %v6505_v50, %v8697_v45 }
  0x48   : > { %1733 = vmatpush1.bf16.msra.mxu0 %v7456_v0  ;;  %1776 = vmatpush1.bf16.msra.mxu1 %v7459_v1  ;;  %v855_v0 = vrot.slane %v6505_v50, %v8699_v46  ;;  %v859_v1 = vrot.slane %v6505_v50, %v8701_v47 }
  0x49   : > { %1734 = vmatprep.subr.bf16.mxu0 %v7464_v2  ;;  %1777 = vmatprep.subr.bf16.mxu1 %v7467_v3  ;;  %v8725_v2 = vrot.slane %v472_v51, %v8692_v43  ;;  %v8728_v3 = vrot.slane %v472_v51, %v8699_v46 }
  0x4c   : > { %1735 = vmatpush1.bf16.msra.mxu0 %v7462_v4  ;;  %1778 = vmatpush1.bf16.msra.mxu1 %v7465_v5  ;;  %v888_v4 = vld [vmem:[%s10772_s4] ss:$4 sm:$0xf] }
  0x4d   : > { %1736 = vmatprep.subr.bf16.mxu0 %v7470_v6  ;;  %1779 = vmatprep.subr.bf16.mxu1 %v7473_v7  ;;  %v897_v50 = vrot.slane %v888_v4, %v8697_v45 }
  0x50   : > { %1737 = vmatpush2.bf16.msra.mxu0 %v7468_v8  ;;  %1780 = vmatpush2.bf16.msra.mxu1 %v7471_v9 }
  0x51   : > { %1738 = vmatprep.subr.bf16.mxu0 %v7476_v10  ;;  %1781 = vmatprep.subr.bf16.mxu1 %v7479_v11 }
  0x54   : > { %1739 = vmatpush2.bf16.msra.mxu0 %v7474_v12  ;;  %1782 = vmatpush2.bf16.msra.mxu1 %v7477_v13 }
  0x55   : > { %1740 = vmatprep.subr.bf16.mxu0 %v7482_v14  ;;  %1783 = vmatprep.subr.bf16.mxu1 %v7485_v15 }
  0x58   : > { %1741 = vmatpush2.bf16.msra.mxu0 %v7480_v16  ;;  %1784 = vmatpush2.bf16.msra.mxu1 %v7483_v17 }
  0x59   : > { %1742 = vmatprep.subr.bf16.mxu0 %v7488_v18  ;;  %1785 = vmatprep.subr.bf16.mxu1 %v7491_v19 }
  0x5c   : > { %1743 = vmatpush2.bf16.msra.mxu0 %v7486_v20  ;;  %1786 = vmatpush2.bf16.msra.mxu1 %v7489_v21 }
  0x5d   : > { %1744 = vmatprep.subr.bf16.mxu0 %v7494_v22  ;;  %1787 = vmatprep.subr.bf16.mxu1 %v7497_v23  ;;  %v8734_v23 = vrot.slane %v472_v51, %v8697_v45 }
  0x60   : > { %1745 = vmatpush2.bf16.msra.mxu0 %v7492_v24  ;;  %1788 = vmatpush2.bf16.msra.mxu1 %v7495_v25  ;;  %v8737_v24 = vrot.slane %v472_v51, %v8701_v47  ;;  %v8740_v25 = vrot.slane %v888_v4, %v8692_v43  ;;  %v905_v51 = vrot.slane %v888_v4, %v8701_v47 }
  0x61   : > { %1746 = vmatprep.subr.bf16.mxu0 %v7500_v26  ;;  %1789 = vmatprep.subr.bf16.mxu1 %v7503_v27  ;;  %v8743_v26 = vrot.slane %v888_v4, %v8699_v46 }
  0x64   : > { %1747 = vmatpush2.bf16.msra.mxu0 %v7498_v28  ;;  %1790 = vmatpush2.bf16.msra.mxu1 %v7501_v29 }
  0x65   : > { %1748 = vmatprep.subr.bf16.mxu0 %v7506_v30  ;;  %1791 = vmatprep.subr.bf16.mxu1 %v7509_v31  ;;  %v6667_v31 = vld [vmem:[%s10772_s4 + $0x1] ss:$4 sm:$0xf] }
  0x68   : > { %1749 = vmatpush2.bf16.msra.mxu0 %v7504_v32  ;;  %1792 = vmatpush2.bf16.msra.mxu1 %v7507_v33 }
  0x69   : > { %1750 = vmatprep.subr.bf16.mxu0 %v7512_v35  ;;  %1793 = vmatprep.subr.bf16.mxu1 %v7515_v37 }
  0x6c   : > { %1751 = vmatpush2.bf16.msra.mxu0 %v7510_v34  ;;  %1794 = vmatpush2.bf16.msra.mxu1 %v7513_v36 }
  0x6d   : > { %1806 = vmatprep.subr.bf16.mxu0 %v7518_v38  ;;  %1849 = vmatprep.subr.bf16.mxu1 %v7521_v39 }
  0x92   : > { %v750_v42 = vpop.permute.xlu0 %749  ;;  %v790_v48 = vpop.permute.xlu1 %789 }
  0x93   : > { %v817_v5 = vmul.f32 %v800_v52, %v790_v48  ;;  %v818_v6 = vmul.f32 %v804_v53, %v790_v48  ;;  %v819_v7 = vmul.f32 %v808_v54, %v790_v48  ;;  %v820_v8 = vmul.f32 %v812_v55, %v790_v48 }
  0x94   : > { %v778_v9 = vmul.f32 %v761_v57, %v750_v42  ;;  %v779_v10 = vmul.f32 %v765_v58, %v750_v42  ;;  %v780_v11 = vmul.f32 %v769_v59, %v750_v42  ;;  %v781_v12 = vmul.f32 %v773_v60, %v750_v42 }
  0x96   : > { %v755_v56 = vpop.permute.xlu0 %754  ;;  %v794_v61 = vpop.permute.xlu1 %793  ;;  %v825_v29 = vadd.f32 %v817_v5, %v778_v9  ;;  %v827_v30 = vadd.f32 %v819_v7, %v780_v11  ;;  %v826_v32 = vadd.f32 %v818_v6, %v779_v10  ;;  %v828_v33 = vadd.f32 %v820_v8, %v781_v12 }
  0x97   : > { %v821_v13 = vmul.f32 %v800_v52, %v794_v61  ;;  %v823_v14 = vmul.f32 %v808_v54, %v794_v61  ;;  %v782_v15 = vmul.f32 %v761_v57, %v755_v56  ;;  %v784_v16 = vmul.f32 %v769_v59, %v755_v56  ;;  %v6831_v52 = vld [vmem:[%s10772_s4 + $0x2] ss:$4 sm:$0xf] }
  0x98   : > { %v822_v18 = vmul.f32 %v804_v53, %v794_v61  ;;  %v824_v19 = vmul.f32 %v812_v55, %v794_v61  ;;  %v783_v20 = vmul.f32 %v765_v58, %v755_v56  ;;  %v785_v21 = vmul.f32 %v773_v60, %v755_v56 }
  0x99   : > { %v829_v34 = vadd.f32 %v821_v13, %v782_v15  ;;  %v831_v35 = vadd.f32 %v823_v14, %v784_v16  ;;  %v2264_v55 = vrot.slane %v6667_v31, %v8697_v45  ;;  %v2260_v56 = vrot.slane %v6667_v31, %v8692_v43 }
  0x9a   : > { %v830_v38 = vadd.f32 %v822_v18, %v783_v20  ;;  %v832_v39 = vadd.f32 %v824_v19, %v785_v21  ;;  %v8756_v57 = vrot.slane %v6667_v31, %v8701_v47  ;;  %v8759_v58 = vrot.slane %v6667_v31, %v8699_v46 }
  0x9b   : > { %v8770_v13 = vrot.slane %v6831_v52, %v8697_v45  ;;  %v8773_v14 = vrot.slane %v6831_v52, %v8692_v43  ;;  %v8776_v15 = vrot.slane %v6831_v52, %v8701_v47  ;;  %v8779_v16 = vrot.slane %v6831_v52, %v8699_v46 }
  0x9d   : > { %v837_v17 = vpop.permute.xlu0 %836  ;;  %v841_v22 = vpop.permute.xlu1 %840 }
  0x9e   : > { %v864_v27 = vmul.f32 %v847_v62, %v837_v17  ;;  %v866_v28 = vmul.f32 %v855_v0, %v837_v17  ;;  %v868_v36 = vmul.f32 %v847_v62, %v841_v22  ;;  %v870_v37 = vmul.f32 %v855_v0, %v841_v22 }
  0x9f   : > { %v869_v40 = vmul.f32 %v851_v63, %v841_v22  ;;  %v871_v41 = vmul.f32 %v859_v1, %v841_v22  ;;  %v865_v42 = vmul.f32 %v851_v63, %v837_v17  ;;  %v867_v44 = vmul.f32 %v859_v1, %v837_v17 }
  0xa0   : > { %v872_v48 = vadd.f32 %v864_v27, %v825_v29  ;;  %v874_v49 = vadd.f32 %v866_v28, %v827_v30  ;;  %v876_v61 = vadd.f32 %v868_v36, %v829_v34  ;;  %v878_v62 = vadd.f32 %v870_v37, %v831_v35 }
  0xa1   : > { %v873_v0 = vadd.f32 %v865_v42, %v826_v32  ;;  %v875_v4 = vadd.f32 %v867_v44, %v828_v33  ;;  %v877_v5 = vadd.f32 %v869_v40, %v830_v38  ;;  %v879_v6 = vadd.f32 %v871_v41, %v832_v39 }
  0xef   : > { %v694_v53 = vpop.f32.mrf.mxu0  ;;  %v737_v54 = vpop.f32.mrf.mxu1 }
  0xf0   : > { %v695_v59 = vadd.f32 %v694_v53, %v8725_v2  ;;  %v738_v60 = vadd.f32 %v737_v54, %v8728_v3 }
  0xf1   : > { %v696_v63 = vpop.f32.mrf.mxu0  ;;  %v739_v1 = vpop.f32.mrf.mxu1 }
  0xf2   : > { %v8763_v7 = vadd.f32 %v872_v48, %v695_v59  ;;  %v8765_v8 = vadd.f32 %v874_v49, %v738_v60  ;;  %v697_v9 = vadd.f32 %v696_v63, %v8734_v23  ;;  %v740_v10 = vadd.f32 %v739_v1, %v8737_v24 }
  0xf3   : > { %v698_v11 = vpop.f32.mrf.mxu0  ;;  %v741_v12 = vpop.f32.mrf.mxu1 }
  0xf4   : > { %v8781_v17 = vadd.f32 %v873_v0, %v697_v9  ;;  %v8783_v18 = vadd.f32 %v875_v4, %v740_v10  ;;  %v699_v19 = vadd.f32 %v698_v11, %v8725_v2  ;;  %v742_v20 = vadd.f32 %v741_v12, %v8728_v3 }
  0xf5   : > { %v700_v21 = vpop.f32.mrf.mxu0  ;;  %v743_v22 = vpop.f32.mrf.mxu1  ;;  %v910_v27 = vadd.f32 %v8740_v25, %v8763_v7  ;;  %v912_v28 = vadd.f32 %v8743_v26, %v8765_v8  ;;  %v2277_v29 = vadd.f32 %v2260_v56, %v8763_v7  ;;  %v8794_v30 = vadd.f32 %v8759_v58, %v8765_v8 }
  0xf6   : > { %v8796_v31 = vadd.f32 %v876_v61, %v699_v19  ;;  %v8798_v32 = vadd.f32 %v878_v62, %v742_v20  ;;  %v701_v2 = vadd.f32 %v700_v21, %v8734_v23  ;;  %v744_v3 = vadd.f32 %v743_v22, %v8737_v24  ;;  %v7522_v20 = vld [vmem:[%s10774_s6 + $0xc8] ss:$16 sps:$4 sm:$0xff]  }
  0xf7   : > { %v911_v33 = vadd.f32 %v897_v50, %v8781_v17  ;;  %v913_v34 = vadd.f32 %v905_v51, %v8783_v18  ;;  %v918_v35 = vmax.f32 %v910_v27, 0.0  ;;  %v920_v36 = vmax.f32 %v912_v28, 0.0  ;;  %v7525_v21 = vld [vmem:[%s10774_s6 + $0x2c8] ss:$16 sps:$4 sm:$0xff]  }
  0xf8   : > { %v8804_v37 = vadd.f32 %v877_v5, %v701_v2  ;;  %v8806_v38 = vadd.f32 %v879_v6, %v744_v3  ;;  %v914_v39 = vadd.f32 %v8740_v25, %v8796_v31  ;;  %v916_v40 = vadd.f32 %v8743_v26, %v8798_v32  ;;  %v7516_v26 = vld [vmem:[%s10774_s6 + $0xe8] ss:$16 sps:$4 sm:$0xff]   ;;  %v7524_v5 = vld [vmem:[%s10774_s6 + $0xcc] ss:$16 sps:$4 sm:$0xff]  }
  0xf9   : > { %v919_v41 = vmax.f32 %v911_v33, 0.0  ;;  %v921_v23 = vmax.f32 %v913_v34, 0.0  ;;  %v2278_v24 = vadd.f32 %v2264_v55, %v8781_v17  ;;  %v2281_v42 = vadd.f32 %v2260_v56, %v8796_v31  ;;  %v7519_v56 = vld [vmem:[%s10774_s6 + $0x2e8] ss:$16 sps:$4 sm:$0xff]   ;;  %v7527_v6 = vld [vmem:[%s10774_s6 + $0x2cc] ss:$16 sps:$4 sm:$0xff]  }
  0xfa   : > { %v915_v44 = vadd.f32 %v897_v50, %v8804_v37  ;;  %v917_v48 = vadd.f32 %v905_v51, %v8806_v38  ;;  %v922_v49 = vmax.f32 %v914_v39, 0.0  ;;  %v924_v52 = vmax.f32 %v916_v40, 0.0  ;;  %v6995_v33 = vld [vmem:[%s10772_s4 + $0x3] ss:$4 sm:$0xf] }
  0xfb   : > { %v2282_v53 = vadd.f32 %v2264_v55, %v8804_v37  ;;  %v2286_v54 = vmax.f32 %v2278_v24, 0.0  ;;  %v2285_v59 = vmax.f32 %v2277_v29, 0.0  ;;  %v2289_v25 = vmax.f32 %v2281_v42, 0.0  ;;  %v7530_v29 = vld [vmem:[%s10774_s6 + $0xac] ss:$16 sps:$4 sm:$0xff]  }
  0xfc   : > { %v923_v60 = vmax.f32 %v915_v44, 0.0  ;;  %v925_v61 = vmax.f32 %v917_v48, 0.0  ;;  %v8823_v50 = vpack.c.bf16 %v922_v49, %v918_v35  ;;  %v8825_v51 = vpack.c.bf16 %v924_v52, %v920_v36  ;;  %v7528_v24 = vld [vmem:[%s10774_s6 + $0xa8] ss:$16 sps:$4 sm:$0xff]   ;;  %v7539_v52 = vld [vmem:[%s10774_s6 + $0x28c] ss:$16 sps:$4 sm:$0xff]  }
  0xfd   : > { %v2290_v62 = vmax.f32 %v2282_v53, 0.0  ;;  %v8827_v63 = vpack.c.bf16 %v2289_v25, %v2285_v59  ;;  %v2280_v55 = vadd.f32 %v8756_v57, %v8783_v18  ;;  %v2284_v0 = vadd.f32 %v8756_v57, %v8806_v38  ;;  %v7531_v42 = vld [vmem:[%s10774_s6 + $0x2a8] ss:$16 sps:$4 sm:$0xff]  }
  0xfe   : > { %v927_v1 = vpack.c.bf16 %v923_v60, %v919_v41  ;;  %v929_v4 = vpack.c.bf16 %v925_v61, %v921_v23  ;;  %v2283_v9 = vadd.f32 %v8759_v58, %v8798_v32  ;;  %v2287_v10 = vmax.f32 %v8794_v30, 0.0  ;;  %v7533_v30 = vld [vmem:[%s10774_s6 + $0x2ac] ss:$16 sps:$4 sm:$0xff]  }
  0xff   : > { %v8842_v11 = vpack.c.bf16 %v2290_v62, %v2286_v54  ;;  %v2288_v12 = vmax.f32 %v2280_v55, 0.0  ;;  %v2292_v19 = vmax.f32 %v2284_v0, 0.0  ;;  %v3645_v57 = vadd.f32 %v8770_v13, %v8781_v17  ;;  %v7534_v0 = vld [vmem:[%s10774_s6 + $0x88] ss:$16 sps:$4 sm:$0xff]  }
 0x100   : > { %1752 = vmatprep.mubr.bf16.mxu0 %v927_v1  ;;  %1795 = vmatprep.mubr.bf16.mxu1 %v929_v4  ;;  %v2291_v58 = vmax.f32 %v2283_v9, 0.0  ;;  %v3649_v22 = vadd.f32 %v8770_v13, %v8804_v37  ;;  %v3644_v27 = vadd.f32 %v8773_v14, %v8763_v7  ;;  %v3648_v28 = vadd.f32 %v8773_v14, %v8796_v31 }
 0x101   : > { %1753 = vmatmul.mubr.bf16.vlgmr.msra.gmra.mxu0 %v8823_v50  ;;  %1796 = vmatmul.mubr.bf16.vlgmr.msra.gmra.mxu1 %v8825_v51  ;;  %v8866_v2 = vpack.c.bf16 %v2292_v19, %v2288_v12  ;;  %v3653_v13 = vmax.f32 %v3645_v57, 0.0  ;;  %v3647_v3 = vadd.f32 %v8776_v15, %v8783_v18  ;;  %v3651_v14 = vadd.f32 %v8776_v15, %v8806_v38  ;;  %v8930_v19 = vld [vmem:[%s10774_s6 + $0x68] ss:$16 sps:$4 sm:$0xff]  }
 0x102   : > { %1807 = vmatpush1.bf16.msra.mxu0 %v7516_v26  ;;  %1850 = vmatpush1.bf16.msra.mxu1 %v7519_v56  ;;  %v8875_v34 = vpack.c.bf16 %v2291_v58, %v2287_v10  ;;  %v3657_v35 = vmax.f32 %v3649_v22, 0.0  ;;  %v3652_v36 = vmax.f32 %v3644_v27, 0.0  ;;  %v3656_v39 = vmax.f32 %v3648_v28, 0.0  ;;  %v7543_v57 = vld [vmem:[%s10774_s6 + $0x268] ss:$16 sps:$4 sm:$0xff]  }
 0x103   : > { %1838 = vmatprep.mubr.bf16.mxu0 %v927_v1  ;;  %1881 = vmatprep.mubr.bf16.mxu1 %v929_v4  ;;  %v3655_v40 = vmax.f32 %v3647_v3, 0.0  ;;  %v3659_v41 = vmax.f32 %v3651_v14, 0.0  ;;  %v3646_v23 = vadd.f32 %v8779_v16, %v8765_v8  ;;  %v3650_v15 = vadd.f32 %v8779_v16, %v8798_v32  ;;  %v7536_v16 = vld [vmem:[%s10774_s6 + $0x8c] ss:$16 sps:$4 sm:$0xff]  }
 0x104   : > { %1808 = vmatprep.subr.bf16.mxu0 %v7524_v5  ;;  %1851 = vmatprep.subr.bf16.mxu1 %v7527_v6  ;;  %v8887_v44 = vpack.c.bf16 %v3657_v35, %v3653_v13  ;;  %v8889_v48 = vpack.c.bf16 %v3656_v39, %v3652_v36  ;;  %v4998_v49 = vrot.slane %v6995_v33, %v8697_v45  ;;  %v8940_v22 = vld [vmem:[%s10774_s6 + $0x4c] ss:$16 sps:$4 sm:$0xff]   ;;  %v7555_v35 = vld [vmem:[%s10774_s6 + $0x228] ss:$16 sps:$4 sm:$0xff]  }
 0x105   : > { %v8898_v53 = vpack.c.bf16 %v3659_v41, %v3655_v40  ;;  %v3654_v54 = vmax.f32 %v3646_v23, 0.0  ;;  %v3658_v59 = vmax.f32 %v3650_v15, 0.0  ;;  %v4994_v25 = vrot.slane %v6995_v33, %v8692_v43  ;;  %v8960_v3 = vld [vmem:[%s10774_s6 + $0x2c] ss:$16 sps:$4 sm:$0xff]   ;;  %v8988_v40 = vld [vmem:[%s10774_s6 + $0x8] ss:$16 sps:$4 sm:$0xff]  }
 0x106   : > { %1809 = vmatpush1.bf16.msra.mxu0 %v7522_v20  ;;  %1852 = vmatpush1.bf16.msra.mxu1 %v7525_v21  ;;  %v5012_v60 = vadd.f32 %v4998_v49, %v8781_v17  ;;  %v5016_v61 = vadd.f32 %v4998_v49, %v8804_v37  ;;  %v5006_v26 = vrot.slane %v6995_v33, %v8701_v47  ;;  %v7537_v17 = vld [vmem:[%s10774_s6 + $0x288] ss:$16 sps:$4 sm:$0xff]   ;;  %v7557_v14 = vld [vmem:[%s10774_s6 + $0x22c] ss:$16 sps:$4 sm:$0xff]  }
 0x107   : > { %1810 = vmatprep.subr.bf16.mxu0 %v7530_v29  ;;  %1853 = vmatprep.subr.bf16.mxu1 %v7533_v30  ;;  %v8904_v56 = vpack.c.bf16 %v3658_v59, %v3654_v54  ;;  %v5011_v62 = vadd.f32 %v4994_v25, %v8763_v7  ;;  %v5015_v55 = vadd.f32 %v4994_v25, %v8796_v31  ;;  %v7542_v7 = vld [vmem:[%s10774_s6 + $0x6c] ss:$16 sps:$4 sm:$0xff]   ;;  %v8950_v29 = vld [vmem:[%s10774_s6 + $0x48] ss:$16 sps:$4 sm:$0xff]  }
 0x108   : > { %v5020_v1 = vmax.f32 %v5012_v60, 0.0  ;;  %v5024_v37 = vmax.f32 %v5016_v61, 0.0  ;;  %v5014_v4 = vadd.f32 %v5006_v26, %v8783_v18  ;;  %v5018_v5 = vadd.f32 %v5006_v26, %v8806_v38  ;;  %v7545_v31 = vld [vmem:[%s10774_s6 + $0x26c] ss:$16 sps:$4 sm:$0xff]   ;;  %v7549_v30 = vld [vmem:[%s10774_s6 + $0x248] ss:$16 sps:$4 sm:$0xff]  }
 0x109   : > { %v5002_v6 = vrot.slane %v6995_v33, %v8699_v46  ;;  %v5019_v10 = vmax.f32 %v5011_v62, 0.0  ;;  %v5023_v12 = vmax.f32 %v5015_v55, 0.0  ;;  %v8970_v33 = vld [vmem:[%s10774_s6 + $0x28] ss:$16 sps:$4 sm:$0xff]   ;;  %v8978_v36 = vld [vmem:[%s10774_s6 + $0xc] ss:$16 sps:$4 sm:$0xff]  }
 0x10a   : > { %1811 = vmatpush1.bf16.msra.mxu0 %v7528_v24  ;;  %1854 = vmatpush1.bf16.msra.mxu1 %v7531_v42  ;;  %v8923_v9 = vpack.c.bf16 %v5024_v37, %v5020_v1  ;;  %v5022_v21 = vmax.f32 %v5014_v4, 0.0  ;;  %v5026_v58 = vmax.f32 %v5018_v5, 0.0  ;;  %v7563_v39 = vld [vmem:[%s10774_s6 + $0x20c] ss:$16 sps:$4 sm:$0xff]   ;;  %v7561_v41 = vld [vmem:[%s10774_s6 + $0x208] ss:$16 sps:$4 sm:$0xff]  }
 0x10b   : > { %1812 = vmatprep.subr.bf16.mxu0 %v7536_v16  ;;  %1855 = vmatprep.subr.bf16.mxu1 %v7539_v52  ;;  %v5013_v18 = vadd.f32 %v5002_v6, %v8765_v8  ;;  %v5017_v38 = vadd.f32 %v5002_v6, %v8798_v32  ;;  %v8935_v20 = vpack.c.bf16 %v5023_v12, %v5019_v10  ;;  %v7551_v8 = vld [vmem:[%s10774_s6 + $0x24c] ss:$16 sps:$4 sm:$0xff]   ;;  %v9006_v24 = vld [vmem:[%s10774_s6 + $0x1e8] ss:$16 sps:$4 sm:$0xff]  }
 0x10c   : > { %v8945_v32 = vpack.c.bf16 %v5026_v58, %v5022_v21  ;;  %v8996_v23 = vld [vmem:[%s10774_s6 + $0x1ec] ss:$16 sps:$4 sm:$0xff]   ;;  %v7567_v42 = vld [vmem:[%s10774_s6 + $0x3e8] ss:$16 sps:$4 sm:$0xff]  }
 0x10d   : > { %v5021_v27 = vmax.f32 %v5013_v18, 0.0  ;;  %v5025_v28 = vmax.f32 %v5017_v38, 0.0  ;;  %v7569_v15 = vld [vmem:[%s10774_s6 + $0x3ec] ss:$16 sps:$4 sm:$0xff]   ;;  %v9024_v52 = vld [vmem:[%s10774_s6 + $0x1c8] ss:$16 sps:$4 sm:$0xff]  }
 0x10e   : > { %1813 = vmatpush1.bf16.msra.mxu0 %v7534_v0  ;;  %1856 = vmatpush1.bf16.msra.mxu1 %v7537_v17  ;;  %v9014_v49 = vld [vmem:[%s10774_s6 + $0x1cc] ss:$16 sps:$4 sm:$0xff]   ;;  %v7573_v54 = vld [vmem:[%s10774_s6 + $0x3c8] ss:$16 sps:$4 sm:$0xff]  }
 0x10f   : > { %1814 = vmatprep.subr.bf16.mxu0 %v7542_v7  ;;  %1857 = vmatprep.subr.bf16.mxu1 %v7545_v31  ;;  %v8955_v13 = vpack.c.bf16 %v5025_v28, %v5021_v27  ;;  %v7575_v16 = vld [vmem:[%s10774_s6 + $0x3cc] ss:$16 sps:$4 sm:$0xff]   ;;  %v9042_v60 = vld [vmem:[%s10774_s6 + $0x1a8] ss:$16 sps:$4 sm:$0xff]  }
 0x110   : > { %v9032_v59 = vld [vmem:[%s10774_s6 + $0x1ac] ss:$16 sps:$4 sm:$0xff]   ;;  %v7579_v61 = vld [vmem:[%s10774_s6 + $0x3a8] ss:$16 sps:$4 sm:$0xff]  }
 0x111   : > { %v7581_v25 = vld [vmem:[%s10774_s6 + $0x3ac] ss:$16 sps:$4 sm:$0xff]   ;;  %v9060_v55 = vld [vmem:[%s10774_s6 + $0x188] ss:$16 sps:$4 sm:$0xff]  }
 0x112   : > { %1815 = vmatpush1.bf16.msra.mxu0 %v8930_v19  ;;  %1858 = vmatpush1.bf16.msra.mxu1 %v7543_v57  ;;  %v9050_v26 = vld [vmem:[%s10774_s6 + $0x18c] ss:$16 sps:$4 sm:$0xff]   ;;  %v7585_v0 = vld [vmem:[%s10774_s6 + $0x388] ss:$16 sps:$4 sm:$0xff]  }
 0x113   : > { %1816 = vmatprep.subr.bf16.mxu0 %v8940_v22  ;;  %1859 = vmatprep.subr.bf16.mxu1 %v7551_v8  ;;  %v7587_v62 = vld [vmem:[%s10774_s6 + $0x38c] ss:$16 sps:$4 sm:$0xff]   ;;  %v9078_v37 = vld [vmem:[%s10774_s6 + $0x168] ss:$16 sps:$4 sm:$0xff]  }
 0x114   : > { %v9068_v17 = vld [vmem:[%s10774_s6 + $0x16c] ss:$16 sps:$4 sm:$0xff]   ;;  %v7591_v4 = vld [vmem:[%s10774_s6 + $0x368] ss:$16 sps:$4 sm:$0xff]  }
 0x115   : > { %v7593_v1 = vld [vmem:[%s10774_s6 + $0x36c] ss:$16 sps:$4 sm:$0xff]   ;;  %v9096_v31 = vld [vmem:[%s10774_s6 + $0x148] ss:$16 sps:$4 sm:$0xff]  }
 0x116   : > { %1817 = vmatpush1.bf16.msra.mxu0 %v8950_v29  ;;  %1860 = vmatpush1.bf16.msra.mxu1 %v7549_v30  ;;  %v9086_v5 = vld [vmem:[%s10774_s6 + $0x14c] ss:$16 sps:$4 sm:$0xff]   ;;  %v7597_v6 = vld [vmem:[%s10774_s6 + $0x348] ss:$16 sps:$4 sm:$0xff]   ;;  %v7614_v30 = vld [vmem:[%s10776_s8 + $0x70] sm:$0xff]  }
 0x117   : > { %1818 = vmatprep.subr.bf16.mxu0 %v8960_v3  ;;  %1861 = vmatprep.subr.bf16.mxu1 %v7557_v14  ;;  %v7599_v7 = vld [vmem:[%s10774_s6 + $0x34c] ss:$16 sps:$4 sm:$0xff]   ;;  %v9114_v18 = vld [vmem:[%s10774_s6 + $0x128] ss:$16 sps:$4 sm:$0xff]   ;;  %v7615_v14 = vld [vmem:[%s10776_s8 + $0x30] sm:$0xff]  }
 0x118   : > { %v9104_v10 = vld [vmem:[%s10774_s6 + $0x12c] ss:$16 sps:$4 sm:$0xff]   ;;  %v7603_v38 = vld [vmem:[%s10774_s6 + $0x328] ss:$16 sps:$4 sm:$0xff]  }
 0x119   : > { %v7605_v12 = vld [vmem:[%s10774_s6 + $0x32c] ss:$16 sps:$4 sm:$0xff]   ;;  %v9132_v58 = vld [vmem:[%s10774_s6 + $0x108] ss:$16 sps:$4 sm:$0xff]  }
 0x11a   : > { %1819 = vmatpush1.bf16.msra.mxu0 %v8970_v33  ;;  %1862 = vmatpush1.bf16.msra.mxu1 %v7555_v35  ;;  %v9122_v57 = vld [vmem:[%s10774_s6 + $0x10c] ss:$16 sps:$4 sm:$0xff]   ;;  %v7609_v8 = vld [vmem:[%s10774_s6 + $0x308] ss:$16 sps:$4 sm:$0xff]  }
 0x11b   : > { %1820 = vmatprep.subr.bf16.mxu0 %v8978_v36  ;;  %1863 = vmatprep.subr.bf16.mxu1 %v7563_v39  ;;  %v7611_v21 = vld [vmem:[%s10774_s6 + $0x30c] ss:$16 sps:$4 sm:$0xff]  }
 0x11c   : > { %v7612_v27 = vld [vmem:[%s10776_s8 + $0x78] sm:$0xff]   ;;  %v7616_v35 = vld [vmem:[%s10776_s8 + $0x68] sm:$0xff]  }
 0x11d   : > { %v7613_v28 = vld [vmem:[%s10776_s8 + $0x38] sm:$0xff]   ;;  %v7617_v39 = vld [vmem:[%s10776_s8 + $0x28] sm:$0xff]  }
 0x11e   : > { %1821 = vmatpush1.bf16.msra.mxu0 %v8988_v40  ;;  %1864 = vmatpush1.bf16.msra.mxu1 %v7561_v41  ;;  %v7618_v41 = vld [vmem:[%s10776_s8 + $0x60] sm:$0xff]  }
 0x11f   : > { %1822 = vmatprep.subr.bf16.mxu0 %v8996_v23  ;;  %1865 = vmatprep.subr.bf16.mxu1 %v7569_v15  ;;  %v7621_v15 = vld [vmem:[%s10776_s8 + $0x18] sm:$0xff]  }
 0x122   : > { %1823 = vmatpush2.bf16.msra.mxu0 %v9006_v24  ;;  %1866 = vmatpush2.bf16.msra.mxu1 %v7567_v42  ;;  %v7622_v42 = vld [vmem:[%s10776_s8 + $0x50] sm:$0xff]  }
 0x123   : > { %1824 = vmatprep.subr.bf16.mxu0 %v9014_v49  ;;  %1867 = vmatprep.subr.bf16.mxu1 %v7575_v16  ;;  %v7623_v16 = vld [vmem:[%s10776_s8 + $0x10] sm:$0xff]  }
 0x126   : > { %1825 = vmatpush2.bf16.msra.mxu0 %v9024_v52  ;;  %1868 = vmatpush2.bf16.msra.mxu1 %v7573_v54  ;;  %v7624_v54 = vld [vmem:[%s10776_s8 + $0x48] sm:$0xff]  }
 0x127   : > { %1826 = vmatprep.subr.bf16.mxu0 %v9032_v59  ;;  %1869 = vmatprep.subr.bf16.mxu1 %v7581_v25  ;;  %v7625_v25 = vld [vmem:[%s10776_s8 + $0x8] sm:$0xff]  }
 0x12a   : > { %1827 = vmatpush2.bf16.msra.mxu0 %v9042_v60  ;;  %1870 = vmatpush2.bf16.msra.mxu1 %v7579_v61  ;;  %v7626_v61 = vld [vmem:[%s10776_s8 + $0x40] sm:$0xff]  }
 0x12b   : > { %1828 = vmatprep.subr.bf16.mxu0 %v9050_v26  ;;  %1871 = vmatprep.subr.bf16.mxu1 %v7587_v62  ;;  %v7627_v62 = vld [vmem:[%s10776_s8] sm:$0xff]  }
 0x12e   : > { %1829 = vmatpush2.bf16.msra.mxu0 %v9060_v55  ;;  %1872 = vmatpush2.bf16.msra.mxu1 %v7585_v0  ;;  %v7630_v0 = vld [vmem:[%s10774_s6 + $0xe4] ss:$16 sps:$4 sm:$0xff]  }
 0x12f   : > { %1830 = vmatprep.subr.bf16.mxu0 %v9068_v17  ;;  %1873 = vmatprep.subr.bf16.mxu1 %v7593_v1  ;;  %v7652_v1 = vld [vmem:[%s10776_s8 + $0xf8] sm:$0xff]  }
 0x132   : > { %1831 = vmatpush2.bf16.msra.mxu0 %v9078_v37  ;;  %1874 = vmatpush2.bf16.msra.mxu1 %v7591_v4  ;;  %v7653_v4 = vld [vmem:[%s10776_s8 + $0xb8] sm:$0xff]  }
 0x133   : > { %1832 = vmatprep.subr.bf16.mxu0 %v9086_v5  ;;  %1875 = vmatprep.subr.bf16.mxu1 %v7599_v7  ;;  %v7657_v7 = vld [vmem:[%s10776_s8 + $0xf0] sm:$0xff]  }
 0x136   : > { %1833 = vmatpush2.bf16.msra.mxu0 %v9096_v31  ;;  %1876 = vmatpush2.bf16.msra.mxu1 %v7597_v6  ;;  %v7658_v6 = vld [vmem:[%s10776_s8 + $0xb0] sm:$0xff]  }
 0x137   : > { %1834 = vmatprep.subr.bf16.mxu0 %v9104_v10  ;;  %1877 = vmatprep.subr.bf16.mxu1 %v7605_v12  ;;  %v7662_v12 = vld [vmem:[%s10776_s8 + $0xe8] sm:$0xff]  }
 0x13a   : > { %1835 = vmatpush2.bf16.msra.mxu0 %v9114_v18  ;;  %1878 = vmatpush2.bf16.msra.mxu1 %v7603_v38  ;;  %v7663_v38 = vld [vmem:[%s10776_s8 + $0xa8] sm:$0xff]  }
 0x13b   : > { %1836 = vmatprep.subr.bf16.mxu0 %v9122_v57  ;;  %1879 = vmatprep.subr.bf16.mxu1 %v7611_v21  ;;  %v7667_v21 = vld [vmem:[%s10776_s8 + $0xe0] sm:$0xff]  }
 0x13e   : > { %1837 = vmatpush2.bf16.msra.mxu0 %v9132_v58  ;;  %1880 = vmatpush2.bf16.msra.mxu1 %v7609_v8  ;;  %v7668_v8 = vld [vmem:[%s10776_s8 + $0xa0] sm:$0xff]  }
 0x13f   : > { %7164 = vmatprep.subr.bf16.mxu0 %v7612_v27  ;;  %7186 = vmatprep.subr.bf16.mxu1 %v7652_v1  ;;  %v7672_v27 = vld [vmem:[%s10776_s8 + $0xd8] sm:$0xff]  }
 0x141   : > { %1839 = vmatmul.mubr.bf16.vlgmr.msra.gmra.mxu0 %v8823_v50  ;;  %1882 = vmatmul.mubr.bf16.vlgmr.msra.gmra.mxu1 %v8825_v51  ;;  %v7619_v50 = vld [vmem:[%s10776_s8 + $0x20] sm:$0xff]   ;;  %v7620_v51 = vld [vmem:[%s10776_s8 + $0x58] sm:$0xff]  }
 0x142   : > { %7165 = vmatpush3.bf16.msra.mxu0 %v7613_v28  ;;  %7187 = vmatpush3.bf16.msra.mxu1 %v7653_v4  ;;  %v7673_v28 = vld [vmem:[%s10776_s8 + $0x98] sm:$0xff]  }
 0x143   : > { %7166 = vmatprep.subr.bf16.mxu0 %v7614_v30  ;;  %7188 = vmatprep.subr.bf16.mxu1 %v7657_v7  ;;  %v7677_v30 = vld [vmem:[%s10776_s8 + $0xd0] sm:$0xff]  }
 0x146   : > { %7167 = vmatpush3.bf16.msra.mxu0 %v7615_v14  ;;  %7189 = vmatpush3.bf16.msra.mxu1 %v7658_v6  ;;  %v7678_v14 = vld [vmem:[%s10776_s8 + $0x90] sm:$0xff]  }
 0x147   : > { %7168 = vmatprep.subr.bf16.mxu0 %v7616_v35  ;;  %7190 = vmatprep.subr.bf16.mxu1 %v7662_v12  ;;  %v7682_v35 = vld [vmem:[%s10776_s8 + $0xc8] sm:$0xff]  }
 0x14a   : > { %7169 = vmatpush3.bf16.msra.mxu0 %v7617_v39  ;;  %7191 = vmatpush3.bf16.msra.mxu1 %v7663_v38  ;;  %v7683_v39 = vld [vmem:[%s10776_s8 + $0x88] sm:$0xff]  }
 0x14b   : > { %7170 = vmatprep.subr.bf16.mxu0 %v7618_v41  ;;  %7192 = vmatprep.subr.bf16.mxu1 %v7667_v21  ;;  %v7684_v41 = vld [vmem:[%s10776_s8 + $0xc0] sm:$0xff]  }
 0x14e   : > { %7171 = vmatpush3.bf16.msra.mxu0 %v7619_v50  ;;  %7193 = vmatpush3.bf16.msra.mxu1 %v7668_v8  ;;  %v7685_v50 = vld [vmem:[%s10776_s8 + $0x80] sm:$0xff]  }
 0x14f   : > { %7172 = vmatprep.subr.bf16.mxu0 %v7620_v51  ;;  %7194 = vmatprep.subr.bf16.mxu1 %v7672_v27  ;;  %v7691_v51 = vld [vmem:[%s10774_s6 + $0x2e4] ss:$16 sps:$4 sm:$0xff]  }
 0x152   : > { %7173 = vmatpush3.bf16.msra.mxu0 %v7621_v15  ;;  %7195 = vmatpush3.bf16.msra.mxu1 %v7673_v28  ;;  %v9247_v15 = vld [vmem:[%s10775_s7] sm:$0xf] }
 0x153   : > { %7174 = vmatprep.subr.bf16.mxu0 %v7622_v42  ;;  %7196 = vmatprep.subr.bf16.mxu1 %v7677_v30  ;;  %v1067_v42 = vrot.slane %v9247_v15, %v8697_v45 }
 0x156   : > { %7175 = vmatpush3.bf16.msra.mxu0 %v7623_v16  ;;  %7197 = vmatpush3.bf16.msra.mxu1 %v7678_v14  ;;  %v1063_v16 = vrot.slane %v9247_v15, %v8692_v43 }
 0x157   : > { %7176 = vmatprep.subr.bf16.mxu0 %v7624_v54  ;;  %7198 = vmatprep.subr.bf16.mxu1 %v7682_v35 }
 0x15a   : > { %7177 = vmatpush3.bf16.msra.mxu0 %v7625_v25  ;;  %7199 = vmatpush3.bf16.msra.mxu1 %v7683_v39 }
 0x15b   : > { %7178 = vmatprep.subr.bf16.mxu0 %v7626_v61  ;;  %7200 = vmatprep.subr.bf16.mxu1 %v7684_v41 }
 0x15e   : > { %7179 = vmatpush3.bf16.msra.mxu0 %v7627_v62  ;;  %7201 = vmatpush3.bf16.msra.mxu1 %v7685_v50 }
 0x15f   : > { %3087 = vmatprep.subr.bf16.mxu0 %v7630_v0  ;;  %3130 = vmatprep.subr.bf16.mxu1 %v7691_v51  ;;  %v7628_v51 = vld [vmem:[%s10774_s6 + $0xe0] ss:$16 sps:$4 sm:$0xff]  }
 0x1c1   : > { %v1754_v54 = vpop.f32.mrf.mxu0  ;;  %v1797_v25 = vpop.f32.mrf.mxu1 }
 0x1c2   : > { %v1755_v1 = vadd.f32 %v1754_v54, %v1063_v16 }
 0x1c3   : > { %v1756_v61 = vpop.f32.mrf.mxu0  ;;  %v1799_v62 = vpop.f32.mrf.mxu1 }
 0x1c4   : > { %v1757_v0 = vadd.f32 %v1756_v61, %v1067_v42  ;;  %v1798_v27 = vadd.f32 %v1797_v25, %v1755_v1  ;;  %v7636_v25 = vld [vmem:[%s10774_s6 + $0xa4] ss:$16 sps:$4 sm:$0xff]   ;;  %v7634_v61 = vld [vmem:[%s10774_s6 + $0xa0] ss:$16 sps:$4 sm:$0xff]  }
 0x1c5   : > { %v1758_v4 = vpop.f32.mrf.mxu0  ;;  %v1801_v7 = vpop.f32.mrf.mxu1  ;;  %v7642_v1 = vld [vmem:[%s10774_s6 + $0x64] ss:$16 sps:$4 sm:$0xff]  }
 0x1c6   : > { %v1759_v6 = vadd.f32 %v1758_v4, %v1063_v16  ;;  %v1800_v38 = vadd.f32 %v1799_v62, %v1757_v0  ;;  %v1892_v41 = vmax.f32 %v1798_v27, 0.0  ;;  %v7633_v16 = vld [vmem:[%s10774_s6 + $0xc4] ss:$16 sps:$4 sm:$0xff]   ;;  %v7637_v0 = vld [vmem:[%s10774_s6 + $0x80] ss:$16 sps:$4 sm:$0xff]  }
 0x1c7   : > { %v1760_v12 = vpop.f32.mrf.mxu0  ;;  %v1803_v28 = vpop.f32.mrf.mxu1  ;;  %v7639_v62 = vld [vmem:[%s10774_s6 + $0x84] ss:$16 sps:$4 sm:$0xff]   ;;  %v7640_v4 = vld [vmem:[%s10774_s6 + $0x60] ss:$16 sps:$4 sm:$0xff]  }
 0x1c8   : > { %v1802_v21 = vadd.f32 %v1801_v7, %v1759_v6  ;;  %v1761_v8 = vadd.f32 %v1760_v12, %v1067_v42  ;;  %v1893_v35 = vmax.f32 %v1800_v38, 0.0  ;;  %v7631_v42 = vld [vmem:[%s10774_s6 + $0xc0] ss:$16 sps:$4 sm:$0xff]   ;;  %v7645_v7 = vld [vmem:[%s10774_s6 + $0x44] ss:$16 sps:$4 sm:$0xff]  }
 0x1c9   : > { %v7643_v6 = vld [vmem:[%s10774_s6 + $0x40] ss:$16 sps:$4 sm:$0xff]   ;;  %v7648_v12 = vld [vmem:[%s10774_s6 + $0x24] ss:$16 sps:$4 sm:$0xff]  }
 0x1ca   : > { %v1804_v30 = vadd.f32 %v1803_v28, %v1761_v8  ;;  %v1896_v14 = vmax.f32 %v1802_v21, 0.0  ;;  %v7646_v38 = vld [vmem:[%s10774_s6 + $0x20] ss:$16 sps:$4 sm:$0xff]   ;;  %v7651_v21 = vld [vmem:[%s10774_s6 + $0x4] ss:$16 sps:$4 sm:$0xff]  }
 0x1cb   : > { %v7649_v8 = vld [vmem:[%s10774_s6] ss:$16 sps:$4 sm:$0xff]   ;;  %v7656_v27 = vld [vmem:[%s10774_s6 + $0x1e4] ss:$16 sps:$4 sm:$0xff]  }
 0x1cc   : > { %v1897_v39 = vmax.f32 %v1804_v30, 0.0  ;;  %v1900_v54 = vpack.c.bf16 %v1896_v14, %v1892_v41  ;;  %v7654_v28 = vld [vmem:[%s10774_s6 + $0x1e0] ss:$16 sps:$4 sm:$0xff]   ;;  %v7661_v30 = vld [vmem:[%s10774_s6 + $0x1c4] ss:$16 sps:$4 sm:$0xff]  }
 0x1cd   : > { %v7659_v14 = vld [vmem:[%s10774_s6 + $0x1c0] ss:$16 sps:$4 sm:$0xff]   ;;  %v7671_v41 = vld [vmem:[%s10774_s6 + $0x184] ss:$16 sps:$4 sm:$0xff]  }
 0x1ce   : > { %v1901_v50 = vpack.c.bf16 %v1897_v39, %v1893_v35  ;;  %v7666_v35 = vld [vmem:[%s10774_s6 + $0x1a4] ss:$16 sps:$4 sm:$0xff]   ;;  %v7664_v39 = vld [vmem:[%s10774_s6 + $0x1a0] ss:$16 sps:$4 sm:$0xff]  }
 0x1d0   : > { %2199 = vmatprep.mubr.bf16.mxu0 %v1901_v50  ;;  %v7669_v50 = vld [vmem:[%s10774_s6 + $0x180] ss:$16 sps:$4 sm:$0xff]  }
 0x1d1   : > { %2200 = vmatmul.mubr.bf16.vlgmr.msra.gmra.mxu0 %v1900_v54  ;;  %v7674_v54 = vld [vmem:[%s10774_s6 + $0x160] ss:$16 sps:$4 sm:$0xff]  }
 0x1d2   : > { %3088 = vmatpush1.bf16.msra.mxu0 %v7628_v51  ;;  %3119 = vmatprep.mubr.bf16.mxu0 %v8842_v11  ;;  %v7676_v51 = vld [vmem:[%s10774_s6 + $0x164] ss:$16 sps:$4 sm:$0xff]  }
 0x1d3   : > { %3089 = vmatprep.subr.bf16.mxu0 %v7633_v16  ;;  %v7681_v16 = vld [vmem:[%s10774_s6 + $0x144] ss:$16 sps:$4 sm:$0xff]  }
 0x1d6   : > { %3090 = vmatpush1.bf16.msra.mxu0 %v7631_v42  ;;  %v1075_v42 = vrot.slane %v9247_v15, %v8701_v47 }
 0x1d7   : > { %3091 = vmatprep.subr.bf16.mxu0 %v7636_v25  ;;  %v1071_v25 = vrot.slane %v9247_v15, %v8699_v46  ;;  %v8265_v15 = vld [vmem:[%s10774_s6 + $0x124] ss:$16 sps:$4 sm:$0xff]  }
 0x1da   : > { %3092 = vmatpush1.bf16.msra.mxu0 %v7634_v61 }
 0x1db   : > { %3093 = vmatprep.subr.bf16.mxu0 %v7639_v62 }
 0x1de   : > { %3094 = vmatpush1.bf16.msra.mxu0 %v7637_v0  ;;  %v7679_v0 = vld [vmem:[%s10774_s6 + $0x140] ss:$16 sps:$4 sm:$0xff]  }
 0x1df   : > { %3095 = vmatprep.subr.bf16.mxu0 %v7642_v1 }
 0x1e2   : > { %3096 = vmatpush1.bf16.msra.mxu0 %v7640_v4 }
 0x1e3   : > { %3097 = vmatprep.subr.bf16.mxu0 %v7645_v7 }
 0x1e6   : > { %3098 = vmatpush1.bf16.msra.mxu0 %v7643_v6 }
 0x1e7   : > { %3099 = vmatprep.subr.bf16.mxu0 %v7648_v12 }
 0x1ea   : > { %3100 = vmatpush1.bf16.msra.mxu0 %v7646_v38 }
 0x1eb   : > { %3101 = vmatprep.subr.bf16.mxu0 %v7651_v21 }
 0x1ee   : > { %3102 = vmatpush1.bf16.msra.mxu0 %v7649_v8 }
 0x1ef   : > { %3103 = vmatprep.subr.bf16.mxu0 %v7656_v27  ;;  %v7688_v27 = vld [vmem:[%s10774_s6 + $0x104] ss:$16 sps:$4 sm:$0xff]  }
 0x1f2   : > { %3104 = vmatpush2.bf16.msra.mxu0 %v7654_v28 }
 0x1f3   : > { %3105 = vmatprep.subr.bf16.mxu0 %v7661_v30 }
 0x1f6   : > { %3106 = vmatpush2.bf16.msra.mxu0 %v7659_v14 }
 0x1f7   : > { %3107 = vmatprep.subr.bf16.mxu0 %v7666_v35 }
 0x1fa   : > { %3108 = vmatpush2.bf16.msra.mxu0 %v7664_v39 }
 0x1fb   : > { %3109 = vmatprep.subr.bf16.mxu0 %v7671_v41 }
 0x1fe   : > { %3110 = vmatpush2.bf16.msra.mxu0 %v7669_v50  ;;  %v8266_v50 = vld [vmem:[%s10774_s6 + $0x120] ss:$16 sps:$4 sm:$0xff]  }
 0x1ff   : > { %3111 = vmatprep.subr.bf16.mxu0 %v7676_v51  ;;  %v7686_v51 = vld [vmem:[%s10774_s6 + $0x100] ss:$16 sps:$4 sm:$0xff]  }
 0x201   : > { %v1840_v61 = vpop.f32.mrf.mxu0  ;;  %v1883_v62 = vpop.f32.mrf.mxu1 }
 0x202   : > { %3112 = vmatpush2.bf16.msra.mxu0 %v7674_v54  ;;  %v1841_v6 = vadd.f32 %v1840_v61, %v1071_v25 }
 0x203   : > { %v1842_v1 = vpop.f32.mrf.mxu0  ;;  %v1885_v4 = vpop.f32.mrf.mxu1  ;;  %3113 = vmatprep.subr.bf16.mxu0 %v7681_v16 }
 0x204   : > { %v1843_v7 = vadd.f32 %v1842_v1, %v1075_v42  ;;  %v1884_v35 = vadd.f32 %v1883_v62, %v1841_v6  ;;  %v8267_v1 = vld [vmem:[%s10774_s6 + $0xec] ss:$16 sps:$4 sm:$0xff]   ;;  %v8268_v6 = vld [vmem:[%s10774_s6 + $0xe8] ss:$16 sps:$4 sm:$0xff]  }
 0x205   : > { %v1844_v12 = vpop.f32.mrf.mxu0  ;;  %v1887_v38 = vpop.f32.mrf.mxu1 }
 0x206   : > { %v1845_v21 = vadd.f32 %v1844_v12, %v1071_v25  ;;  %3114 = vmatpush2.bf16.msra.mxu0 %v7679_v0  ;;  %v1886_v28 = vadd.f32 %v1885_v4, %v1843_v7  ;;  %v1894_v61 = vmax.f32 %v1884_v35, 0.0  ;;  %v7694_v4 = vld [vmem:[%s10774_s6 + $0x2c4] ss:$16 sps:$4 sm:$0xff]   ;;  %v7692_v7 = vld [vmem:[%s10774_s6 + $0x2c0] ss:$16 sps:$4 sm:$0xff]  }
 0x207   : > { %v1846_v8 = vpop.f32.mrf.mxu0  ;;  %3115 = vmatprep.subr.bf16.mxu0 %v8265_v15  ;;  %v1889_v39 = vpop.f32.mrf.mxu1  ;;  %v7697_v12 = vld [vmem:[%s10774_s6 + $0x2a4] ss:$16 sps:$4 sm:$0xff]   ;;  %v8271_v15 = vld [vmem:[%s10774_s6 + $0xac] ss:$16 sps:$4 sm:$0xff]   ;;  %v7701_v35 = vld [vmem:[%s10774_s6 + $0x260] ss:$16 sps:$4 sm:$0xff]  }
 0x208   : > { %v1888_v30 = vadd.f32 %v1887_v38, %v1845_v21  ;;  %v1847_v14 = vadd.f32 %v1846_v8, %v1075_v42  ;;  %v1895_v16 = vmax.f32 %v1886_v28, 0.0  ;;  %v7689_v42 = vld [vmem:[%s10774_s6 + $0x2e0] ss:$16 sps:$4 sm:$0xff]   ;;  %v8269_v38 = vld [vmem:[%s10774_s6 + $0xcc] ss:$16 sps:$4 sm:$0xff]  }
 0x209   : > { %v7695_v21 = vld [vmem:[%s10774_s6 + $0x2a0] ss:$16 sps:$4 sm:$0xff]   ;;  %v8270_v8 = vld [vmem:[%s10774_s6 + $0xc8] ss:$16 sps:$4 sm:$0xff]  }
 0x20a   : > { %v1890_v41 = vadd.f32 %v1889_v39, %v1847_v14  ;;  %3116 = vmatpush2.bf16.msra.mxu0 %v8266_v50  ;;  %v1898_v54 = vmax.f32 %v1888_v30, 0.0  ;;  %v8272_v28 = vld [vmem:[%s10774_s6 + $0xa8] ss:$16 sps:$4 sm:$0xff]   ;;  %v7703_v30 = vld [vmem:[%s10774_s6 + $0x264] ss:$16 sps:$4 sm:$0xff]  }
 0x20b   : > { %3117 = vmatprep.subr.bf16.mxu0 %v7688_v27  ;;  %v7698_v27 = vld [vmem:[%s10774_s6 + $0x280] ss:$16 sps:$4 sm:$0xff]   ;;  %v8273_v14 = vld [vmem:[%s10774_s6 + $0x8c] ss:$16 sps:$4 sm:$0xff]   ;;  %v8274_v39 = vld [vmem:[%s10774_s6 + $0x88] ss:$16 sps:$4 sm:$0xff]  }
 0x20c   : > { %v1899_v25 = vmax.f32 %v1890_v41, 0.0  ;;  %v1902_v62 = vpack.c.bf16 %v1898_v54, %v1894_v61  ;;  %v7706_v41 = vld [vmem:[%s10774_s6 + $0x244] ss:$16 sps:$4 sm:$0xff]   ;;  %v8275_v50 = vld [vmem:[%s10774_s6 + $0x6c] ss:$16 sps:$4 sm:$0xff]  }
 0x20d   : > { %v7709_v54 = vld [vmem:[%s10774_s6 + $0x224] ss:$16 sps:$4 sm:$0xff]   ;;  %v7751_v61 = vld [vmem:[%s10774_s6 + $0x26c] ss:$16 sps:$4 sm:$0xff]  }
 0x20e   : > { %v1903_v0 = vpack.c.bf16 %v1899_v25, %v1895_v16  ;;  %3118 = vmatpush2.bf16.msra.mxu0 %v7686_v51  ;;  %v7704_v51 = vld [vmem:[%s10774_s6 + $0x240] ss:$16 sps:$4 sm:$0xff]   ;;  %v7712_v25 = vld [vmem:[%s10774_s6 + $0x204] ss:$16 sps:$4 sm:$0xff]  }
 0x20f   : > { %3173 = vmatprep.subr.bf16.mxu0 %v8267_v1  ;;  %v7707_v16 = vld [vmem:[%s10774_s6 + $0x220] ss:$16 sps:$4 sm:$0xff]  }
 0x210   : > { %2240 = vmatprep.mubr.bf16.mxu1 %v1903_v0  ;;  %v7749_v0 = vld [vmem:[%s10774_s6 + $0x268] ss:$16 sps:$4 sm:$0xff]   ;;  %v7787_v1 = vld [vmem:[%s10776_s8 + $0x70] sm:$0xff]  }
 0x211   : > { %2241 = vmatmul.mubr.bf16.vlgmr.msra.gmra.mxu1 %v1902_v62  ;;  %3120 = vmatmul.mubr.bf16.vlgmr.msra.gmra.mxu0 %v8827_v63  ;;  %v7786_v62 = vld [vmem:[%s10776_s8 + $0x38] sm:$0xff]  }
 0x212   : > { %3131 = vmatpush1.bf16.msra.mxu1 %v7689_v42  ;;  %3162 = vmatprep.mubr.bf16.mxu1 %v8866_v2  ;;  %v7785_v42 = vld [vmem:[%s10776_s8 + $0x78] sm:$0xff]  }
 0x213   : > { %3174 = vmatpush1.bf16.msra.mxu0 %v8268_v6  ;;  %3205 = vmatprep.mubr.bf16.mxu0 %v8842_v11  ;;  %v7700_v11 = vld [vmem:[%s10774_s6 + $0x284] ss:$16 sps:$4 sm:$0xff]   ;;  %v7752_v6 = vld [vmem:[%s10774_s6 + $0x248] ss:$16 sps:$4 sm:$0xff]  }
 0x214   : > { %3132 = vmatprep.subr.bf16.mxu1 %v7694_v4  ;;  %3175 = vmatprep.subr.bf16.mxu0 %v8269_v38  ;;  %v7754_v4 = vld [vmem:[%s10774_s6 + $0x24c] ss:$16 sps:$4 sm:$0xff]  }
 0x215   : > { %v7757_v38 = vld [vmem:[%s10774_s6 + $0x22c] ss:$16 sps:$4 sm:$0xff]  }
 0x216   : > { %3133 = vmatpush1.bf16.msra.mxu1 %v7692_v7  ;;  %v7788_v7 = vld [vmem:[%s10776_s8 + $0x30] sm:$0xff]  }
 0x217   : > { %3176 = vmatpush1.bf16.msra.mxu0 %v8270_v8  ;;  %3134 = vmatprep.subr.bf16.mxu1 %v7697_v12  ;;  %v7789_v12 = vld [vmem:[%s10776_s8 + $0x68] sm:$0xff]  }
 0x218   : > { %3177 = vmatprep.subr.bf16.mxu0 %v8271_v15  ;;  %v7755_v8 = vld [vmem:[%s10774_s6 + $0x228] ss:$16 sps:$4 sm:$0xff]   ;;  %v7760_v15 = vld [vmem:[%s10774_s6 + $0x20c] ss:$16 sps:$4 sm:$0xff]  }
 0x21a   : > { %3135 = vmatpush1.bf16.msra.mxu1 %v7695_v21  ;;  %v7790_v21 = vld [vmem:[%s10776_s8 + $0x28] sm:$0xff]  }
 0x21b   : > { %3178 = vmatpush1.bf16.msra.mxu0 %v8272_v28  ;;  %3136 = vmatprep.subr.bf16.mxu1 %v7700_v11  ;;  %v7791_v11 = vld [vmem:[%s10776_s8 + $0x60] sm:$0xff]   ;;  %v7758_v28 = vld [vmem:[%s10774_s6 + $0x208] ss:$16 sps:$4 sm:$0xff]  }
 0x21c   : > { %3179 = vmatprep.subr.bf16.mxu0 %v8273_v14  ;;  %v7763_v14 = vld [vmem:[%s10774_s6 + $0x3ec] ss:$16 sps:$4 sm:$0xff]  }
 0x21e   : > { %3137 = vmatpush1.bf16.msra.mxu1 %v7698_v27  ;;  %v7792_v27 = vld [vmem:[%s10776_s8 + $0x20] sm:$0xff]  }
 0x21f   : > { %3180 = vmatpush1.bf16.msra.mxu0 %v8274_v39  ;;  %3138 = vmatprep.subr.bf16.mxu1 %v7703_v30  ;;  %v7793_v30 = vld [vmem:[%s10776_s8 + $0x58] sm:$0xff]  }
 0x220   : > { %3181 = vmatprep.subr.bf16.mxu0 %v8275_v50  ;;  %v7761_v39 = vld [vmem:[%s10774_s6 + $0x3e8] ss:$16 sps:$4 sm:$0xff]  }
 0x221   : > { %v7764_v50 = vld [vmem:[%s10774_s6 + $0x3c8] ss:$16 sps:$4 sm:$0xff]  }
 0x222   : > { %3139 = vmatpush1.bf16.msra.mxu1 %v7701_v35  ;;  %v7794_v35 = vld [vmem:[%s10776_s8 + $0x18] sm:$0xff]  }
 0x223   : > { %3182 = vmatpush1.bf16.msra.mxu0 %v8930_v19  ;;  %3140 = vmatprep.subr.bf16.mxu1 %v7706_v41  ;;  %v7710_v19 = vld [vmem:[%s10774_s6 + $0x200] ss:$16 sps:$4 sm:$0xff]   ;;  %v7766_v41 = vld [vmem:[%s10774_s6 + $0x3cc] ss:$16 sps:$4 sm:$0xff]  }
 0x224   : > { %3183 = vmatprep.subr.bf16.mxu0 %v8940_v22  ;;  %v7715_v22 = vld [vmem:[%s10774_s6 + $0x3e4] ss:$16 sps:$4 sm:$0xff]  }
 0x226   : > { %3141 = vmatpush1.bf16.msra.mxu1 %v7704_v51  ;;  %v7769_v51 = vld [vmem:[%s10774_s6 + $0x3ac] ss:$16 sps:$4 sm:$0xff]  }
 0x227   : > { %3184 = vmatpush1.bf16.msra.mxu0 %v8950_v29  ;;  %3142 = vmatprep.subr.bf16.mxu1 %v7709_v54  ;;  %v7713_v29 = vld [vmem:[%s10774_s6 + $0x3e0] ss:$16 sps:$4 sm:$0xff]   ;;  %v7767_v54 = vld [vmem:[%s10774_s6 + $0x3a8] ss:$16 sps:$4 sm:$0xff]  }
 0x228   : > { %3185 = vmatprep.subr.bf16.mxu0 %v8960_v3  ;;  %v7718_v3 = vld [vmem:[%s10774_s6 + $0x3c4] ss:$16 sps:$4 sm:$0xff]  }
 0x22a   : > { %3143 = vmatpush1.bf16.msra.mxu1 %v7707_v16  ;;  %v7772_v16 = vld [vmem:[%s10774_s6 + $0x38c] ss:$16 sps:$4 sm:$0xff]  }
 0x22b   : > { %3186 = vmatpush1.bf16.msra.mxu0 %v8970_v33  ;;  %3144 = vmatprep.subr.bf16.mxu1 %v7712_v25  ;;  %v7716_v33 = vld [vmem:[%s10774_s6 + $0x3c0] ss:$16 sps:$4 sm:$0xff]   ;;  %v7770_v25 = vld [vmem:[%s10774_s6 + $0x388] ss:$16 sps:$4 sm:$0xff]  }
 0x22c   : > { %3187 = vmatprep.subr.bf16.mxu0 %v8978_v36  ;;  %v7721_v36 = vld [vmem:[%s10774_s6 + $0x3a4] ss:$16 sps:$4 sm:$0xff]  }
 0x22e   : > { %3145 = vmatpush1.bf16.msra.mxu1 %v7710_v19  ;;  %v7775_v19 = vld [vmem:[%s10774_s6 + $0x36c] ss:$16 sps:$4 sm:$0xff]  }
 0x22f   : > { %3188 = vmatpush1.bf16.msra.mxu0 %v8988_v40  ;;  %3146 = vmatprep.subr.bf16.mxu1 %v7715_v22  ;;  %v7719_v40 = vld [vmem:[%s10774_s6 + $0x3a0] ss:$16 sps:$4 sm:$0xff]   ;;  %v7773_v22 = vld [vmem:[%s10774_s6 + $0x368] ss:$16 sps:$4 sm:$0xff]  }
 0x230   : > { %3189 = vmatprep.subr.bf16.mxu0 %v8996_v23  ;;  %v7724_v23 = vld [vmem:[%s10774_s6 + $0x384] ss:$16 sps:$4 sm:$0xff]  }
 0x232   : > { %3147 = vmatpush2.bf16.msra.mxu1 %v7713_v29  ;;  %v7778_v29 = vld [vmem:[%s10774_s6 + $0x34c] ss:$16 sps:$4 sm:$0xff]  }
 0x233   : > { %3190 = vmatpush2.bf16.msra.mxu0 %v9006_v24  ;;  %3148 = vmatprep.subr.bf16.mxu1 %v7718_v3  ;;  %v7722_v24 = vld [vmem:[%s10774_s6 + $0x380] ss:$16 sps:$4 sm:$0xff]   ;;  %v7776_v3 = vld [vmem:[%s10774_s6 + $0x348] ss:$16 sps:$4 sm:$0xff]  }
 0x234   : > { %3191 = vmatprep.subr.bf16.mxu0 %v9014_v49  ;;  %v7727_v49 = vld [vmem:[%s10774_s6 + $0x364] ss:$16 sps:$4 sm:$0xff]  }
 0x236   : > { %3149 = vmatpush2.bf16.msra.mxu1 %v7716_v33  ;;  %v7781_v33 = vld [vmem:[%s10774_s6 + $0x32c] ss:$16 sps:$4 sm:$0xff]  }
 0x237   : > { %3192 = vmatpush2.bf16.msra.mxu0 %v9024_v52  ;;  %3150 = vmatprep.subr.bf16.mxu1 %v7721_v36  ;;  %v7725_v52 = vld [vmem:[%s10774_s6 + $0x360] ss:$16 sps:$4 sm:$0xff]   ;;  %v7779_v36 = vld [vmem:[%s10774_s6 + $0x328] ss:$16 sps:$4 sm:$0xff]  }
 0x238   : > { %3193 = vmatprep.subr.bf16.mxu0 %v9032_v59  ;;  %v7730_v59 = vld [vmem:[%s10774_s6 + $0x344] ss:$16 sps:$4 sm:$0xff]  }
 0x23a   : > { %3151 = vmatpush2.bf16.msra.mxu1 %v7719_v40  ;;  %v7784_v40 = vld [vmem:[%s10774_s6 + $0x30c] ss:$16 sps:$4 sm:$0xff]  }
 0x23b   : > { %3194 = vmatpush2.bf16.msra.mxu0 %v9042_v60  ;;  %3152 = vmatprep.subr.bf16.mxu1 %v7724_v23  ;;  %v7728_v60 = vld [vmem:[%s10774_s6 + $0x340] ss:$16 sps:$4 sm:$0xff]   ;;  %v7782_v23 = vld [vmem:[%s10774_s6 + $0x308] ss:$16 sps:$4 sm:$0xff]  }
 0x23c   : > { %3195 = vmatprep.subr.bf16.mxu0 %v9050_v26  ;;  %v7733_v26 = vld [vmem:[%s10774_s6 + $0x324] ss:$16 sps:$4 sm:$0xff]  }
 0x23e   : > { %3153 = vmatpush2.bf16.msra.mxu1 %v7722_v24  ;;  %v7795_v24 = vld [vmem:[%s10776_s8 + $0x50] sm:$0xff]  }
 0x23f   : > { %3196 = vmatpush2.bf16.msra.mxu0 %v9060_v55  ;;  %3154 = vmatprep.subr.bf16.mxu1 %v7727_v49  ;;  %v7731_v55 = vld [vmem:[%s10774_s6 + $0x320] ss:$16 sps:$4 sm:$0xff]  }
 0x240   : > { %3197 = vmatprep.subr.bf16.mxu0 %v9068_v17  ;;  %v7736_v17 = vld [vmem:[%s10774_s6 + $0x304] ss:$16 sps:$4 sm:$0xff]  }
 0x241   : > { %v7796_v49 = vld [vmem:[%s10776_s8 + $0x10] sm:$0xff]  }
 0x242   : > { %3155 = vmatpush2.bf16.msra.mxu1 %v7725_v52  ;;  %v7797_v52 = vld [vmem:[%s10776_s8 + $0x48] sm:$0xff]  }
 0x243   : > { %3198 = vmatpush2.bf16.msra.mxu0 %v9078_v37  ;;  %3156 = vmatprep.subr.bf16.mxu1 %v7730_v59  ;;  %v7734_v37 = vld [vmem:[%s10774_s6 + $0x300] ss:$16 sps:$4 sm:$0xff]   ;;  %v7798_v59 = vld [vmem:[%s10776_s8 + $0x8] sm:$0xff]  }
 0x244   : > { %3199 = vmatprep.subr.bf16.mxu0 %v9086_v5  ;;  %v7739_v5 = vld [vmem:[%s10774_s6 + $0x2ec] ss:$16 sps:$4 sm:$0xff]  }
 0x246   : > { %3157 = vmatpush2.bf16.msra.mxu1 %v7728_v60  ;;  %v7800_v60 = vld [vmem:[%s10776_s8] sm:$0xff]  }
 0x247   : > { %3200 = vmatpush2.bf16.msra.mxu0 %v9096_v31  ;;  %3158 = vmatprep.subr.bf16.mxu1 %v7733_v26  ;;  %v7737_v31 = vld [vmem:[%s10774_s6 + $0x2e8] ss:$16 sps:$4 sm:$0xff]   ;;  %v7803_v26 = vld [vmem:[%s10774_s6 + $0xe4] ss:$16 sps:$4 sm:$0xff]  }
 0x248   : > { %3201 = vmatprep.subr.bf16.mxu0 %v9104_v10  ;;  %v7742_v10 = vld [vmem:[%s10774_s6 + $0x2cc] ss:$16 sps:$4 sm:$0xff]  }
 0x24a   : > { %3159 = vmatpush2.bf16.msra.mxu1 %v7731_v55  ;;  %v7825_v55 = vld [vmem:[%s10776_s8 + $0xf8] sm:$0xff]  }
 0x24b   : > { %3202 = vmatpush2.bf16.msra.mxu0 %v9114_v18  ;;  %3160 = vmatprep.subr.bf16.mxu1 %v7736_v17  ;;  %v7740_v18 = vld [vmem:[%s10774_s6 + $0x2c8] ss:$16 sps:$4 sm:$0xff]  }
 0x24c   : > { %3203 = vmatprep.subr.bf16.mxu0 %v9122_v57  ;;  %v7745_v57 = vld [vmem:[%s10774_s6 + $0x2ac] ss:$16 sps:$4 sm:$0xff]  }
 0x24d   : > { %v7829_v17 = vld [vmem:[%s10776_s8 + $0xb8] sm:$0xff]  }
 0x24e   : > { %3161 = vmatpush2.bf16.msra.mxu1 %v7734_v37  ;;  %v7830_v37 = vld [vmem:[%s10776_s8 + $0xf0] sm:$0xff]  }
 0x24f   : > { %3204 = vmatpush2.bf16.msra.mxu0 %v9132_v58  ;;  %3216 = vmatprep.subr.bf16.mxu1 %v7739_v5  ;;  %v7743_v58 = vld [vmem:[%s10774_s6 + $0x2a8] ss:$16 sps:$4 sm:$0xff]   ;;  %v7834_v5 = vld [vmem:[%s10776_s8 + $0xb0] sm:$0xff]  }
 0x250   : > { %7208 = vmatprep.subr.bf16.mxu0 %v7785_v42 }
 0x251   : > { %3163 = vmatmul.mubr.bf16.vlgmr.msra.gmra.mxu1 %v8875_v34 }
 0x252   : > { %3206 = vmatmul.mubr.bf16.vlgmr.msra.gmra.mxu0 %v8827_v63  ;;  %3217 = vmatpush1.bf16.msra.mxu1 %v7737_v31  ;;  %v7748_v63 = vld [vmem:[%s10774_s6 + $0x28c] ss:$16 sps:$4 sm:$0xff]  }
 0x253   : > { %3248 = vmatprep.mubr.bf16.mxu1 %v8866_v2  ;;  %3218 = vmatprep.subr.bf16.mxu1 %v7742_v10  ;;  %v7746_v2 = vld [vmem:[%s10774_s6 + $0x288] ss:$16 sps:$4 sm:$0xff]  }
 0x254   : > { %7209 = vmatpush3.bf16.msra.mxu0 %v7786_v62  ;;  %v7835_v31 = vld [vmem:[%s10776_s8 + $0xe8] sm:$0xff]   ;;  %v6634_v62 = vld [vmem:[%s10777_s9] ss:$0 sm:$0xff] }
 0x255   : > { %7210 = vmatprep.subr.bf16.mxu0 %v7787_v1 }
 0x256   : > { %3219 = vmatpush1.bf16.msra.mxu1 %v7740_v18  ;;  %v7839_v18 = vld [vmem:[%s10776_s8 + $0xa8] sm:$0xff]  }
 0x257   : > { %3220 = vmatprep.subr.bf16.mxu1 %v7745_v57  ;;  %v7840_v57 = vld [vmem:[%s10776_s8 + $0xe0] sm:$0xff]  }
 0x258   : > { %7211 = vmatpush3.bf16.msra.mxu0 %v7788_v7 }
 0x259   : > { %7212 = vmatprep.subr.bf16.mxu0 %v7789_v12 }
 0x25a   : > { %3221 = vmatpush1.bf16.msra.mxu1 %v7743_v58 }
 0x25b   : > { %3222 = vmatprep.subr.bf16.mxu1 %v7748_v63  ;;  %v7844_v63 = vld [vmem:[%s10776_s8 + $0xa0] sm:$0xff]  }
 0x25c   : > { %7213 = vmatpush3.bf16.msra.mxu0 %v7790_v21  ;;  %v7850_v21 = vld [vmem:[%s10776_s8 + $0xd0] sm:$0xff]  }
 0x25d   : > { %7214 = vmatprep.subr.bf16.mxu0 %v7791_v11 }
 0x25e   : > { %3223 = vmatpush1.bf16.msra.mxu1 %v7746_v2  ;;  %v7845_v2 = vld [vmem:[%s10776_s8 + $0xd8] sm:$0xff]  }
 0x25f   : > { %3224 = vmatprep.subr.bf16.mxu1 %v7751_v61 }
 0x260   : > { %7215 = vmatpush3.bf16.msra.mxu0 %v7792_v27 }
 0x261   : > { %7216 = vmatprep.subr.bf16.mxu0 %v7793_v30  ;;  %v9694_v30 = vld [vmem:[%s8460_s19] sm:$0xff] }
 0x262   : > { %3225 = vmatpush1.bf16.msra.mxu1 %v7749_v0  ;;  %v7849_v0 = vld [vmem:[%s10776_s8 + $0x98] sm:$0xff]  }
 0x263   : > { %3226 = vmatprep.subr.bf16.mxu1 %v7754_v4 }
 0x264   : > { %7217 = vmatpush3.bf16.msra.mxu0 %v7794_v35 }
 0x265   : > { %7218 = vmatprep.subr.bf16.mxu0 %v7795_v24 }
 0x266   : > { %3227 = vmatpush1.bf16.msra.mxu1 %v7752_v6 }
 0x267   : > { %3228 = vmatprep.subr.bf16.mxu1 %v7757_v38 }
 0x268   : > { %7219 = vmatpush3.bf16.msra.mxu0 %v7796_v49 }
 0x269   : > { %7220 = vmatprep.subr.bf16.mxu0 %v7797_v52 }
 0x26a   : > { %3229 = vmatpush1.bf16.msra.mxu1 %v7755_v8 }
 0x26b   : > { %3230 = vmatprep.subr.bf16.mxu1 %v7760_v15  ;;  %v7854_v15 = vld [vmem:[%s10776_s8 + $0x90] sm:$0xff]  }
 0x26c   : > { %7221 = vmatpush3.bf16.msra.mxu0 %v7798_v59 }
 0x26e   : > { %3231 = vmatpush1.bf16.msra.mxu1 %v7758_v28 }
 0x26f   : > { %3232 = vmatprep.subr.bf16.mxu1 %v7763_v14 }
 0x272   : > { %3233 = vmatpush2.bf16.msra.mxu1 %v7761_v39 }
 0x273   : > { %3234 = vmatprep.subr.bf16.mxu1 %v7766_v41  ;;  %v7855_v41 = vld [vmem:[%s10776_s8 + $0xc8] sm:$0xff]  }
 0x276   : > { %3235 = vmatpush2.bf16.msra.mxu1 %v7764_v50  ;;  %v9703_v50 = vld [vmem:[%s8460_s19 + $0x8] sm:$0xff] }
 0x277   : > { %3236 = vmatprep.subr.bf16.mxu1 %v7769_v51 }
 0x27a   : > { %3237 = vmatpush2.bf16.msra.mxu1 %v7767_v54  ;;  %v7859_v54 = vld [vmem:[%s10776_s8 + $0x88] sm:$0xff]  }
 0x27b   : > { %3238 = vmatprep.subr.bf16.mxu1 %v7772_v16  ;;  %v7860_v16 = vld [vmem:[%s10776_s8 + $0xc0] sm:$0xff]  }
 0x27e   : > { %3239 = vmatpush2.bf16.msra.mxu1 %v7770_v25  ;;  %v7864_v25 = vld [vmem:[%s10776_s8 + $0x80] sm:$0xff]  }
 0x27f   : > { %3240 = vmatprep.subr.bf16.mxu1 %v7775_v19  ;;  %v7867_v19 = vld [vmem:[%s10774_s6 + $0x2e4] ss:$16 sps:$4 sm:$0xff]  }
 0x282   : > { %3241 = vmatpush2.bf16.msra.mxu1 %v7773_v22 }
 0x283   : > { %3242 = vmatprep.subr.bf16.mxu1 %v7778_v29 }
 0x286   : > { %3243 = vmatpush2.bf16.msra.mxu1 %v7776_v3  ;;  %v9723_v3 = vld [vmem:[%s10775_s7] sm:$0xf] }
 0x287   : > { %3244 = vmatprep.subr.bf16.mxu1 %v7781_v33 }
 0x28a   : > { %3245 = vmatpush2.bf16.msra.mxu1 %v7779_v36  ;;  %v2434_v36 = vrot.slane %v9723_v3, %v8697_v45 }
 0x28b   : > { %3246 = vmatprep.subr.bf16.mxu1 %v7784_v40  ;;  %v2430_v40 = vrot.slane %v9723_v3, %v8692_v43 }
 0x28e   : > { %3247 = vmatpush2.bf16.msra.mxu1 %v7782_v23 }
 0x28f   : > { %7230 = vmatprep.subr.bf16.mxu1 %v7825_v55 }
 0x291   : > { %3249 = vmatmul.mubr.bf16.vlgmr.msra.gmra.mxu1 %v8875_v34  ;;  %v7799_v34 = vld [vmem:[%s10776_s8 + $0x40] sm:$0xff]   ;;  %v7180_v10 = vpop.f32.mrf.mxu0 }
 0x292   : > { %7222 = vmatprep.subr.bf16.mxu0 %v7799_v34  ;;  %7231 = vmatpush3.bf16.msra.mxu1 %v7829_v17 }
 0x293   : > { %7223 = vmatpush3.bf16.msra.mxu0 %v7800_v60  ;;  %7232 = vmatprep.subr.bf16.mxu1 %v7830_v37  ;;  %v7181_v58 = vpop.f32.mrf.mxu0 }
 0x294   : > { %4454 = vmatprep.subr.bf16.mxu0 %v7803_v26  ;;  %v7182_v42 = vadd.f32 %v7181_v58, %v7180_v10 }
 0x295   : > { %v7183_v61 = vpop.f32.mrf.mxu0 }
 0x296   : > { %7233 = vmatpush3.bf16.msra.mxu1 %v7834_v5  ;;  %v2202_v6 = vadd.f32 %v7182_v42, %v6634_v62  ;;  %v7804_v42 = vld [vmem:[%s10774_s6 + $0xc0] ss:$16 sps:$4 sm:$0xff]  }
 0x297   : > { %7234 = vmatprep.subr.bf16.mxu1 %v7835_v31  ;;  %v7184_v1 = vpop.f32.mrf.mxu0 }
 0x298   : > { %v7185_v12 = vadd.f32 %v7184_v1, %v7183_v61  ;;  %v7807_v1 = vld [vmem:[%s10774_s6 + $0xa0] ss:$16 sps:$4 sm:$0xff]  }
 0x29a   : > { %7235 = vmatpush3.bf16.msra.mxu1 %v7839_v18  ;;  %v2205_v28 = vadd.f32 %v7185_v12, %v6634_v62  ;;  %v7809_v62 = vld [vmem:[%s10774_s6 + $0xa4] ss:$16 sps:$4 sm:$0xff]   ;;  %v7813_v12 = vld [vmem:[%s10774_s6 + $0x60] ss:$16 sps:$4 sm:$0xff]  }
 0x29b   : > { %7236 = vmatprep.subr.bf16.mxu1 %v7840_v57 }
 0x29e   : > { %7237 = vmatpush3.bf16.msra.mxu1 %v7844_v63 }
 0x29f   : > { %7238 = vmatprep.subr.bf16.mxu1 %v7845_v2  ;;  %v7801_v2 = vld [vmem:[%s10774_s6 + $0xe0] ss:$16 sps:$4 sm:$0xff]  }
 0x2a2   : > { %7239 = vmatpush3.bf16.msra.mxu1 %v7849_v0  ;;  %v7806_v0 = vld [vmem:[%s10774_s6 + $0xc4] ss:$16 sps:$4 sm:$0xff]  }
 0x2a3   : > { %7240 = vmatprep.subr.bf16.mxu1 %v7850_v21  ;;  %v7816_v21 = vld [vmem:[%s10774_s6 + $0x40] ss:$16 sps:$4 sm:$0xff]  }
 0x2a6   : > { %7241 = vmatpush3.bf16.msra.mxu1 %v7854_v15  ;;  %v7824_v15 = vld [vmem:[%s10774_s6 + $0x4] ss:$16 sps:$4 sm:$0xff]  }
 0x2a7   : > { %7242 = vmatprep.subr.bf16.mxu1 %v7855_v41  ;;  %v7838_v41 = vld [vmem:[%s10774_s6 + $0x1a4] ss:$16 sps:$4 sm:$0xff]  }
 0x2aa   : > { %7243 = vmatpush3.bf16.msra.mxu1 %v7859_v54  ;;  %v7843_v54 = vld [vmem:[%s10774_s6 + $0x184] ss:$16 sps:$4 sm:$0xff]  }
 0x2ab   : > { %7244 = vmatprep.subr.bf16.mxu1 %v7860_v16 }
 0x2ae   : > { %7245 = vmatpush3.bf16.msra.mxu1 %v7864_v25  ;;  %v7841_v25 = vld [vmem:[%s10774_s6 + $0x180] ss:$16 sps:$4 sm:$0xff]  }
 0x2af   : > { %4497 = vmatprep.subr.bf16.mxu1 %v7867_v19  ;;  %v7848_v19 = vld [vmem:[%s10774_s6 + $0x164] ss:$16 sps:$4 sm:$0xff]  }
 0x2d1   : > { %v7202_v4 = vpop.f32.mrf.mxu1  ;;  %v3121_v22 = vpop.f32.mrf.mxu0 }
 0x2d2   : > { %v3122_v34 = vadd.f32 %v3121_v22, %v2430_v40 }
 0x2d3   : > { %v7203_v7 = vpop.f32.mrf.mxu1  ;;  %v3123_v29 = vpop.f32.mrf.mxu0 }
 0x2d4   : > { %v7204_v38 = vadd.f32 %v7203_v7, %v7202_v4  ;;  %v3124_v52 = vadd.f32 %v3123_v29, %v2434_v36  ;;  %v7812_v4 = vld [vmem:[%s10774_s6 + $0x84] ss:$16 sps:$4 sm:$0xff]   ;;  %v7810_v7 = vld [vmem:[%s10774_s6 + $0x80] ss:$16 sps:$4 sm:$0xff]  }
 0x2d5   : > { %v7205_v8 = vpop.f32.mrf.mxu1  ;;  %v3125_v33 = vpop.f32.mrf.mxu0  ;;  %v7846_v29 = vld [vmem:[%s10774_s6 + $0x160] ss:$16 sps:$4 sm:$0xff]  }
 0x2d6   : > { %v2243_v11 = vadd.f32 %v7204_v38, %v2202_v6  ;;  %v3126_v59 = vadd.f32 %v3125_v33, %v2430_v40  ;;  %v7815_v6 = vld [vmem:[%s10774_s6 + $0x64] ss:$16 sps:$4 sm:$0xff]   ;;  %v2442_v40 = vrot.slane %v9723_v3, %v8701_v47 }
 0x2d7   : > { %v7206_v27 = vpop.f32.mrf.mxu1  ;;  %v3127_v24 = vpop.f32.mrf.mxu0  ;;  %v7818_v38 = vld [vmem:[%s10774_s6 + $0x44] ss:$16 sps:$4 sm:$0xff]  }
 0x2d8   : > { %v2249_v14 = vadd.f32 %v9694_v30, %v2243_v11  ;;  %v7207_v35 = vadd.f32 %v7206_v27, %v7205_v8  ;;  %v3128_v26 = vadd.f32 %v3127_v24, %v2434_v36  ;;  %v7821_v8 = vld [vmem:[%s10774_s6 + $0x24] ss:$16 sps:$4 sm:$0xff]   ;;  %v7819_v11 = vld [vmem:[%s10774_s6 + $0x20] ss:$16 sps:$4 sm:$0xff]   ;;  %v2438_v24 = vrot.slane %v9723_v3, %v8699_v46 }
 0x2d9   : > { %v7822_v27 = vld [vmem:[%s10774_s6] ss:$16 sps:$4 sm:$0xff]   ;;  %v7853_v33 = vld [vmem:[%s10774_s6 + $0x144] ss:$16 sps:$4 sm:$0xff]  }
 0x2da   : > { %2252 = vst.msk [vmem:[%s9691_s22] sm:$0xff] %vm2251_vm0, %v2249_v14  ;;  %v2246_v39 = vadd.f32 %v7207_v35, %v2205_v28  ;;  %v7828_v28 = vld [vmem:[%s10774_s6 + $0x1e4] ss:$16 sps:$4 sm:$0xff]   ;;  %v7826_v14 = vld [vmem:[%s10774_s6 + $0x1e0] ss:$16 sps:$4 sm:$0xff]  }
 0x2db   : > { %v7833_v35 = vld [vmem:[%s10774_s6 + $0x1c4] ss:$16 sps:$4 sm:$0xff]  }
 0x2dc   : > { %v2250_v51 = vadd.f32 %v9703_v50, %v2246_v39  ;;  %v7831_v39 = vld [vmem:[%s10774_s6 + $0x1c0] ss:$16 sps:$4 sm:$0xff]   ;;  %v7863_v3 = vld [vmem:[%s10774_s6 + $0x104] ss:$16 sps:$4 sm:$0xff]  }
 0x2de   : > { %2253 = vst.msk [vmem:[%s9691_s22 + $0x8] sm:$0xff] %vm2251_vm0, %v2250_v51  ;;  %v7836_v51 = vld [vmem:[%s10774_s6 + $0x1a0] ss:$16 sps:$4 sm:$0xff]  }
 0x311   : > { %v3164_v23 = vpop.f32.mrf.mxu1 }
 0x312   : > { %v3165_v37 = vadd.f32 %v3164_v23, %v3122_v34  ;;  %v3207_v16 = vpop.f32.mrf.mxu0  ;;  %v7851_v23 = vld [vmem:[%s10774_s6 + $0x140] ss:$16 sps:$4 sm:$0xff]  }
 0x313   : > { %v3166_v49 = vpop.f32.mrf.mxu1 }
 0x314   : > { %v3167_v55 = vadd.f32 %v3166_v49, %v3124_v52  ;;  %v3259_v58 = vmax.f32 %v3165_v37, 0.0  ;;  %v3209_v22 = vpop.f32.mrf.mxu0  ;;  %v7858_v52 = vld [vmem:[%s10774_s6 + $0x124] ss:$16 sps:$4 sm:$0xff]  }
 0x315   : > { %v3168_v60 = vpop.f32.mrf.mxu1 }
 0x316   : > { %v3169_v17 = vadd.f32 %v3168_v60, %v3126_v59  ;;  %v3260_v18 = vmax.f32 %v3167_v55, 0.0  ;;  %v3211_v36 = vpop.f32.mrf.mxu0  ;;  %v3210_v60 = vadd.f32 %v3209_v22, %v2442_v40  ;;  %v7856_v55 = vld [vmem:[%s10774_s6 + $0x120] ss:$16 sps:$4 sm:$0xff]  }
 0x317   : > { %v3170_v5 = vpop.f32.mrf.mxu1  ;;  %v7895_v22 = vld [vmem:[%s10774_s6 + $0x240] ss:$16 sps:$4 sm:$0xff]  }
 0x318   : > { %v3171_v31 = vadd.f32 %v3170_v5, %v3128_v26  ;;  %v3263_v10 = vmax.f32 %v3169_v17, 0.0  ;;  %v3213_v59 = vpop.f32.mrf.mxu0  ;;  %v3212_v26 = vadd.f32 %v3211_v36, %v2438_v24  ;;  %v3208_v17 = vadd.f32 %v3207_v16, %v2438_v24  ;;  %v7892_v16 = vld [vmem:[%s10774_s6 + $0x68] ss:$16 sps:$4 sm:$0xff]   ;;  %v7906_v36 = vld [vmem:[%s10774_s6 + $0x2c] ss:$16 sps:$4 sm:$0xff]  }
 0x319   : > { %v3214_v5 = vadd.f32 %v3213_v59, %v2442_v40  ;;  %v7901_v40 = vld [vmem:[%s10774_s6 + $0x220] ss:$16 sps:$4 sm:$0xff]   ;;  %v7909_v24 = vld [vmem:[%s10774_s6 + $0x204] ss:$16 sps:$4 sm:$0xff]   ;;  %v7910_v59 = vld [vmem:[%s10774_s6 + $0x8] ss:$16 sps:$4 sm:$0xff]  }
 0x31a   : > { %v3264_v57 = vmax.f32 %v3171_v31, 0.0  ;;  %v3267_v61 = vpack.c.bf16 %v3263_v10, %v3259_v58 }
 0x31c   : > { %v3268_v63 = vpack.c.bf16 %v3264_v57, %v3260_v18 }
 0x31e   : > { %3566 = vmatprep.mubr.bf16.mxu0 %v3268_v63  ;;  %v7861_v63 = vld [vmem:[%s10774_s6 + $0x100] ss:$16 sps:$4 sm:$0xff]  }
 0x31f   : > { %3567 = vmatmul.mubr.bf16.vlgmr.msra.gmra.mxu0 %v3267_v61  ;;  %v7870_v61 = vld [vmem:[%s10774_s6 + $0xec] ss:$16 sps:$4 sm:$0xff]  }
 0x320   : > { %4455 = vmatpush1.bf16.msra.mxu0 %v7801_v2  ;;  %4486 = vmatprep.mubr.bf16.mxu0 %v8887_v44 }
 0x321   : > { %4456 = vmatprep.subr.bf16.mxu0 %v7806_v0 }
 0x324   : > { %4457 = vmatpush1.bf16.msra.mxu0 %v7804_v42 }
 0x325   : > { %4458 = vmatprep.subr.bf16.mxu0 %v7809_v62 }
 0x328   : > { %4459 = vmatpush1.bf16.msra.mxu0 %v7807_v1 }
 0x329   : > { %4460 = vmatprep.subr.bf16.mxu0 %v7812_v4  ;;  %v7865_v4 = vld [vmem:[%s10774_s6 + $0x2e0] ss:$16 sps:$4 sm:$0xff]  }
 0x32c   : > { %4461 = vmatpush1.bf16.msra.mxu0 %v7810_v7  ;;  %v7868_v7 = vld [vmem:[%s10774_s6 + $0xe8] ss:$16 sps:$4 sm:$0xff]  }
 0x32d   : > { %4462 = vmatprep.subr.bf16.mxu0 %v7815_v6 }
 0x330   : > { %4463 = vmatpush1.bf16.msra.mxu0 %v7813_v12  ;;  %v7873_v12 = vld [vmem:[%s10774_s6 + $0x2c4] ss:$16 sps:$4 sm:$0xff]  }
 0x331   : > { %4464 = vmatprep.subr.bf16.mxu0 %v7818_v38  ;;  %v7876_v38 = vld [vmem:[%s10774_s6 + $0xcc] ss:$16 sps:$4 sm:$0xff]  }
 0x334   : > { %4465 = vmatpush1.bf16.msra.mxu0 %v7816_v21  ;;  %v7871_v21 = vld [vmem:[%s10774_s6 + $0x2c0] ss:$16 sps:$4 sm:$0xff]  }
 0x335   : > { %4466 = vmatprep.subr.bf16.mxu0 %v7821_v8  ;;  %v7874_v8 = vld [vmem:[%s10774_s6 + $0xc8] ss:$16 sps:$4 sm:$0xff]  }
 0x338   : > { %4467 = vmatpush1.bf16.msra.mxu0 %v7819_v11  ;;  %v7879_v11 = vld [vmem:[%s10774_s6 + $0x2a4] ss:$16 sps:$4 sm:$0xff]  }
 0x339   : > { %4468 = vmatprep.subr.bf16.mxu0 %v7824_v15  ;;  %v7882_v15 = vld [vmem:[%s10774_s6 + $0xac] ss:$16 sps:$4 sm:$0xff]  }
 0x33c   : > { %4469 = vmatpush1.bf16.msra.mxu0 %v7822_v27  ;;  %v7877_v27 = vld [vmem:[%s10774_s6 + $0x2a0] ss:$16 sps:$4 sm:$0xff]  }
 0x33d   : > { %4470 = vmatprep.subr.bf16.mxu0 %v7828_v28  ;;  %v7885_v28 = vld [vmem:[%s10774_s6 + $0x284] ss:$16 sps:$4 sm:$0xff]  }
 0x340   : > { %4471 = vmatpush2.bf16.msra.mxu0 %v7826_v14  ;;  %v7888_v14 = vld [vmem:[%s10774_s6 + $0x8c] ss:$16 sps:$4 sm:$0xff]  }
 0x341   : > { %4472 = vmatprep.subr.bf16.mxu0 %v7833_v35  ;;  %v7883_v35 = vld [vmem:[%s10774_s6 + $0x280] ss:$16 sps:$4 sm:$0xff]  }
 0x344   : > { %4473 = vmatpush2.bf16.msra.mxu0 %v7831_v39  ;;  %v7886_v39 = vld [vmem:[%s10774_s6 + $0x88] ss:$16 sps:$4 sm:$0xff]  }
 0x345   : > { %4474 = vmatprep.subr.bf16.mxu0 %v7838_v41  ;;  %v7891_v41 = vld [vmem:[%s10774_s6 + $0x264] ss:$16 sps:$4 sm:$0xff]  }
 0x348   : > { %4475 = vmatpush2.bf16.msra.mxu0 %v7836_v51  ;;  %v7894_v51 = vld [vmem:[%s10774_s6 + $0x6c] ss:$16 sps:$4 sm:$0xff]  }
 0x349   : > { %4476 = vmatprep.subr.bf16.mxu0 %v7843_v54  ;;  %v7889_v54 = vld [vmem:[%s10774_s6 + $0x260] ss:$16 sps:$4 sm:$0xff]  }
 0x34c   : > { %4477 = vmatpush2.bf16.msra.mxu0 %v7841_v25  ;;  %v7897_v25 = vld [vmem:[%s10774_s6 + $0x244] ss:$16 sps:$4 sm:$0xff]  }
 0x34d   : > { %4478 = vmatprep.subr.bf16.mxu0 %v7848_v19  ;;  %v7900_v19 = vld [vmem:[%s10774_s6 + $0x4c] ss:$16 sps:$4 sm:$0xff]  }
 0x350   : > { %4479 = vmatpush2.bf16.msra.mxu0 %v7846_v29  ;;  %v7898_v29 = vld [vmem:[%s10774_s6 + $0x48] ss:$16 sps:$4 sm:$0xff]  }
 0x351   : > { %v3250_v49 = vpop.f32.mrf.mxu1  ;;  %4480 = vmatprep.subr.bf16.mxu0 %v7853_v33  ;;  %v7903_v33 = vld [vmem:[%s10774_s6 + $0x224] ss:$16 sps:$4 sm:$0xff]  }
 0x352   : > { %v3251_v18 = vadd.f32 %v3250_v49, %v3208_v17  ;;  %v7912_v49 = vld [vmem:[%s10774_s6 + $0xc] ss:$16 sps:$4 sm:$0xff]   ;;  %v7921_v17 = vld [vmem:[%s10774_s6 + $0x3c4] ss:$16 sps:$4 sm:$0xff]  }
 0x353   : > { %v3252_v34 = vpop.f32.mrf.mxu1 }
 0x354   : > { %4481 = vmatpush2.bf16.msra.mxu0 %v7851_v23  ;;  %v3253_v31 = vadd.f32 %v3252_v34, %v3210_v60  ;;  %v3261_v62 = vmax.f32 %v3251_v18, 0.0  ;;  %v7904_v23 = vld [vmem:[%s10774_s6 + $0x28] ss:$16 sps:$4 sm:$0xff]   ;;  %v7915_v34 = vld [vmem:[%s10774_s6 + $0x3e4] ss:$16 sps:$4 sm:$0xff]  }
 0x355   : > { %v3254_v37 = vpop.f32.mrf.mxu1  ;;  %4482 = vmatprep.subr.bf16.mxu0 %v7858_v52  ;;  %v7907_v52 = vld [vmem:[%s10774_s6 + $0x200] ss:$16 sps:$4 sm:$0xff]   ;;  %v7918_v60 = vld [vmem:[%s10774_s6 + $0x1ec] ss:$16 sps:$4 sm:$0xff]  }
 0x356   : > { %v3255_v10 = vadd.f32 %v3254_v37, %v3212_v26  ;;  %v3262_v0 = vmax.f32 %v3253_v31, 0.0  ;;  %v7913_v26 = vld [vmem:[%s10774_s6 + $0x3e0] ss:$16 sps:$4 sm:$0xff]   ;;  %v7924_v37 = vld [vmem:[%s10774_s6 + $0x1cc] ss:$16 sps:$4 sm:$0xff]  }
 0x357   : > { %v3256_v57 = vpop.f32.mrf.mxu1  ;;  %v7927_v31 = vld [vmem:[%s10774_s6 + $0x3a4] ss:$16 sps:$4 sm:$0xff]   ;;  %v7925_v18 = vld [vmem:[%s10774_s6 + $0x3a0] ss:$16 sps:$4 sm:$0xff]  }
 0x358   : > { %v3257_v58 = vadd.f32 %v3256_v57, %v3214_v5  ;;  %4483 = vmatpush2.bf16.msra.mxu0 %v7856_v55  ;;  %v3265_v2 = vmax.f32 %v3255_v10, 0.0  ;;  %v7916_v55 = vld [vmem:[%s10774_s6 + $0x1e8] ss:$16 sps:$4 sm:$0xff]   ;;  %v7930_v10 = vld [vmem:[%s10774_s6 + $0x1ac] ss:$16 sps:$4 sm:$0xff]  }
 0x359   : > { %4484 = vmatprep.subr.bf16.mxu0 %v7863_v3  ;;  %v7919_v3 = vld [vmem:[%s10774_s6 + $0x3c0] ss:$16 sps:$4 sm:$0xff]   ;;  %v7922_v5 = vld [vmem:[%s10774_s6 + $0x1c8] ss:$16 sps:$4 sm:$0xff]  }
 0x35a   : > { %v3266_v42 = vmax.f32 %v3257_v58, 0.0  ;;  %v3269_v6 = vpack.c.bf16 %v3265_v2, %v3261_v62  ;;  %v7928_v57 = vld [vmem:[%s10774_s6 + $0x1a8] ss:$16 sps:$4 sm:$0xff]   ;;  %v7933_v58 = vld [vmem:[%s10774_s6 + $0x384] ss:$16 sps:$4 sm:$0xff]  }
 0x35b   : > { %v7931_v2 = vld [vmem:[%s10774_s6 + $0x380] ss:$16 sps:$4 sm:$0xff]  }
 0x35c   : > { %v3270_v1 = vpack.c.bf16 %v3266_v42, %v3262_v0  ;;  %4485 = vmatpush2.bf16.msra.mxu0 %v7861_v63  ;;  %v7936_v63 = vld [vmem:[%s10774_s6 + $0x18c] ss:$16 sps:$4 sm:$0xff]   ;;  %v7939_v0 = vld [vmem:[%s10774_s6 + $0x364] ss:$16 sps:$4 sm:$0xff]   ;;  %v7937_v62 = vld [vmem:[%s10774_s6 + $0x360] ss:$16 sps:$4 sm:$0xff]  }
 0x35d   : > { %4540 = vmatprep.subr.bf16.mxu0 %v7870_v61  ;;  %v7934_v61 = vld [vmem:[%s10774_s6 + $0x188] ss:$16 sps:$4 sm:$0xff]   ;;  %v7942_v42 = vld [vmem:[%s10774_s6 + $0x16c] ss:$16 sps:$4 sm:$0xff]  }
 0x35e   : > { %3607 = vmatprep.mubr.bf16.mxu1 %v3270_v1  ;;  %v7940_v1 = vld [vmem:[%s10774_s6 + $0x168] ss:$16 sps:$4 sm:$0xff]  }
 0x35f   : > { %4487 = vmatmul.mubr.bf16.vlgmr.msra.gmra.mxu0 %v8889_v48  ;;  %3608 = vmatmul.mubr.bf16.vlgmr.msra.gmra.mxu1 %v3269_v6  ;;  %v7943_v6 = vld [vmem:[%s10774_s6 + $0x340] ss:$16 sps:$4 sm:$0xff]  }
 0x360   : > { %4498 = vmatpush1.bf16.msra.mxu1 %v7865_v4  ;;  %4541 = vmatpush1.bf16.msra.mxu0 %v7868_v7  ;;  %v7945_v4 = vld [vmem:[%s10774_s6 + $0x344] ss:$16 sps:$4 sm:$0xff]   ;;  %v7948_v7 = vld [vmem:[%s10774_s6 + $0x14c] ss:$16 sps:$4 sm:$0xff]  }
 0x361   : > { %4572 = vmatprep.mubr.bf16.mxu0 %v8887_v44  ;;  %4529 = vmatprep.mubr.bf16.mxu1 %v8898_v53  ;;  %v7880_v44 = vld [vmem:[%s10774_s6 + $0xa8] ss:$16 sps:$4 sm:$0xff]  }
 0x362   : > { %4499 = vmatprep.subr.bf16.mxu1 %v7873_v12  ;;  %4542 = vmatprep.subr.bf16.mxu0 %v7876_v38  ;;  %v7946_v12 = vld [vmem:[%s10774_s6 + $0x148] ss:$16 sps:$4 sm:$0xff]   ;;  %v7951_v38 = vld [vmem:[%s10774_s6 + $0x324] ss:$16 sps:$4 sm:$0xff]  }
 0x364   : > { %4500 = vmatpush1.bf16.msra.mxu1 %v7871_v21  ;;  %4543 = vmatpush1.bf16.msra.mxu0 %v7874_v8  ;;  %v7954_v21 = vld [vmem:[%s10774_s6 + $0x12c] ss:$16 sps:$4 sm:$0xff]   ;;  %v7949_v8 = vld [vmem:[%s10774_s6 + $0x320] ss:$16 sps:$4 sm:$0xff]  }
 0x365   : > { %4501 = vmatprep.subr.bf16.mxu1 %v7879_v11  ;;  %4544 = vmatprep.subr.bf16.mxu0 %v7882_v15  ;;  %v7952_v11 = vld [vmem:[%s10774_s6 + $0x128] ss:$16 sps:$4 sm:$0xff]   ;;  %v7957_v15 = vld [vmem:[%s10774_s6 + $0x304] ss:$16 sps:$4 sm:$0xff]  }
 0x368   : > { %4502 = vmatpush1.bf16.msra.mxu1 %v7877_v27  ;;  %4545 = vmatpush1.bf16.msra.mxu0 %v7880_v44  ;;  %v7960_v27 = vld [vmem:[%s10774_s6 + $0x10c] ss:$16 sps:$4 sm:$0xff]   ;;  %v7955_v44 = vld [vmem:[%s10774_s6 + $0x300] ss:$16 sps:$4 sm:$0xff]  }
 0x369   : > { %4503 = vmatprep.subr.bf16.mxu1 %v7885_v28  ;;  %4546 = vmatprep.subr.bf16.mxu0 %v7888_v14  ;;  %v7958_v28 = vld [vmem:[%s10774_s6 + $0x108] ss:$16 sps:$4 sm:$0xff]   ;;  %v7963_v14 = vld [vmem:[%s10774_s6 + $0x2ec] ss:$16 sps:$4 sm:$0xff]  }
 0x36c   : > { %4504 = vmatpush1.bf16.msra.mxu1 %v7883_v35  ;;  %4547 = vmatpush1.bf16.msra.mxu0 %v7886_v39  ;;  %v7961_v35 = vld [vmem:[%s10774_s6 + $0x2e8] ss:$16 sps:$4 sm:$0xff]   ;;  %v7966_v39 = vld [vmem:[%s10774_s6 + $0x2cc] ss:$16 sps:$4 sm:$0xff]  }
 0x36d   : > { %4505 = vmatprep.subr.bf16.mxu1 %v7891_v41  ;;  %4548 = vmatprep.subr.bf16.mxu0 %v7894_v51  ;;  %v7964_v41 = vld [vmem:[%s10774_s6 + $0x2c8] ss:$16 sps:$4 sm:$0xff]   ;;  %v7969_v51 = vld [vmem:[%s10774_s6 + $0x2ac] ss:$16 sps:$4 sm:$0xff]  }
 0x370   : > { %4506 = vmatpush1.bf16.msra.mxu1 %v7889_v54  ;;  %4549 = vmatpush1.bf16.msra.mxu0 %v7892_v16  ;;  %v7967_v54 = vld [vmem:[%s10774_s6 + $0x2a8] ss:$16 sps:$4 sm:$0xff]   ;;  %v7975_v16 = vld [vmem:[%s10774_s6 + $0x26c] ss:$16 sps:$4 sm:$0xff]  }
 0x371   : > { %4507 = vmatprep.subr.bf16.mxu1 %v7897_v25  ;;  %4550 = vmatprep.subr.bf16.mxu0 %v7900_v19  ;;  %v7973_v25 = vld [vmem:[%s10774_s6 + $0x268] ss:$16 sps:$4 sm:$0xff]  }
 0x372   : > { %v8009_v19 = vld [vmem:[%s10776_s8 + $0x78] sm:$0xff]  }
 0x374   : > { %4508 = vmatpush1.bf16.msra.mxu1 %v7895_v22  ;;  %4551 = vmatpush1.bf16.msra.mxu0 %v7898_v29  ;;  %v8010_v22 = vld [vmem:[%s10776_s8 + $0x38] sm:$0xff]   ;;  %v8011_v29 = vld [vmem:[%s10776_s8 + $0x70] sm:$0xff]  }
 0x375   : > { %4509 = vmatprep.subr.bf16.mxu1 %v7903_v33  ;;  %4552 = vmatprep.subr.bf16.mxu0 %v7906_v36  ;;  %v7978_v33 = vld [vmem:[%s10774_s6 + $0x24c] ss:$16 sps:$4 sm:$0xff]   ;;  %v8012_v36 = vld [vmem:[%s10776_s8 + $0x30] sm:$0xff]  }
 0x378   : > { %4510 = vmatpush1.bf16.msra.mxu1 %v7901_v40  ;;  %4553 = vmatpush1.bf16.msra.mxu0 %v7904_v23  ;;  %v7976_v40 = vld [vmem:[%s10774_s6 + $0x248] ss:$16 sps:$4 sm:$0xff]  }
 0x379   : > { %4511 = vmatprep.subr.bf16.mxu1 %v7909_v24  ;;  %4554 = vmatprep.subr.bf16.mxu0 %v7912_v49  ;;  %v8013_v23 = vld [vmem:[%s10776_s8 + $0x68] sm:$0xff]  }
 0x37a   : > { %v7981_v24 = vld [vmem:[%s10774_s6 + $0x22c] ss:$16 sps:$4 sm:$0xff]  }
 0x37b   : > { %v8014_v49 = vld [vmem:[%s10776_s8 + $0x28] sm:$0xff]  }
 0x37c   : > { %4512 = vmatpush1.bf16.msra.mxu1 %v7907_v52  ;;  %4555 = vmatpush1.bf16.msra.mxu0 %v7910_v59  ;;  %v7979_v52 = vld [vmem:[%s10774_s6 + $0x228] ss:$16 sps:$4 sm:$0xff]   ;;  %v8015_v59 = vld [vmem:[%s10776_s8 + $0x60] sm:$0xff]  }
 0x37d   : > { %4513 = vmatprep.subr.bf16.mxu1 %v7915_v34  ;;  %4556 = vmatprep.subr.bf16.mxu0 %v7918_v60  ;;  %v7984_v34 = vld [vmem:[%s10774_s6 + $0x20c] ss:$16 sps:$4 sm:$0xff]   ;;  %v8016_v60 = vld [vmem:[%s10776_s8 + $0x20] sm:$0xff]  }
 0x380   : > { %4514 = vmatpush2.bf16.msra.mxu1 %v7913_v26  ;;  %4557 = vmatpush2.bf16.msra.mxu0 %v7916_v55  ;;  %v7982_v26 = vld [vmem:[%s10774_s6 + $0x208] ss:$16 sps:$4 sm:$0xff]  }
 0x381   : > { %4515 = vmatprep.subr.bf16.mxu1 %v7921_v17  ;;  %4558 = vmatprep.subr.bf16.mxu0 %v7924_v37  ;;  %v8017_v55 = vld [vmem:[%s10776_s8 + $0x58] sm:$0xff]  }
 0x382   : > { %v7987_v17 = vld [vmem:[%s10774_s6 + $0x3ec] ss:$16 sps:$4 sm:$0xff]  }
 0x383   : > { %v8018_v37 = vld [vmem:[%s10776_s8 + $0x18] sm:$0xff]  }
 0x384   : > { %4516 = vmatpush2.bf16.msra.mxu1 %v7919_v3  ;;  %4559 = vmatpush2.bf16.msra.mxu0 %v7922_v5  ;;  %v7985_v3 = vld [vmem:[%s10774_s6 + $0x3e8] ss:$16 sps:$4 sm:$0xff]   ;;  %v7990_v5 = vld [vmem:[%s10774_s6 + $0x3cc] ss:$16 sps:$4 sm:$0xff]  }
 0x385   : > { %4517 = vmatprep.subr.bf16.mxu1 %v7927_v31  ;;  %4560 = vmatprep.subr.bf16.mxu0 %v7930_v10  ;;  %v7988_v31 = vld [vmem:[%s10774_s6 + $0x3c8] ss:$16 sps:$4 sm:$0xff]   ;;  %v7993_v10 = vld [vmem:[%s10774_s6 + $0x3ac] ss:$16 sps:$4 sm:$0xff]  }
 0x388   : > { %4518 = vmatpush2.bf16.msra.mxu1 %v7925_v18  ;;  %4561 = vmatpush2.bf16.msra.mxu0 %v7928_v57  ;;  %v7991_v18 = vld [vmem:[%s10774_s6 + $0x3a8] ss:$16 sps:$4 sm:$0xff]   ;;  %v7996_v57 = vld [vmem:[%s10774_s6 + $0x38c] ss:$16 sps:$4 sm:$0xff]  }
 0x389   : > { %4519 = vmatprep.subr.bf16.mxu1 %v7933_v58  ;;  %4562 = vmatprep.subr.bf16.mxu0 %v7936_v63  ;;  %v7994_v58 = vld [vmem:[%s10774_s6 + $0x388] ss:$16 sps:$4 sm:$0xff]   ;;  %v7999_v63 = vld [vmem:[%s10774_s6 + $0x36c] ss:$16 sps:$4 sm:$0xff]  }
 0x38c   : > { %4520 = vmatpush2.bf16.msra.mxu1 %v7931_v2  ;;  %4563 = vmatpush2.bf16.msra.mxu0 %v7934_v61  ;;  %v7997_v2 = vld [vmem:[%s10774_s6 + $0x368] ss:$16 sps:$4 sm:$0xff]   ;;  %v8002_v61 = vld [vmem:[%s10774_s6 + $0x34c] ss:$16 sps:$4 sm:$0xff]  }
 0x38d   : > { %4521 = vmatprep.subr.bf16.mxu1 %v7939_v0  ;;  %4564 = vmatprep.subr.bf16.mxu0 %v7942_v42  ;;  %v8000_v0 = vld [vmem:[%s10774_s6 + $0x348] ss:$16 sps:$4 sm:$0xff]   ;;  %v8005_v42 = vld [vmem:[%s10774_s6 + $0x32c] ss:$16 sps:$4 sm:$0xff]  }
 0x390   : > { %4522 = vmatpush2.bf16.msra.mxu1 %v7937_v62  ;;  %4565 = vmatpush2.bf16.msra.mxu0 %v7940_v1  ;;  %v8003_v62 = vld [vmem:[%s10774_s6 + $0x328] ss:$16 sps:$4 sm:$0xff]   ;;  %v8008_v1 = vld [vmem:[%s10774_s6 + $0x30c] ss:$16 sps:$4 sm:$0xff]  }
 0x391   : > { %4523 = vmatprep.subr.bf16.mxu1 %v7945_v4  ;;  %4566 = vmatprep.subr.bf16.mxu0 %v7948_v7  ;;  %v8006_v4 = vld [vmem:[%s10774_s6 + $0x308] ss:$16 sps:$4 sm:$0xff]   ;;  %v8019_v7 = vld [vmem:[%s10776_s8 + $0x50] sm:$0xff]  }
 0x394   : > { %4524 = vmatpush2.bf16.msra.mxu1 %v7943_v6  ;;  %4567 = vmatpush2.bf16.msra.mxu0 %v7946_v12  ;;  %v8020_v6 = vld [vmem:[%s10776_s8 + $0x10] sm:$0xff]   ;;  %v8021_v12 = vld [vmem:[%s10776_s8 + $0x48] sm:$0xff]  }
 0x395   : > { %4525 = vmatprep.subr.bf16.mxu1 %v7951_v38  ;;  %4568 = vmatprep.subr.bf16.mxu0 %v7954_v21  ;;  %v8022_v38 = vld [vmem:[%s10776_s8 + $0x8] sm:$0xff]   ;;  %v8024_v21 = vld [vmem:[%s10776_s8] sm:$0xff]  }
 0x398   : > { %4526 = vmatpush2.bf16.msra.mxu1 %v7949_v8  ;;  %4569 = vmatpush2.bf16.msra.mxu0 %v7952_v11  ;;  %v8027_v8 = vld [vmem:[%s10774_s6 + $0xe4] ss:$16 sps:$4 sm:$0xff]   ;;  %v8049_v11 = vld [vmem:[%s10776_s8 + $0xf8] sm:$0xff]  }
 0x399   : > { %4527 = vmatprep.subr.bf16.mxu1 %v7957_v15  ;;  %4570 = vmatprep.subr.bf16.mxu0 %v7960_v27  ;;  %v8053_v15 = vld [vmem:[%s10776_s8 + $0xb8] sm:$0xff]   ;;  %v8054_v27 = vld [vmem:[%s10776_s8 + $0xf0] sm:$0xff]  }
 0x39c   : > { %4528 = vmatpush2.bf16.msra.mxu1 %v7955_v44  ;;  %4571 = vmatpush2.bf16.msra.mxu0 %v7958_v28  ;;  %v8058_v44 = vld [vmem:[%s10776_s8 + $0xb0] sm:$0xff]   ;;  %v8059_v28 = vld [vmem:[%s10776_s8 + $0xe8] sm:$0xff]  }
 0x39d   : > { %4583 = vmatprep.subr.bf16.mxu1 %v7963_v14  ;;  %7252 = vmatprep.subr.bf16.mxu0 %v8009_v19 }
 0x39f   : > { %4530 = vmatmul.mubr.bf16.vlgmr.msra.gmra.mxu1 %v8904_v56  ;;  %4573 = vmatmul.mubr.bf16.vlgmr.msra.gmra.mxu0 %v8889_v48  ;;  %v7972_v48 = vld [vmem:[%s10774_s6 + $0x28c] ss:$16 sps:$4 sm:$0xff]  }
 0x3a0   : > { %4584 = vmatpush1.bf16.msra.mxu1 %v7961_v35  ;;  %4615 = vmatprep.mubr.bf16.mxu1 %v8898_v53  ;;  %v7970_v53 = vld [vmem:[%s10774_s6 + $0x288] ss:$16 sps:$4 sm:$0xff]  }
 0x3a1   : > { %4585 = vmatprep.subr.bf16.mxu1 %v7966_v39  ;;  %7253 = vmatpush3.bf16.msra.mxu0 %v8010_v22  ;;  %v8063_v35 = vld [vmem:[%s10776_s8 + $0xa8] sm:$0xff]   ;;  %v8064_v39 = vld [vmem:[%s10776_s8 + $0xe0] sm:$0xff]  }
 0x3a2   : > { %7254 = vmatprep.subr.bf16.mxu0 %v8011_v29 }
 0x3a4   : > { %4586 = vmatpush1.bf16.msra.mxu1 %v7964_v41 }
 0x3a5   : > { %4587 = vmatprep.subr.bf16.mxu1 %v7969_v51  ;;  %7255 = vmatpush3.bf16.msra.mxu0 %v8012_v36  ;;  %v8068_v51 = vld [vmem:[%s10776_s8 + $0xa0] sm:$0xff]  }
 0x3a6   : > { %7256 = vmatprep.subr.bf16.mxu0 %v8013_v23  ;;  %v8074_v23 = vld [vmem:[%s10776_s8 + $0xd0] sm:$0xff]  }
 0x3a8   : > { %4588 = vmatpush1.bf16.msra.mxu1 %v7967_v54  ;;  %v8069_v54 = vld [vmem:[%s10776_s8 + $0xd8] sm:$0xff]  }
 0x3a9   : > { %4589 = vmatprep.subr.bf16.mxu1 %v7972_v48  ;;  %7257 = vmatpush3.bf16.msra.mxu0 %v8014_v49 }
 0x3aa   : > { %7258 = vmatprep.subr.bf16.mxu0 %v8015_v59 }
 0x3ac   : > { %4590 = vmatpush1.bf16.msra.mxu1 %v7970_v53  ;;  %v8073_v53 = vld [vmem:[%s10776_s8 + $0x98] sm:$0xff]  }
 0x3ad   : > { %4591 = vmatprep.subr.bf16.mxu1 %v7975_v16  ;;  %7259 = vmatpush3.bf16.msra.mxu0 %v8016_v60 }
 0x3ae   : > { %7260 = vmatprep.subr.bf16.mxu0 %v8017_v55 }
 0x3b0   : > { %4592 = vmatpush1.bf16.msra.mxu1 %v7973_v25  ;;  %v6796_v25 = vld [vmem:[%s10777_s9] ss:$0 sm:$0xff] }
 0x3b1   : > { %4593 = vmatprep.subr.bf16.mxu1 %v7978_v33  ;;  %7261 = vmatpush3.bf16.msra.mxu0 %v8018_v37 }
 0x3b2   : > { %7262 = vmatprep.subr.bf16.mxu0 %v8019_v7 }
 0x3b4   : > { %4594 = vmatpush1.bf16.msra.mxu1 %v7976_v40 }
 0x3b5   : > { %4595 = vmatprep.subr.bf16.mxu1 %v7981_v24  ;;  %7263 = vmatpush3.bf16.msra.mxu0 %v8020_v6 }
 0x3b6   : > { %7264 = vmatprep.subr.bf16.mxu0 %v8021_v12 }
 0x3b8   : > { %4596 = vmatpush1.bf16.msra.mxu1 %v7979_v52  ;;  %v8078_v52 = vld [vmem:[%s10776_s8 + $0x90] sm:$0xff]  }
 0x3b9   : > { %4597 = vmatprep.subr.bf16.mxu1 %v7984_v34  ;;  %7265 = vmatpush3.bf16.msra.mxu0 %v8022_v38 }
 0x3bc   : > { %4598 = vmatpush1.bf16.msra.mxu1 %v7982_v26 }
 0x3bd   : > { %4599 = vmatprep.subr.bf16.mxu1 %v7987_v17  ;;  %v8079_v17 = vld [vmem:[%s10776_s8 + $0xc8] sm:$0xff]  }
 0x3c0   : > { %4600 = vmatpush2.bf16.msra.mxu1 %v7985_v3  ;;  %v8083_v3 = vld [vmem:[%s10776_s8 + $0x88] sm:$0xff]  }
 0x3c1   : > { %4601 = vmatprep.subr.bf16.mxu1 %v7990_v5  ;;  %v8088_v5 = vld [vmem:[%s10776_s8 + $0x80] sm:$0xff]  }
 0x3c4   : > { %4602 = vmatpush2.bf16.msra.mxu1 %v7988_v31 }
 0x3c5   : > { %4603 = vmatprep.subr.bf16.mxu1 %v7993_v10 }
 0x3c8   : > { %4604 = vmatpush2.bf16.msra.mxu1 %v7991_v18  ;;  %v10233_v18 = vld [vmem:[%s10775_s7] sm:$0xf] }
 0x3c9   : > { %4605 = vmatprep.subr.bf16.mxu1 %v7996_v57 }
 0x3cc   : > { %4606 = vmatpush2.bf16.msra.mxu1 %v7994_v58  ;;  %v3801_v58 = vrot.slane %v10233_v18, %v8697_v45 }
 0x3cd   : > { %4607 = vmatprep.subr.bf16.mxu1 %v7999_v63  ;;  %v3797_v63 = vrot.slane %v10233_v18, %v8692_v43 }
 0x3d0   : > { %4608 = vmatpush2.bf16.msra.mxu1 %v7997_v2 }
 0x3d1   : > { %4609 = vmatprep.subr.bf16.mxu1 %v8002_v61 }
 0x3d4   : > { %4610 = vmatpush2.bf16.msra.mxu1 %v8000_v0 }
 0x3d5   : > { %4611 = vmatprep.subr.bf16.mxu1 %v8005_v42 }
 0x3d8   : > { %4612 = vmatpush2.bf16.msra.mxu1 %v8003_v62 }
 0x3d9   : > { %4613 = vmatprep.subr.bf16.mxu1 %v8008_v1 }
 0x3dc   : > { %4614 = vmatpush2.bf16.msra.mxu1 %v8006_v4 }
 0x3dd   : > { %7274 = vmatprep.subr.bf16.mxu1 %v8049_v11 }
 0x3df   : > { %4616 = vmatmul.mubr.bf16.vlgmr.msra.gmra.mxu1 %v8904_v56  ;;  %v8023_v56 = vld [vmem:[%s10776_s8 + $0x40] sm:$0xff]   ;;  %v7224_v14 = vpop.f32.mrf.mxu0 }
 0x3e0   : > { %7266 = vmatprep.subr.bf16.mxu0 %v8023_v56  ;;  %7275 = vmatpush3.bf16.msra.mxu1 %v8053_v15 }
 0x3e1   : > { %7267 = vmatpush3.bf16.msra.mxu0 %v8024_v21  ;;  %7276 = vmatprep.subr.bf16.mxu1 %v8054_v27  ;;  %v7225_v41 = vpop.f32.mrf.mxu0 }
 0x3e2   : > { %5821 = vmatprep.subr.bf16.mxu0 %v8027_v8  ;;  %v7226_v16 = vadd.f32 %v7225_v41, %v7224_v14  ;;  %v8033_v41 = vld [vmem:[%s10774_s6 + $0xa4] ss:$16 sps:$4 sm:$0xff]  }
 0x3e3   : > { %v7227_v48 = vpop.f32.mrf.mxu0 }
 0x3e4   : > { %7277 = vmatpush3.bf16.msra.mxu1 %v8058_v44  ;;  %v3569_v33 = vadd.f32 %v7226_v16, %v6796_v25  ;;  %v8037_v16 = vld [vmem:[%s10774_s6 + $0x60] ss:$16 sps:$4 sm:$0xff]  }
 0x3e5   : > { %7278 = vmatprep.subr.bf16.mxu1 %v8059_v28  ;;  %v7228_v19 = vpop.f32.mrf.mxu0  ;;  %v8025_v28 = vld [vmem:[%s10774_s6 + $0xe0] ss:$16 sps:$4 sm:$0xff]  }
 0x3e6   : > { %v7229_v36 = vadd.f32 %v7228_v19, %v7227_v48  ;;  %v8034_v48 = vld [vmem:[%s10774_s6 + $0x80] ss:$16 sps:$4 sm:$0xff]  }
 0x3e7   : > { %v8040_v19 = vld [vmem:[%s10774_s6 + $0x40] ss:$16 sps:$4 sm:$0xff]  }
 0x3e8   : > { %7279 = vmatpush3.bf16.msra.mxu1 %v8063_v35  ;;  %v3572_v34 = vadd.f32 %v7229_v36, %v6796_v25  ;;  %v8030_v35 = vld [vmem:[%s10774_s6 + $0xc4] ss:$16 sps:$4 sm:$0xff]   ;;  %v8046_v36 = vld [vmem:[%s10774_s6] ss:$16 sps:$4 sm:$0xff]  }
 0x3e9   : > { %7280 = vmatprep.subr.bf16.mxu1 %v8064_v39  ;;  %v8028_v39 = vld [vmem:[%s10774_s6 + $0xc0] ss:$16 sps:$4 sm:$0xff]   ;;  %v8042_v25 = vld [vmem:[%s10774_s6 + $0x44] ss:$16 sps:$4 sm:$0xff]  }
 0x3ec   : > { %7281 = vmatpush3.bf16.msra.mxu1 %v8068_v51  ;;  %v8031_v51 = vld [vmem:[%s10774_s6 + $0xa0] ss:$16 sps:$4 sm:$0xff]  }
 0x3ed   : > { %7282 = vmatprep.subr.bf16.mxu1 %v8069_v54  ;;  %v8036_v54 = vld [vmem:[%s10774_s6 + $0x84] ss:$16 sps:$4 sm:$0xff]  }
 0x3f0   : > { %7283 = vmatpush3.bf16.msra.mxu1 %v8073_v53  ;;  %v8039_v53 = vld [vmem:[%s10774_s6 + $0x64] ss:$16 sps:$4 sm:$0xff]  }
 0x3f1   : > { %7284 = vmatprep.subr.bf16.mxu1 %v8074_v23  ;;  %v8050_v23 = vld [vmem:[%s10774_s6 + $0x1e0] ss:$16 sps:$4 sm:$0xff]  }
 0x3f4   : > { %7285 = vmatpush3.bf16.msra.mxu1 %v8078_v52  ;;  %v8062_v52 = vld [vmem:[%s10774_s6 + $0x1a4] ss:$16 sps:$4 sm:$0xff]  }
 0x3f5   : > { %7286 = vmatprep.subr.bf16.mxu1 %v8079_v17 }
 0x3f8   : > { %7287 = vmatpush3.bf16.msra.mxu1 %v8083_v3  ;;  %v8077_v3 = vld [vmem:[%s10774_s6 + $0x144] ss:$16 sps:$4 sm:$0xff]  }
 0x41f   : > { %v7246_v22 = vpop.f32.mrf.mxu1  ;;  %v4488_v31 = vpop.f32.mrf.mxu0 }
 0x420   : > { %v4489_v1 = vadd.f32 %v4488_v31, %v3797_v63  ;;  %v3805_v31 = vrot.slane %v10233_v18, %v8699_v46 }
 0x421   : > { %v7247_v29 = vpop.f32.mrf.mxu1  ;;  %v4490_v10 = vpop.f32.mrf.mxu0 }
 0x422   : > { %v7248_v40 = vadd.f32 %v7247_v29, %v7246_v22  ;;  %v4491_v42 = vadd.f32 %v4490_v10, %v3801_v58  ;;  %v8045_v22 = vld [vmem:[%s10774_s6 + $0x24] ss:$16 sps:$4 sm:$0xff]   ;;  %v8043_v29 = vld [vmem:[%s10774_s6 + $0x20] ss:$16 sps:$4 sm:$0xff]  }
 0x423   : > { %v7249_v24 = vpop.f32.mrf.mxu1  ;;  %v4492_v57 = vpop.f32.mrf.mxu0 }
 0x424   : > { %v3610_v49 = vadd.f32 %v7248_v40, %v3569_v33  ;;  %v4493_v62 = vadd.f32 %v4492_v57, %v3797_v63  ;;  %v8048_v33 = vld [vmem:[%s10774_s6 + $0x4] ss:$16 sps:$4 sm:$0xff]  }
 0x425   : > { %v7250_v59 = vpop.f32.mrf.mxu1  ;;  %v4494_v61 = vpop.f32.mrf.mxu0  ;;  %v8052_v40 = vld [vmem:[%s10774_s6 + $0x1e4] ss:$16 sps:$4 sm:$0xff]  }
 0x426   : > { %v3616_v60 = vadd.f32 %v9694_v30, %v3610_v49  ;;  %v7251_v26 = vadd.f32 %v7250_v59, %v7249_v24  ;;  %v8084_v30 = vld [vmem:[%s10776_s8 + $0xc0] sm:$0xff]   ;;  %v4495_v7 = vadd.f32 %v4494_v61, %v3801_v58 }
 0x427   : > { %7288 = vmatprep.subr.bf16.mxu1 %v8084_v30  ;;  %v8057_v24 = vld [vmem:[%s10774_s6 + $0x1c4] ss:$16 sps:$4 sm:$0xff]   ;;  %v8055_v49 = vld [vmem:[%s10774_s6 + $0x1c0] ss:$16 sps:$4 sm:$0xff]  }
 0x428   : > { %6829 = vst.msk [vmem:[%s9691_s22 + $0x10] sm:$0xff] %vm2251_vm0, %v3616_v60  ;;  %v3613_v55 = vadd.f32 %v7251_v26, %v3572_v34  ;;  %7289 = vmatpush3.bf16.msra.mxu1 %v8088_v5  ;;  %v8060_v59 = vld [vmem:[%s10774_s6 + $0x1a0] ss:$16 sps:$4 sm:$0xff]   ;;  %v8067_v34 = vld [vmem:[%s10774_s6 + $0x184] ss:$16 sps:$4 sm:$0xff]   ;;  %v3809_v5 = vrot.slane %v10233_v18, %v8701_v47 }
 0x429   : > { %v8065_v26 = vld [vmem:[%s10774_s6 + $0x180] ss:$16 sps:$4 sm:$0xff]   ;;  %v8082_v57 = vld [vmem:[%s10774_s6 + $0x124] ss:$16 sps:$4 sm:$0xff]  }
 0x42a   : > { %v3617_v37 = vadd.f32 %v9703_v50, %v3613_v55  ;;  %v8091_v50 = vld [vmem:[%s10774_s6 + $0x2e4] ss:$16 sps:$4 sm:$0xff]  }
 0x42b   : > { %5864 = vmatprep.subr.bf16.mxu1 %v8091_v50  ;;  %v8072_v55 = vld [vmem:[%s10774_s6 + $0x164] ss:$16 sps:$4 sm:$0xff]   ;;  %v8075_v50 = vld [vmem:[%s10774_s6 + $0x140] ss:$16 sps:$4 sm:$0xff]  }
 0x42c   : > { %6830 = vst.msk [vmem:[%s9691_s22 + $0x18] sm:$0xff] %vm2251_vm0, %v3617_v37  ;;  %v8070_v37 = vld [vmem:[%s10774_s6 + $0x160] ss:$16 sps:$4 sm:$0xff]   ;;  %v8087_v18 = vld [vmem:[%s10774_s6 + $0x104] ss:$16 sps:$4 sm:$0xff]  }
 0x45f   : > { %v4531_v2 = vpop.f32.mrf.mxu1  ;;  %v4574_v60 = vpop.f32.mrf.mxu0 }
 0x460   : > { %v4532_v38 = vadd.f32 %v4531_v2, %v4489_v1 }
 0x461   : > { %v4533_v0 = vpop.f32.mrf.mxu1  ;;  %v4576_v17 = vpop.f32.mrf.mxu0 }
 0x462   : > { %v4534_v6 = vadd.f32 %v4533_v0, %v4491_v42  ;;  %v4626_v27 = vmax.f32 %v4532_v38, 0.0  ;;  %v4577_v2 = vadd.f32 %v4576_v17, %v3809_v5  ;;  %v8080_v0 = vld [vmem:[%s10774_s6 + $0x120] ss:$16 sps:$4 sm:$0xff]   ;;  %v4575_v42 = vadd.f32 %v4574_v60, %v3805_v31  ;;  %v8130_v60 = vld [vmem:[%s10774_s6 + $0x2c] ss:$16 sps:$4 sm:$0xff]  }
 0x463   : > { %v4535_v4 = vpop.f32.mrf.mxu1  ;;  %v4578_v30 = vpop.f32.mrf.mxu0  ;;  %v8133_v17 = vld [vmem:[%s10774_s6 + $0x204] ss:$16 sps:$4 sm:$0xff]  }
 0x464   : > { %v4536_v12 = vadd.f32 %v4535_v4, %v4493_v62  ;;  %v4627_v11 = vmax.f32 %v4534_v6, 0.0  ;;  %v4579_v61 = vadd.f32 %v4578_v30, %v3805_v31  ;;  %v8134_v30 = vld [vmem:[%s10774_s6 + $0x8] ss:$16 sps:$4 sm:$0xff]   ;;  %v8137_v31 = vld [vmem:[%s10774_s6 + $0x3e0] ss:$16 sps:$4 sm:$0xff]  }
 0x465   : > { %v4537_v56 = vpop.f32.mrf.mxu1  ;;  %v4580_v58 = vpop.f32.mrf.mxu0 }
 0x466   : > { %v4538_v21 = vadd.f32 %v4537_v56, %v4495_v7  ;;  %v4630_v8 = vmax.f32 %v4536_v12, 0.0  ;;  %v4581_v1 = vadd.f32 %v4580_v58, %v3809_v5  ;;  %v8085_v56 = vld [vmem:[%s10774_s6 + $0x100] ss:$16 sps:$4 sm:$0xff]   ;;  %v8139_v5 = vld [vmem:[%s10774_s6 + $0x3e4] ss:$16 sps:$4 sm:$0xff]  }
 0x467   : > { %v8148_v58 = vld [vmem:[%s10774_s6 + $0x1cc] ss:$16 sps:$4 sm:$0xff]  }
 0x468   : > { %v4631_v15 = vmax.f32 %v4538_v21, 0.0  ;;  %v4634_v14 = vpack.c.bf16 %v4630_v8, %v4626_v27  ;;  %v8094_v8 = vld [vmem:[%s10774_s6 + $0xec] ss:$16 sps:$4 sm:$0xff]  }
 0x46a   : > { %v4635_v44 = vpack.c.bf16 %v4631_v15, %v4627_v11 }
 0x46c   : > { %4933 = vmatprep.mubr.bf16.mxu0 %v4635_v44 }
 0x46d   : > { %4934 = vmatmul.mubr.bf16.vlgmr.msra.gmra.mxu0 %v4634_v14  ;;  %v8092_v14 = vld [vmem:[%s10774_s6 + $0xe8] ss:$16 sps:$4 sm:$0xff]  }
 0x46e   : > { %5822 = vmatpush1.bf16.msra.mxu0 %v8025_v28  ;;  %5853 = vmatprep.mubr.bf16.mxu0 %v8923_v9  ;;  %v8089_v28 = vld [vmem:[%s10774_s6 + $0x2e0] ss:$16 sps:$4 sm:$0xff]  }
 0x46f   : > { %5823 = vmatprep.subr.bf16.mxu0 %v8030_v35 }
 0x472   : > { %5824 = vmatpush1.bf16.msra.mxu0 %v8028_v39  ;;  %v8097_v39 = vld [vmem:[%s10774_s6 + $0x2c4] ss:$16 sps:$4 sm:$0xff]  }
 0x473   : > { %5825 = vmatprep.subr.bf16.mxu0 %v8033_v41  ;;  %v8100_v41 = vld [vmem:[%s10774_s6 + $0xcc] ss:$16 sps:$4 sm:$0xff]  }
 0x476   : > { %5826 = vmatpush1.bf16.msra.mxu0 %v8031_v51  ;;  %v8095_v51 = vld [vmem:[%s10774_s6 + $0x2c0] ss:$16 sps:$4 sm:$0xff]  }
 0x477   : > { %5827 = vmatprep.subr.bf16.mxu0 %v8036_v54  ;;  %v8098_v54 = vld [vmem:[%s10774_s6 + $0xc8] ss:$16 sps:$4 sm:$0xff]  }
 0x47a   : > { %5828 = vmatpush1.bf16.msra.mxu0 %v8034_v48  ;;  %v8103_v48 = vld [vmem:[%s10774_s6 + $0x2a4] ss:$16 sps:$4 sm:$0xff]  }
 0x47b   : > { %5829 = vmatprep.subr.bf16.mxu0 %v8039_v53  ;;  %v8106_v53 = vld [vmem:[%s10774_s6 + $0xac] ss:$16 sps:$4 sm:$0xff]  }
 0x47e   : > { %5830 = vmatpush1.bf16.msra.mxu0 %v8037_v16  ;;  %v8101_v16 = vld [vmem:[%s10774_s6 + $0x2a0] ss:$16 sps:$4 sm:$0xff]  }
 0x47f   : > { %5831 = vmatprep.subr.bf16.mxu0 %v8042_v25  ;;  %v8109_v25 = vld [vmem:[%s10774_s6 + $0x284] ss:$16 sps:$4 sm:$0xff]  }
 0x482   : > { %5832 = vmatpush1.bf16.msra.mxu0 %v8040_v19  ;;  %v8112_v19 = vld [vmem:[%s10774_s6 + $0x8c] ss:$16 sps:$4 sm:$0xff]  }
 0x483   : > { %5833 = vmatprep.subr.bf16.mxu0 %v8045_v22  ;;  %v8107_v22 = vld [vmem:[%s10774_s6 + $0x280] ss:$16 sps:$4 sm:$0xff]  }
 0x486   : > { %5834 = vmatpush1.bf16.msra.mxu0 %v8043_v29  ;;  %v8110_v29 = vld [vmem:[%s10774_s6 + $0x88] ss:$16 sps:$4 sm:$0xff]  }
 0x487   : > { %5835 = vmatprep.subr.bf16.mxu0 %v8048_v33  ;;  %v8115_v33 = vld [vmem:[%s10774_s6 + $0x264] ss:$16 sps:$4 sm:$0xff]  }
 0x48a   : > { %5836 = vmatpush1.bf16.msra.mxu0 %v8046_v36  ;;  %v8118_v36 = vld [vmem:[%s10774_s6 + $0x6c] ss:$16 sps:$4 sm:$0xff]  }
 0x48b   : > { %5837 = vmatprep.subr.bf16.mxu0 %v8052_v40  ;;  %v8113_v40 = vld [vmem:[%s10774_s6 + $0x260] ss:$16 sps:$4 sm:$0xff]  }
 0x48e   : > { %5838 = vmatpush2.bf16.msra.mxu0 %v8050_v23  ;;  %v8116_v23 = vld [vmem:[%s10774_s6 + $0x68] ss:$16 sps:$4 sm:$0xff]  }
 0x48f   : > { %5839 = vmatprep.subr.bf16.mxu0 %v8057_v24  ;;  %v8121_v24 = vld [vmem:[%s10774_s6 + $0x244] ss:$16 sps:$4 sm:$0xff]  }
 0x492   : > { %5840 = vmatpush2.bf16.msra.mxu0 %v8055_v49  ;;  %v8124_v49 = vld [vmem:[%s10774_s6 + $0x4c] ss:$16 sps:$4 sm:$0xff]  }
 0x493   : > { %5841 = vmatprep.subr.bf16.mxu0 %v8062_v52  ;;  %v8119_v52 = vld [vmem:[%s10774_s6 + $0x240] ss:$16 sps:$4 sm:$0xff]  }
 0x496   : > { %5842 = vmatpush2.bf16.msra.mxu0 %v8060_v59  ;;  %v8122_v59 = vld [vmem:[%s10774_s6 + $0x48] ss:$16 sps:$4 sm:$0xff]  }
 0x497   : > { %5843 = vmatprep.subr.bf16.mxu0 %v8067_v34  ;;  %v8127_v34 = vld [vmem:[%s10774_s6 + $0x224] ss:$16 sps:$4 sm:$0xff]  }
 0x49a   : > { %5844 = vmatpush2.bf16.msra.mxu0 %v8065_v26  ;;  %v8125_v26 = vld [vmem:[%s10774_s6 + $0x220] ss:$16 sps:$4 sm:$0xff]  }
 0x49b   : > { %5845 = vmatprep.subr.bf16.mxu0 %v8072_v55  ;;  %v8128_v55 = vld [vmem:[%s10774_s6 + $0x28] ss:$16 sps:$4 sm:$0xff]  }
 0x49e   : > { %5846 = vmatpush2.bf16.msra.mxu0 %v8070_v37  ;;  %v8136_v37 = vld [vmem:[%s10774_s6 + $0xc] ss:$16 sps:$4 sm:$0xff]  }
 0x49f   : > { %v4617_v10 = vpop.f32.mrf.mxu1  ;;  %5847 = vmatprep.subr.bf16.mxu0 %v8077_v3  ;;  %v8131_v3 = vld [vmem:[%s10774_s6 + $0x200] ss:$16 sps:$4 sm:$0xff]  }
 0x4a0   : > { %v4618_v6 = vadd.f32 %v4617_v10, %v4575_v42  ;;  %v8140_v10 = vld [vmem:[%s10774_s6 + $0x1e8] ss:$16 sps:$4 sm:$0xff]   ;;  %v8149_v42 = vld [vmem:[%s10774_s6 + $0x3a0] ss:$16 sps:$4 sm:$0xff]  }
 0x4a1   : > { %v4619_v63 = vpop.f32.mrf.mxu1 }
 0x4a2   : > { %5848 = vmatpush2.bf16.msra.mxu0 %v8075_v50  ;;  %v4620_v4 = vadd.f32 %v4619_v63, %v4577_v2  ;;  %v4628_v27 = vmax.f32 %v4618_v6, 0.0  ;;  %v8142_v50 = vld [vmem:[%s10774_s6 + $0x1ec] ss:$16 sps:$4 sm:$0xff]   ;;  %v8143_v63 = vld [vmem:[%s10774_s6 + $0x3c0] ss:$16 sps:$4 sm:$0xff]  }
 0x4a3   : > { %v4621_v62 = vpop.f32.mrf.mxu1  ;;  %5849 = vmatprep.subr.bf16.mxu0 %v8082_v57  ;;  %v8145_v57 = vld [vmem:[%s10774_s6 + $0x3c4] ss:$16 sps:$4 sm:$0xff]   ;;  %v8146_v2 = vld [vmem:[%s10774_s6 + $0x1c8] ss:$16 sps:$4 sm:$0xff]  }
 0x4a4   : > { %v4622_v7 = vadd.f32 %v4621_v62, %v4579_v61  ;;  %v4629_v11 = vmax.f32 %v4620_v4, 0.0  ;;  %v8151_v61 = vld [vmem:[%s10774_s6 + $0x3a4] ss:$16 sps:$4 sm:$0xff]   ;;  %v8152_v62 = vld [vmem:[%s10774_s6 + $0x1a8] ss:$16 sps:$4 sm:$0xff]  }
 0x4a5   : > { %v4623_v12 = vpop.f32.mrf.mxu1  ;;  %v8155_v4 = vld [vmem:[%s10774_s6 + $0x380] ss:$16 sps:$4 sm:$0xff]   ;;  %v8163_v6 = vld [vmem:[%s10774_s6 + $0x364] ss:$16 sps:$4 sm:$0xff]  }
 0x4a6   : > { %v4624_v38 = vadd.f32 %v4623_v12, %v4581_v1  ;;  %5850 = vmatpush2.bf16.msra.mxu0 %v8080_v0  ;;  %v4632_v21 = vmax.f32 %v4622_v7, 0.0  ;;  %v8154_v0 = vld [vmem:[%s10774_s6 + $0x1ac] ss:$16 sps:$4 sm:$0xff]   ;;  %v8158_v7 = vld [vmem:[%s10774_s6 + $0x188] ss:$16 sps:$4 sm:$0xff]  }
 0x4a7   : > { %5851 = vmatprep.subr.bf16.mxu0 %v8087_v18  ;;  %v8157_v18 = vld [vmem:[%s10774_s6 + $0x384] ss:$16 sps:$4 sm:$0xff]   ;;  %v8160_v1 = vld [vmem:[%s10774_s6 + $0x18c] ss:$16 sps:$4 sm:$0xff]  }
 0x4a8   : > { %v4633_v15 = vmax.f32 %v4624_v38, 0.0  ;;  %v4636_v35 = vpack.c.bf16 %v4632_v21, %v4628_v27  ;;  %v8166_v12 = vld [vmem:[%s10774_s6 + $0x16c] ss:$16 sps:$4 sm:$0xff]   ;;  %v8161_v38 = vld [vmem:[%s10774_s6 + $0x360] ss:$16 sps:$4 sm:$0xff]  }
 0x4a9   : > { %v8169_v21 = vld [vmem:[%s10774_s6 + $0x344] ss:$16 sps:$4 sm:$0xff]  }
 0x4aa   : > { %v4637_v44 = vpack.c.bf16 %v4633_v15, %v4629_v11  ;;  %5852 = vmatpush2.bf16.msra.mxu0 %v8085_v56  ;;  %v8164_v56 = vld [vmem:[%s10774_s6 + $0x168] ss:$16 sps:$4 sm:$0xff]   ;;  %v8167_v11 = vld [vmem:[%s10774_s6 + $0x340] ss:$16 sps:$4 sm:$0xff]   ;;  %v8175_v27 = vld [vmem:[%s10774_s6 + $0x324] ss:$16 sps:$4 sm:$0xff]  }
 0x4ab   : > { %5907 = vmatprep.subr.bf16.mxu0 %v8094_v8  ;;  %v8172_v8 = vld [vmem:[%s10774_s6 + $0x14c] ss:$16 sps:$4 sm:$0xff]   ;;  %v8170_v15 = vld [vmem:[%s10774_s6 + $0x148] ss:$16 sps:$4 sm:$0xff]  }
 0x4ac   : > { %4974 = vmatprep.mubr.bf16.mxu1 %v4637_v44  ;;  %v8178_v44 = vld [vmem:[%s10774_s6 + $0x12c] ss:$16 sps:$4 sm:$0xff]  }
 0x4ad   : > { %5854 = vmatmul.mubr.bf16.vlgmr.msra.gmra.mxu0 %v8935_v20  ;;  %4975 = vmatmul.mubr.bf16.vlgmr.msra.gmra.mxu1 %v4636_v35  ;;  %v8181_v35 = vld [vmem:[%s10774_s6 + $0x304] ss:$16 sps:$4 sm:$0xff]  }
 0x4ae   : > { %5865 = vmatpush1.bf16.msra.mxu1 %v8089_v28  ;;  %5908 = vmatpush1.bf16.msra.mxu0 %v8092_v14  ;;  %v8173_v28 = vld [vmem:[%s10774_s6 + $0x320] ss:$16 sps:$4 sm:$0xff]   ;;  %v8176_v14 = vld [vmem:[%s10774_s6 + $0x128] ss:$16 sps:$4 sm:$0xff]  }
 0x4af   : > { %5939 = vmatprep.mubr.bf16.mxu0 %v8923_v9  ;;  %5896 = vmatprep.mubr.bf16.mxu1 %v8945_v32  ;;  %v8104_v9 = vld [vmem:[%s10774_s6 + $0xa8] ss:$16 sps:$4 sm:$0xff]  }
 0x4b0   : > { %5866 = vmatprep.subr.bf16.mxu1 %v8097_v39  ;;  %5909 = vmatprep.subr.bf16.mxu0 %v8100_v41  ;;  %v8184_v39 = vld [vmem:[%s10774_s6 + $0x10c] ss:$16 sps:$4 sm:$0xff]   ;;  %v8179_v41 = vld [vmem:[%s10774_s6 + $0x300] ss:$16 sps:$4 sm:$0xff]  }
 0x4b2   : > { %5867 = vmatpush1.bf16.msra.mxu1 %v8095_v51  ;;  %5910 = vmatpush1.bf16.msra.mxu0 %v8098_v54  ;;  %v8182_v51 = vld [vmem:[%s10774_s6 + $0x108] ss:$16 sps:$4 sm:$0xff]   ;;  %v8187_v54 = vld [vmem:[%s10774_s6 + $0x2ec] ss:$16 sps:$4 sm:$0xff]  }
 0x4b3   : > { %5868 = vmatprep.subr.bf16.mxu1 %v8103_v48  ;;  %5911 = vmatprep.subr.bf16.mxu0 %v8106_v53  ;;  %v8185_v48 = vld [vmem:[%s10774_s6 + $0x2e8] ss:$16 sps:$4 sm:$0xff]   ;;  %v8190_v53 = vld [vmem:[%s10774_s6 + $0x2cc] ss:$16 sps:$4 sm:$0xff]  }
 0x4b6   : > { %5869 = vmatpush1.bf16.msra.mxu1 %v8101_v16  ;;  %5912 = vmatpush1.bf16.msra.mxu0 %v8104_v9  ;;  %v8188_v16 = vld [vmem:[%s10774_s6 + $0x2c8] ss:$16 sps:$4 sm:$0xff]   ;;  %v8193_v9 = vld [vmem:[%s10774_s6 + $0x2ac] ss:$16 sps:$4 sm:$0xff]  }
 0x4b7   : > { %5870 = vmatprep.subr.bf16.mxu1 %v8109_v25  ;;  %5913 = vmatprep.subr.bf16.mxu0 %v8112_v19  ;;  %v8191_v25 = vld [vmem:[%s10774_s6 + $0x2a8] ss:$16 sps:$4 sm:$0xff]   ;;  %v8199_v19 = vld [vmem:[%s10774_s6 + $0x26c] ss:$16 sps:$4 sm:$0xff]  }
 0x4ba   : > { %5871 = vmatpush1.bf16.msra.mxu1 %v8107_v22  ;;  %5914 = vmatpush1.bf16.msra.mxu0 %v8110_v29  ;;  %v8197_v22 = vld [vmem:[%s10774_s6 + $0x268] ss:$16 sps:$4 sm:$0xff]  }
 0x4bb   : > { %5872 = vmatprep.subr.bf16.mxu1 %v8115_v33  ;;  %5915 = vmatprep.subr.bf16.mxu0 %v8118_v36  ;;  %v8233_v29 = vld [vmem:[%s10776_s8 + $0x78] sm:$0xff]   ;;  %v8235_v36 = vld [vmem:[%s10776_s8 + $0x70] sm:$0xff]  }
 0x4bc   : > { %v8234_v33 = vld [vmem:[%s10776_s8 + $0x38] sm:$0xff]  }
 0x4be   : > { %5873 = vmatpush1.bf16.msra.mxu1 %v8113_v40  ;;  %5916 = vmatpush1.bf16.msra.mxu0 %v8116_v23  ;;  %v8202_v40 = vld [vmem:[%s10774_s6 + $0x24c] ss:$16 sps:$4 sm:$0xff]   ;;  %v8236_v23 = vld [vmem:[%s10776_s8 + $0x30] sm:$0xff]  }
 0x4bf   : > { %5874 = vmatprep.subr.bf16.mxu1 %v8121_v24  ;;  %5917 = vmatprep.subr.bf16.mxu0 %v8124_v49  ;;  %v8200_v24 = vld [vmem:[%s10774_s6 + $0x248] ss:$16 sps:$4 sm:$0xff]  }
 0x4c0   : > { %v8237_v49 = vld [vmem:[%s10776_s8 + $0x68] sm:$0xff]  }
 0x4c2   : > { %5875 = vmatpush1.bf16.msra.mxu1 %v8119_v52  ;;  %5918 = vmatpush1.bf16.msra.mxu0 %v8122_v59  ;;  %v8205_v52 = vld [vmem:[%s10774_s6 + $0x22c] ss:$16 sps:$4 sm:$0xff]  }
 0x4c3   : > { %5876 = vmatprep.subr.bf16.mxu1 %v8127_v34  ;;  %5919 = vmatprep.subr.bf16.mxu0 %v8130_v60  ;;  %v8238_v59 = vld [vmem:[%s10776_s8 + $0x28] sm:$0xff]   ;;  %v8239_v60 = vld [vmem:[%s10776_s8 + $0x60] sm:$0xff]  }
 0x4c4   : > { %v8203_v34 = vld [vmem:[%s10774_s6 + $0x228] ss:$16 sps:$4 sm:$0xff]  }
 0x4c6   : > { %5877 = vmatpush1.bf16.msra.mxu1 %v8125_v26  ;;  %5920 = vmatpush1.bf16.msra.mxu0 %v8128_v55  ;;  %v8208_v26 = vld [vmem:[%s10774_s6 + $0x20c] ss:$16 sps:$4 sm:$0xff]   ;;  %v8240_v55 = vld [vmem:[%s10776_s8 + $0x20] sm:$0xff]  }
 0x4c7   : > { %5878 = vmatprep.subr.bf16.mxu1 %v8133_v17  ;;  %5921 = vmatprep.subr.bf16.mxu0 %v8136_v37  ;;  %v8206_v17 = vld [vmem:[%s10774_s6 + $0x208] ss:$16 sps:$4 sm:$0xff]  }
 0x4c8   : > { %v8241_v37 = vld [vmem:[%s10776_s8 + $0x58] sm:$0xff]  }
 0x4ca   : > { %5879 = vmatpush1.bf16.msra.mxu1 %v8131_v3  ;;  %5922 = vmatpush1.bf16.msra.mxu0 %v8134_v30  ;;  %v8211_v3 = vld [vmem:[%s10774_s6 + $0x3ec] ss:$16 sps:$4 sm:$0xff]  }
 0x4cb   : > { %5880 = vmatprep.subr.bf16.mxu1 %v8139_v5  ;;  %5923 = vmatprep.subr.bf16.mxu0 %v8142_v50  ;;  %v8242_v30 = vld [vmem:[%s10776_s8 + $0x18] sm:$0xff]  }
 0x4cc   : > { %v8209_v5 = vld [vmem:[%s10774_s6 + $0x3e8] ss:$16 sps:$4 sm:$0xff]   ;;  %v8214_v50 = vld [vmem:[%s10774_s6 + $0x3cc] ss:$16 sps:$4 sm:$0xff]  }
 0x4ce   : > { %5881 = vmatpush2.bf16.msra.mxu1 %v8137_v31  ;;  %5924 = vmatpush2.bf16.msra.mxu0 %v8140_v10  ;;  %v8212_v31 = vld [vmem:[%s10774_s6 + $0x3c8] ss:$16 sps:$4 sm:$0xff]   ;;  %v8217_v10 = vld [vmem:[%s10774_s6 + $0x3ac] ss:$16 sps:$4 sm:$0xff]  }
 0x4cf   : > { %5882 = vmatprep.subr.bf16.mxu1 %v8145_v57  ;;  %5925 = vmatprep.subr.bf16.mxu0 %v8148_v58  ;;  %v8215_v57 = vld [vmem:[%s10774_s6 + $0x3a8] ss:$16 sps:$4 sm:$0xff]   ;;  %v8220_v58 = vld [vmem:[%s10774_s6 + $0x38c] ss:$16 sps:$4 sm:$0xff]  }
 0x4d2   : > { %5883 = vmatpush2.bf16.msra.mxu1 %v8143_v63  ;;  %5926 = vmatpush2.bf16.msra.mxu0 %v8146_v2  ;;  %v8218_v63 = vld [vmem:[%s10774_s6 + $0x388] ss:$16 sps:$4 sm:$0xff]   ;;  %v8223_v2 = vld [vmem:[%s10774_s6 + $0x36c] ss:$16 sps:$4 sm:$0xff]  }
 0x4d3   : > { %5884 = vmatprep.subr.bf16.mxu1 %v8151_v61  ;;  %5927 = vmatprep.subr.bf16.mxu0 %v8154_v0  ;;  %v8221_v61 = vld [vmem:[%s10774_s6 + $0x368] ss:$16 sps:$4 sm:$0xff]   ;;  %v8226_v0 = vld [vmem:[%s10774_s6 + $0x34c] ss:$16 sps:$4 sm:$0xff]  }
 0x4d6   : > { %5885 = vmatpush2.bf16.msra.mxu1 %v8149_v42  ;;  %5928 = vmatpush2.bf16.msra.mxu0 %v8152_v62  ;;  %v8224_v42 = vld [vmem:[%s10774_s6 + $0x348] ss:$16 sps:$4 sm:$0xff]   ;;  %v8229_v62 = vld [vmem:[%s10774_s6 + $0x32c] ss:$16 sps:$4 sm:$0xff]  }
 0x4d7   : > { %5886 = vmatprep.subr.bf16.mxu1 %v8157_v18  ;;  %5929 = vmatprep.subr.bf16.mxu0 %v8160_v1  ;;  %v8227_v18 = vld [vmem:[%s10774_s6 + $0x328] ss:$16 sps:$4 sm:$0xff]   ;;  %v8232_v1 = vld [vmem:[%s10774_s6 + $0x30c] ss:$16 sps:$4 sm:$0xff]  }
 0x4da   : > { %5887 = vmatpush2.bf16.msra.mxu1 %v8155_v4  ;;  %5930 = vmatpush2.bf16.msra.mxu0 %v8158_v7  ;;  %v8230_v4 = vld [vmem:[%s10774_s6 + $0x308] ss:$16 sps:$4 sm:$0xff]   ;;  %v8243_v7 = vld [vmem:[%s10776_s8 + $0x50] sm:$0xff]  }
 0x4db   : > { %5888 = vmatprep.subr.bf16.mxu1 %v8163_v6  ;;  %5931 = vmatprep.subr.bf16.mxu0 %v8166_v12  ;;  %v8244_v6 = vld [vmem:[%s10776_s8 + $0x10] sm:$0xff]   ;;  %v8245_v12 = vld [vmem:[%s10776_s8 + $0x48] sm:$0xff]  }
 0x4de   : > { %5889 = vmatpush2.bf16.msra.mxu1 %v8161_v38  ;;  %5932 = vmatpush2.bf16.msra.mxu0 %v8164_v56  ;;  %v8246_v38 = vld [vmem:[%s10776_s8 + $0x8] sm:$0xff]   ;;  %v8248_v56 = vld [vmem:[%s10776_s8] sm:$0xff]  }
 0x4df   : > { %5890 = vmatprep.subr.bf16.mxu1 %v8169_v21  ;;  %5933 = vmatprep.subr.bf16.mxu0 %v8172_v8  ;;  %v8249_v21 = vld [vmem:[%s10776_s8 + $0xf8] sm:$0xff]  }
 0x4e0   : > { %v8250_v8 = vld [vmem:[%s10776_s8 + $0xb8] sm:$0xff]  }
 0x4e2   : > { %5891 = vmatpush2.bf16.msra.mxu1 %v8167_v11  ;;  %5934 = vmatpush2.bf16.msra.mxu0 %v8170_v15  ;;  %v8251_v11 = vld [vmem:[%s10776_s8 + $0xf0] sm:$0xff]  }
 0x4e3   : > { %5892 = vmatprep.subr.bf16.mxu1 %v8175_v27  ;;  %5935 = vmatprep.subr.bf16.mxu0 %v8178_v44  ;;  %v8252_v15 = vld [vmem:[%s10776_s8 + $0xb0] sm:$0xff]   ;;  %v8253_v27 = vld [vmem:[%s10776_s8 + $0xe8] sm:$0xff]  }
 0x4e4   : > { %v8254_v44 = vld [vmem:[%s10776_s8 + $0xa8] sm:$0xff]  }
 0x4e6   : > { %5893 = vmatpush2.bf16.msra.mxu1 %v8173_v28  ;;  %5936 = vmatpush2.bf16.msra.mxu0 %v8176_v14  ;;  %v8255_v28 = vld [vmem:[%s10776_s8 + $0xe0] sm:$0xff]  }
 0x4e7   : > { %5894 = vmatprep.subr.bf16.mxu1 %v8181_v35  ;;  %5937 = vmatprep.subr.bf16.mxu0 %v8184_v39  ;;  %v8256_v14 = vld [vmem:[%s10776_s8 + $0xa0] sm:$0xff]   ;;  %v8257_v35 = vld [vmem:[%s10776_s8 + $0xd8] sm:$0xff]  }
 0x4e8   : > { %v8258_v39 = vld [vmem:[%s10776_s8 + $0x98] sm:$0xff]  }
 0x4ea   : > { %5895 = vmatpush2.bf16.msra.mxu1 %v8179_v41  ;;  %5938 = vmatpush2.bf16.msra.mxu0 %v8182_v51 }
 0x4eb   : > { %5950 = vmatprep.subr.bf16.mxu1 %v8187_v54  ;;  %7296 = vmatprep.subr.bf16.mxu0 %v8233_v29 }
 0x4ed   : > { %5897 = vmatmul.mubr.bf16.vlgmr.msra.gmra.mxu1 %v8955_v13  ;;  %5940 = vmatmul.mubr.bf16.vlgmr.msra.gmra.mxu0 %v8935_v20  ;;  %v8196_v20 = vld [vmem:[%s10774_s6 + $0x28c] ss:$16 sps:$4 sm:$0xff]  }
 0x4ee   : > { %5951 = vmatpush1.bf16.msra.mxu1 %v8185_v48  ;;  %5982 = vmatprep.mubr.bf16.mxu1 %v8945_v32  ;;  %v8194_v32 = vld [vmem:[%s10774_s6 + $0x288] ss:$16 sps:$4 sm:$0xff]  }
 0x4ef   : > { %5952 = vmatprep.subr.bf16.mxu1 %v8190_v53  ;;  %7297 = vmatpush3.bf16.msra.mxu0 %v8234_v33  ;;  %v10710_v53 = vld [vmem:[%s10777_s9] ss:$0 sm:$0xff]  ;;  %v8259_v33 = vld [vmem:[%s10776_s8 + $0xd0] sm:$0xff]  }
 0x4f0   : > { %7298 = vmatprep.subr.bf16.mxu0 %v8235_v36  ;;  %v8260_v36 = vld [vmem:[%s10776_s8 + $0x90] sm:$0xff]  }
 0x4f2   : > { %5953 = vmatpush1.bf16.msra.mxu1 %v8188_v16 }
 0x4f3   : > { %5954 = vmatprep.subr.bf16.mxu1 %v8193_v9  ;;  %7299 = vmatpush3.bf16.msra.mxu0 %v8236_v23 }
 0x4f4   : > { %7300 = vmatprep.subr.bf16.mxu0 %v8237_v49 }
 0x4f6   : > { %5955 = vmatpush1.bf16.msra.mxu1 %v8191_v25 }
 0x4f7   : > { %5956 = vmatprep.subr.bf16.mxu1 %v8196_v20  ;;  %7301 = vmatpush3.bf16.msra.mxu0 %v8238_v59 }
 0x4f8   : > { %7302 = vmatprep.subr.bf16.mxu0 %v8239_v60 }
 0x4fa   : > { %5957 = vmatpush1.bf16.msra.mxu1 %v8194_v32 }
 0x4fb   : > { %5958 = vmatprep.subr.bf16.mxu1 %v8199_v19  ;;  %7303 = vmatpush3.bf16.msra.mxu0 %v8240_v55  ;;  %v8262_v55 = vld [vmem:[%s10776_s8 + $0x88] sm:$0xff]  }
 0x4fc   : > { %7304 = vmatprep.subr.bf16.mxu0 %v8241_v37  ;;  %v8264_v37 = vld [vmem:[%s10776_s8 + $0x80] sm:$0xff]  }
 0x4fe   : > { %5959 = vmatpush1.bf16.msra.mxu1 %v8197_v22 }
 0x4ff   : > { %5960 = vmatprep.subr.bf16.mxu1 %v8202_v40  ;;  %7305 = vmatpush3.bf16.msra.mxu0 %v8242_v30 }
 0x500   : > { %7306 = vmatprep.subr.bf16.mxu0 %v8243_v7 }
 0x502   : > { %5961 = vmatpush1.bf16.msra.mxu1 %v8200_v24  ;;  %v10721_v24 = vld [vmem:[%s8460_s19] sm:$0xff] }
 0x503   : > { %5962 = vmatprep.subr.bf16.mxu1 %v8205_v52  ;;  %7307 = vmatpush3.bf16.msra.mxu0 %v8244_v6 }
 0x504   : > { %7308 = vmatprep.subr.bf16.mxu0 %v8245_v12 }
 0x506   : > { %5963 = vmatpush1.bf16.msra.mxu1 %v8203_v34  ;;  %v10727_v34 = vld [vmem:[%s8460_s19 + $0x8] sm:$0xff] }
 0x507   : > { %5964 = vmatprep.subr.bf16.mxu1 %v8208_v26  ;;  %7309 = vmatpush3.bf16.msra.mxu0 %v8246_v38  ;;  %v8261_v26 = vld [vmem:[%s10776_s8 + $0xc8] sm:$0xff]  }
 0x50a   : > { %5965 = vmatpush1.bf16.msra.mxu1 %v8206_v17  ;;  %v8263_v17 = vld [vmem:[%s10776_s8 + $0xc0] sm:$0xff]  }
 0x50b   : > { %5966 = vmatprep.subr.bf16.mxu1 %v8211_v3 }
 0x50e   : > { %5967 = vmatpush2.bf16.msra.mxu1 %v8209_v5  ;;  %v5159_v5 = vld [vmem:[%s10775_s7] sm:$0xf] }
 0x50f   : > { %5968 = vmatprep.subr.bf16.mxu1 %v8214_v50 }
 0x512   : > { %5969 = vmatpush2.bf16.msra.mxu1 %v8212_v31  ;;  %v5168_v31 = vrot.slane %v5159_v5, %v8697_v45 }
 0x513   : > { %5970 = vmatprep.subr.bf16.mxu1 %v8217_v10  ;;  %v5164_v10 = vrot.slane %v5159_v5, %v8692_v43 }
 0x516   : > { %5971 = vmatpush2.bf16.msra.mxu1 %v8215_v57 }
 0x517   : > { %5972 = vmatprep.subr.bf16.mxu1 %v8220_v58 }
 0x51a   : > { %5973 = vmatpush2.bf16.msra.mxu1 %v8218_v63 }
 0x51b   : > { %5974 = vmatprep.subr.bf16.mxu1 %v8223_v2 }
 0x51e   : > { %5975 = vmatpush2.bf16.msra.mxu1 %v8221_v61 }
 0x51f   : > { %5976 = vmatprep.subr.bf16.mxu1 %v8226_v0 }
 0x522   : > { %5977 = vmatpush2.bf16.msra.mxu1 %v8224_v42 }
 0x523   : > { %5978 = vmatprep.subr.bf16.mxu1 %v8229_v62 }
 0x526   : > { %5979 = vmatpush2.bf16.msra.mxu1 %v8227_v18 }
 0x527   : > { %5980 = vmatprep.subr.bf16.mxu1 %v8232_v1 }
 0x52a   : > { %5981 = vmatpush2.bf16.msra.mxu1 %v8230_v4 }
 0x52b   : > { %7318 = vmatprep.subr.bf16.mxu1 %v8249_v21 }
 0x52d   : > { %5983 = vmatmul.mubr.bf16.vlgmr.msra.gmra.mxu1 %v8955_v13  ;;  %v8247_v13 = vld [vmem:[%s10776_s8 + $0x40] sm:$0xff]   ;;  %v7268_v41 = vpop.f32.mrf.mxu0 }
 0x52e   : > { %7310 = vmatprep.subr.bf16.mxu0 %v8247_v13  ;;  %7319 = vmatpush3.bf16.msra.mxu1 %v8250_v8 }
 0x52f   : > { %7311 = vmatpush3.bf16.msra.mxu0 %v8248_v56  ;;  %7320 = vmatprep.subr.bf16.mxu1 %v8251_v11  ;;  %v7269_v51 = vpop.f32.mrf.mxu0 }
 0x530   : > { %v7270_v48 = vadd.f32 %v7269_v51, %v7268_v41 }
 0x531   : > { %v7271_v54 = vpop.f32.mrf.mxu0 }
 0x532   : > { %7321 = vmatpush3.bf16.msra.mxu1 %v8252_v15  ;;  %v4936_v20 = vadd.f32 %v7270_v48, %v10710_v53  ;;  %v5176_v15 = vrot.slane %v5159_v5, %v8701_v47 }
 0x533   : > { %7322 = vmatprep.subr.bf16.mxu1 %v8253_v27  ;;  %v7272_v16 = vpop.f32.mrf.mxu0  ;;  %v5172_v27 = vrot.slane %v5159_v5, %v8699_v46 }
 0x534   : > { %v7273_v32 = vadd.f32 %v7272_v16, %v7271_v54 }
 0x536   : > { %7323 = vmatpush3.bf16.msra.mxu1 %v8254_v44  ;;  %v4939_v23 = vadd.f32 %v7273_v32, %v10710_v53 }
 0x537   : > { %7324 = vmatprep.subr.bf16.mxu1 %v8255_v28 }
 0x53a   : > { %7325 = vmatpush3.bf16.msra.mxu1 %v8256_v14 }
 0x53b   : > { %7326 = vmatprep.subr.bf16.mxu1 %v8257_v35 }
 0x53e   : > { %7327 = vmatpush3.bf16.msra.mxu1 %v8258_v39 }
 0x53f   : > { %7328 = vmatprep.subr.bf16.mxu1 %v8259_v33 }
 0x542   : > { %7329 = vmatpush3.bf16.msra.mxu1 %v8260_v36 }
 0x543   : > { %7330 = vmatprep.subr.bf16.mxu1 %v8261_v26 }
 0x546   : > { %7331 = vmatpush3.bf16.msra.mxu1 %v8262_v55 }
 0x547   : > { %7332 = vmatprep.subr.bf16.mxu1 %v8263_v17 }
 0x54a   : > { %7333 = vmatpush3.bf16.msra.mxu1 %v8264_v37 }
 0x56d   : > { %v7290_v9 = vpop.f32.mrf.mxu1  ;;  %v5855_v3 = vpop.f32.mrf.mxu0 }
 0x56e   : > { %v5856_v0 = vadd.f32 %v5855_v3, %v5164_v10 }
 0x56f   : > { %v7291_v25 = vpop.f32.mrf.mxu1  ;;  %v5857_v30 = vpop.f32.mrf.mxu0 }
 0x570   : > { %v7292_v19 = vadd.f32 %v7291_v25, %v7290_v9  ;;  %v5858_v2 = vadd.f32 %v5857_v30, %v5168_v31 }
 0x571   : > { %v7293_v22 = vpop.f32.mrf.mxu1  ;;  %v5859_v50 = vpop.f32.mrf.mxu0 }
 0x572   : > { %v4977_v29 = vadd.f32 %v7292_v19, %v4936_v20  ;;  %v5860_v61 = vadd.f32 %v5859_v50, %v5164_v10 }
 0x573   : > { %v7294_v40 = vpop.f32.mrf.mxu1  ;;  %v5861_v58 = vpop.f32.mrf.mxu0 }
 0x574   : > { %v4983_v49 = vadd.f32 %v10721_v24, %v4977_v29  ;;  %v7295_v52 = vadd.f32 %v7294_v40, %v7293_v22  ;;  %v5862_v62 = vadd.f32 %v5861_v58, %v5168_v31 }
 0x576   : > { %6993 = vst.msk [vmem:[%s9691_s22 + $0x20] sm:$0xff] %vm2251_vm0, %v4983_v49  ;;  %v4980_v59 = vadd.f32 %v7295_v52, %v4939_v23 }
 0x578   : > { %v4984_v60 = vadd.f32 %v10727_v34, %v4980_v59 }
 0x57a   : > { %6994 = vst.msk [vmem:[%s9691_s22 + $0x28] sm:$0xff] %vm2251_vm0, %v4984_v60 }
 0x5ad   : > { %v5898_v57 = vpop.f32.mrf.mxu1  ;;  %v5941_v43 = vpop.f32.mrf.mxu0 }
 0x5ae   : > { %v5899_v4 = vadd.f32 %v5898_v57, %v5856_v0  ;;  %v5942_v41 = vadd.f32 %v5941_v43, %v5172_v27 }
 0x5af   : > { %v5900_v63 = vpop.f32.mrf.mxu1  ;;  %v5943_v8 = vpop.f32.mrf.mxu0 }
 0x5b0   : > { %v5901_v18 = vadd.f32 %v5900_v63, %v5858_v2  ;;  %v5993_v56 = vmax.f32 %v5899_v4, 0.0  ;;  %v5944_v35 = vadd.f32 %v5943_v8, %v5176_v15 }
 0x5b1   : > { %v5902_v42 = vpop.f32.mrf.mxu1  ;;  %v5945_v11 = vpop.f32.mrf.mxu0 }
 0x5b2   : > { %v5903_v1 = vadd.f32 %v5902_v42, %v5860_v61  ;;  %v5994_v38 = vmax.f32 %v5901_v18, 0.0  ;;  %v5946_v39 = vadd.f32 %v5945_v11, %v5172_v27 }
 0x5b3   : > { %v5904_v7 = vpop.f32.mrf.mxu1  ;;  %v5947_v28 = vpop.f32.mrf.mxu0 }
 0x5b4   : > { %v5905_v6 = vadd.f32 %v5904_v7, %v5862_v62  ;;  %v5997_v12 = vmax.f32 %v5903_v1, 0.0  ;;  %v5948_v54 = vadd.f32 %v5947_v28, %v5176_v15 }
 0x5b6   : > { %v5998_v13 = vmax.f32 %v5905_v6, 0.0  ;;  %v6001_v21 = vpack.c.bf16 %v5997_v12, %v5993_v56 }
 0x5b8   : > { %v6002_v45 = vpack.c.bf16 %v5998_v13, %v5994_v38 }
 0x5ba   : > { %6300 = vmatprep.mubr.bf16.mxu0 %v6002_v45 }
 0x5bb   : > { %6301 = vmatmul.mubr.bf16.vlgmr.msra.gmra.mxu0 %v6001_v21 }
 0x5ed   : > { %v5984_v44 = vpop.f32.mrf.mxu1 }
 0x5ee   : > { %v5985_v9 = vadd.f32 %v5984_v44, %v5942_v41 }
 0x5ef   : > { %v5986_v14 = vpop.f32.mrf.mxu1 }
 0x5f0   : > { %v5987_v48 = vadd.f32 %v5986_v14, %v5944_v35  ;;  %v5995_v29 = vmax.f32 %v5985_v9, 0.0 }
 0x5f1   : > { %v5988_v51 = vpop.f32.mrf.mxu1 }
 0x5f2   : > { %v5989_v16 = vadd.f32 %v5988_v51, %v5946_v39  ;;  %v5996_v19 = vmax.f32 %v5987_v48, 0.0 }
 0x5f3   : > { %v5990_v25 = vpop.f32.mrf.mxu1 }
 0x5f4   : > { %v5991_v20 = vadd.f32 %v5990_v25, %v5948_v54  ;;  %v5999_v32 = vmax.f32 %v5989_v16, 0.0 }
 0x5f6   : > { %v6000_v22 = vmax.f32 %v5991_v20, 0.0  ;;  %v6003_v33 = vpack.c.bf16 %v5999_v32, %v5995_v29 }
 0x5f8   : > { %v6004_v47 = vpack.c.bf16 %v6000_v22, %v5996_v19 }
 0x5fa   : > { %6341 = vmatprep.mubr.bf16.mxu1 %v6004_v47 }
 0x5fb   : > { %6342 = vmatmul.mubr.bf16.vlgmr.msra.gmra.mxu1 %v6003_v33 }
 0x67b   : > { %v7312_v46 = vpop.f32.mrf.mxu0 }
 0x67d   : > { %v7313_v36 = vpop.f32.mrf.mxu0 }
 0x67e   : > { %v7314_v23 = vadd.f32 %v7313_v36, %v7312_v46 }
 0x67f   : > { %v7315_v40 = vpop.f32.mrf.mxu0 }
 0x680   : > { %v6303_v60 = vadd.f32 %v7314_v23, %v10710_v53 }
 0x681   : > { %v7316_v49 = vpop.f32.mrf.mxu0 }
 0x682   : > { %v7317_v26 = vadd.f32 %v7316_v49, %v7315_v40 }
 0x684   : > { %v6306_v30 = vadd.f32 %v7317_v26, %v10710_v53 }
 0x6bb   : > { %v7334_v52 = vpop.f32.mrf.mxu1 }
 0x6bd   : > { %v7335_v59 = vpop.f32.mrf.mxu1 }
 0x6be   : > { %v7336_v55 = vadd.f32 %v7335_v59, %v7334_v52 }
 0x6bf   : > { %v7337_v17 = vpop.f32.mrf.mxu1 }
 0x6c0   : > { %v6344_v37 = vadd.f32 %v7336_v55, %v6303_v60 }
 0x6c1   : > { %v7338_v3 = vpop.f32.mrf.mxu1 }
 0x6c2   : > { %v6350_v5 = vadd.f32 %v10721_v24, %v6344_v37  ;;  %v7339_v50 = vadd.f32 %v7338_v3, %v7337_v17 }
 0x6c4   : > { %7157 = vst.msk [vmem:[%s9691_s22 + $0x30] sm:$0xff] %vm2251_vm0, %v6350_v5  ;;  %v6347_v31 = vadd.f32 %v7339_v50, %v6306_v30 }
 0x6c6   : > { %v6351_v10 = vadd.f32 %v10727_v34, %v6347_v31 }
 0x6c8   : > { %7158 = vst.msk [vmem:[%s9691_s22 + $0x38] sm:$0xff] %vm2251_vm0, %v6351_v10 }
 0x6c9 PF: > { %s20_s15 = sadd.s32 1, %s8302_s15   ;;  %s10779_s13 = smov %s8298_s14 }
 0x6ca   : > { %p17_p5 = scmp.ge.s32.totalorder %s20_s15, 4   ;;  %s10780_s14 = smov %s10782_s16 }
 0x6cc   :  { %19 = sbr.rel (!%p17_p5) target bundleno = 2 (0x2), region = 101 }

</bundles_post_ra>
